<compile_context>
chip_gen: v7x
topology: tpu7x:2x2x1
jax: 0.10.0
libtpu: 0.0.40
codegen_flags: <defaults>
</compile_context>

<pallas_src>
import functools

import jax
import jax.numpy as jnp
from jax import lax
from jax.experimental import pallas as pl
from jax.experimental.pallas import tpu as pltpu

MASK_FILL = -1e30   # fill for masked scores
M_INIT = -1e28      # running-max init;  MASK_FILL - M_INIT << -700  =>  exp -> exactly 0


def _pick_tile(n, cap):
    """Largest power-of-two tile <= cap that divides n (falls back to n)."""
    t = cap
    while t >= 8:
        if n % t == 0:
            return t
        t //= 2
    return n


def _mosaic_params(sems, vmem_hint_bytes):
    # Explicit VMEM budget: >= 32 MiB (default scoped limit), capped well under
    # v7x's 64 MiB physical VMEM.  TODO(synk): for very large hidden, tile the
    # fused Nout axis of kernel 1 instead of raising this further.
    limit = int(min(max(32 * 1024 * 1024, 2 * vmem_hint_bytes), 56 * 1024 * 1024))
    return pltpu.CompilerParams(dimension_semantics=sems, vmem_limit_bytes=limit)


# ---------------------------------------------------------------------------
# Kernel 1: fused q/kv projection + partial RoPE.
# Grid: (M_tiles, K_tiles) over x reshaped to (B*S, H); K (hidden) reduction
# axis last ("arbitrary").  bf16 MXU inputs, f32 VMEM accumulator.
# ---------------------------------------------------------------------------
def _qkv_rope_kernel(x_ref, w_ref, cos_ref, sin_lo_ref, sin_hi_ref,
                     q_ref, k_ref, v_ref, acc_ref, *, D, half):
    ki = pl.program_id(1)

    @pl.when(ki == 0)
    def _():
        acc_ref[...] = jnp.zeros_like(acc_ref)

    # (tm, tk) @ (tk, 3*D) bf16 matmul, f32 accumulation.
    acc_ref[...] += jnp.dot(x_ref[...], w_ref[...],
                            preferred_element_type=jnp.float32)

    @pl.when(ki == pl.num_programs(1) - 1)
    def _():
        cos = cos_ref[...]          # (tm, D): rotary lanes duplicated, tail = 1
        sin_lo = sin_lo_ref[...]    # (tm, D): -sin on lanes [0, half), else 0
        sin_hi = sin_hi_ref[...]    # (tm, D): +sin on lanes [half, rot), else 0

        def rope(t):
            # NeoX rotate-half as full-lane FMAs: the lane permutation is done
            # with XLU rolls; signs / zeros are pre-folded into the sin tables.
            # pltpu.roll follows jnp.roll semantics: out[j] = in[(j - shift) % D].
            r_lo = pltpu.roll(t, D - half, axis=1)                    # t[j + half]
            r_hi = r_lo if (D - half) == half else pltpu.roll(t, half, axis=1)
            return t * cos + r_lo * sin_lo + r_hi * sin_hi

        # Slice the accumulator ref directly; write q, then k, then v so the
        # whole (tm, 3*D) f32 accumulator is never live in vregs at once.
        q_ref[...] = rope(acc_ref[:, :D]).astype(q_ref.dtype)
        k_ref[...] = rope(acc_ref[:, D:2 * D]).astype(k_ref.dtype)
        v_ref[...] = acc_ref[:, 2 * D:].astype(v_ref.dtype)


def qkv_rope_pallas(x2d, w_fused, cos, sin_lo, sin_hi, *, D, rot_dim, seq_len,
                    tm, tk):
    M, H = x2d.shape
    Nout = 3 * D
    assert w_fused.shape == (H, Nout)
    assert M % tm == 0 and seq_len % tm == 0 and H % tk == 0
    n_m, n_k = M // tm, H // tk
    n_s = seq_len // tm                     # rotary-table tiles per sequence
    half = rot_dim // 2
    kernel = functools.partial(_qkv_rope_kernel, D=D, half=half)
    vmem_hint = (2 * tm * tk * 2 + 2 * tk * Nout * 2      # x / weight (dbl-buf)
                 + 3 * 2 * tm * D * 4                     # cos/sin tables
                 + 3 * 2 * tm * D * 2                     # q/k/v outputs
                 + tm * Nout * 4)                         # f32 accumulator
    # Rows mi*tm .. (mi+1)*tm-1 of the flattened (B*S) axis all lie inside one
    # batch (tm divides S), and their positions align with table block mi % n_s.
    pos_map = lambda m, k: (m % n_s, 0)
    out_map = lambda m, k: (m, 0)
    return pl.pallas_call(
        kernel,
        out_shape=(jax.ShapeDtypeStruct((M, D), jnp.bfloat16),
                   jax.ShapeDtypeStruct((M, D), jnp.bfloat16),
                   jax.ShapeDtypeStruct((M, D), jnp.bfloat16)),
        grid=(n_m, n_k),
        in_specs=[
            pl.BlockSpec((tm, tk), lambda m, k: (m, k)),
            pl.BlockSpec((tk, Nout), lambda m, k: (k, 0)),
            pl.BlockSpec((tm, D), pos_map),
            pl.BlockSpec((tm, D), pos_map),
            pl.BlockSpec((tm, D), pos_map),
        ],
        out_specs=(
            pl.BlockSpec((tm, D), out_map),
            pl.BlockSpec((tm, D), out_map),
            pl.BlockSpec((tm, D), out_map),
        ),
        scratch_shapes=[pltpu.VMEM((tm, Nout), jnp.float32)],
        compiler_params=_mosaic_params(("parallel", "arbitrary"), vmem_hint),
    )(x2d, w_fused, cos, sin_lo, sin_hi)


# ---------------------------------------------------------------------------
# Kernel 2: sliding-window flash attention (single view-head, online softmax).
# Grid: (B, q_blocks, kv_steps); kv tile is decoupled from the q tile and
# sized to the window, and only blocks that can intersect the window are
# visited.  Softmax scale is pre-folded into Wq.
# ---------------------------------------------------------------------------
def _swa_kernel(q_ref, k_ref, v_ref, o_ref, m_sc, l_sc, acc_sc, *,
                window, tq, tkv, nw):
    qb = pl.program_id(1)
    w = pl.program_id(2)
    r = tq // tkv
    kv_blk = qb * r + (r - nw) + w          # may be < 0 near the sequence start

    @pl.when(w == 0)
    def _():
        m_sc[...] = jnp.full_like(m_sc, M_INIT)
        l_sc[...] = jnp.zeros_like(l_sc)
        acc_sc[...] = jnp.zeros_like(acc_sc)

    @pl.when(kv_blk >= 0)
    def _():
        q = q_ref[0]                        # (tq, D)  bf16, scale pre-folded
        k = k_ref[0]                        # (tkv, D) bf16
        v = v_ref[0]                        # (tkv, D) bf16
        s = lax.dot_general(q, k, (((1,), (1,)), ((), ())),
                            preferred_element_type=jnp.float32)   # (tq, tkv)

        q_pos = qb * tq + lax.broadcasted_iota(jnp.int32, (tq, tkv), 0)
        k_pos = kv_blk * tkv + lax.broadcasted_iota(jnp.int32, (tq, tkv), 1)
        mask = (k_pos <= q_pos) & ((q_pos - k_pos) <= window)
        s = jnp.where(mask, s, MASK_FILL)

        m_prev = m_sc[...]
        m_next = jnp.maximum(m_prev, jnp.max(s, axis=-1, keepdims=True))
        alpha = jnp.exp(m_prev - m_next)
        # Masked columns (and fully-masked rows, since m_next >= M_INIT >> MASK_FILL)
        # underflow to exactly 0 — no reliance on NEG_INF - NEG_INF cancellation.
        p = jnp.exp(s - m_next)
        l_sc[...] = alpha * l_sc[...] + jnp.sum(p, axis=-1, keepdims=True)
        pv = lax.dot_general(p.astype(v.dtype), v, (((1,), (0,)), ((), ())),
                             preferred_element_type=jnp.float32)
        acc_sc[...] = alpha * acc_sc[...] + pv
        m_sc[...] = m_next

    @pl.when(w == nw - 1)
    def _():
        inv_l = pl.reciprocal(l_sc[...], approx=True)       # EUP slot
        o_ref[0] = (acc_sc[...] * inv_l).astype(o_ref.dtype)


def sliding_attention_pallas(q, k, v, *, window, tq, tkv):
    B, S, D = q.shape
    assert S % tq == 0 and tq % tkv == 0
    nq = S // tq
    nk = S // tkv
    r = tq // tkv
    wblk = -(-window // tkv)                # ceil(window / tkv)
    nw = min(r + wblk, nk)                  # kv blocks that can touch the window
    kernel = functools.partial(_swa_kernel, window=window, tq=tq, tkv=tkv, nw=nw)
    # Negative kv blocks (sequence start) are clamped to 0 in the index map and
    # skipped in-kernel via pl.when(kv_blk >= 0).
    kv_idx = lambda b, qb, w: (b, jnp.maximum(qb * r + (r - nw) + w, 0), 0)
    q_idx = lambda b, qb, w: (b, qb, 0)
    vmem_hint = (2 * tq * D * 2 + 2 * 2 * tkv * D * 2 + 2 * tq * D * 2
                 + tq * D * 4 + 2 * tq * 4)
    return pl.pallas_call(
        kernel,
        out_shape=jax.ShapeDtypeStruct((B, S, D), jnp.bfloat16),
        grid=(B, nq, nw),
        in_specs=[
            pl.BlockSpec((1, tq, D), q_idx),
            pl.BlockSpec((1, tkv, D), kv_idx),
            pl.BlockSpec((1, tkv, D), kv_idx),
        ],
        out_specs=pl.BlockSpec((1, tq, D), q_idx),
        scratch_shapes=[
            pltpu.VMEM((tq, 1), jnp.float32),    # running max
            pltpu.VMEM((tq, 1), jnp.float32),    # running denom
            pltpu.VMEM((tq, D), jnp.float32),    # running output accumulator
        ],
        compiler_params=_mosaic_params(("parallel", "parallel", "arbitrary"),
                                       vmem_hint),
    )(q, k, v)


# ---------------------------------------------------------------------------
# Kernel 3: output projection over the flattened (B*S, H) activations.
# Grid: (M_tiles, N_tiles, K_tiles); f32 accumulator, bf16 MXU inputs.
# ---------------------------------------------------------------------------
def _out_proj_kernel(a_ref, w_ref, o_ref, acc_ref):
    ki = pl.program_id(2)

    @pl.when(ki == 0)
    def _():
        acc_ref[...] = jnp.zeros_like(acc_ref)

    acc_ref[...] += jnp.dot(a_ref[...], w_ref[...],
                            preferred_element_type=jnp.float32)

    @pl.when(ki == pl.num_programs(2) - 1)
    def _():
        o_ref[...] = acc_ref[...].astype(o_ref.dtype)


def out_proj_pallas(a2d, w, *, tm, tn, tk, out_dtype):
    M, H = a2d.shape
    Hout = w.shape[1]
    assert w.shape[0] == H and M % tm == 0 and H % tk == 0 and Hout % tn == 0
    vmem_hint = (2 * tm * tk * 2 + 2 * tk * tn * 2
                 + 2 * tm * tn * jnp.dtype(out_dtype).itemsize + tm * tn * 4)
    return pl.pallas_call(
        _out_proj_kernel,
        out_shape=jax.ShapeDtypeStruct((M, Hout), out_dtype),
        grid=(M // tm, Hout // tn, H // tk),
        in_specs=[
            pl.BlockSpec((tm, tk), lambda m, n, k: (m, k)),
            pl.BlockSpec((tk, tn), lambda m, n, k: (k, n)),
        ],
        out_specs=pl.BlockSpec((tm, tn), lambda m, n, k: (m, n)),
        scratch_shapes=[pltpu.VMEM((tm, tn), jnp.float32)],
        compiler_params=_mosaic_params(("parallel", "parallel", "arbitrary"),
                                       vmem_hint),
    )(a2d, w)


# ---------------------------------------------------------------------------
# Parameters & one-time preparation.
# ---------------------------------------------------------------------------
def init_params(key, hidden_dim, head_dim, q_heads, kv_heads):
    """Matches reset_parameters(): normal(std=hidden_dim**-0.5).  Weights are
    stored as (in_features, out_features) == PyTorch weight.T, and q/kv are
    pre-fused along the output axis, so no per-forward transposes are emitted."""
    k1, k2, k3 = jax.random.split(key, 3)
    std = hidden_dim ** -0.5
    wq = jax.random.normal(k1, (hidden_dim, head_dim * q_heads), jnp.float32) * std
    wkv = jax.random.normal(k2, (hidden_dim, 2 * head_dim * kv_heads), jnp.float32) * std
    wo = jax.random.normal(k3, (hidden_dim, hidden_dim), jnp.float32) * std
    return {"wqkv": jnp.concatenate([wq, wkv], axis=1), "wo": wo}


def prepare_params(params, *, hidden_dim):
    """One-time weight prep: fold the softmax scale (hidden_dim**-0.5, the
    per-view-head dim flash-attn receives) into the q columns — exact because
    RoPE is linear — then cast to bf16 MXU inputs."""
    D = hidden_dim
    scale = D ** -0.5
    wqkv = params["wqkv"].at[:, :D].multiply(scale)
    return {"wqkv": wqkv.astype(jnp.bfloat16),
            "wo": params["wo"].astype(jnp.bfloat16)}


def make_rope_tables(seq_len, rot_dim, feat_dim, base=10000.0):
    """Full-width (S, feat_dim) tables so partial NeoX RoPE becomes a pure
    lane-dense FMA plus lane rolls (out[j] = in[(j - shift) % feat_dim]):

        rope(t) = t*cos + roll(t, feat-half)*sin_lo + roll(t, half)*sin_hi

    cos:    cos(theta_j) on lanes [0, rot_dim), 1 on the tail.
    sin_lo: -sin(theta_j) on lanes [0, half), 0 elsewhere    (pairs with t[j+half])
    sin_hi: +sin(theta_{j-half}) on lanes [half, rot_dim), 0 elsewhere
    """
    half = rot_dim // 2
    inv_freq = 1.0 / (base ** (jnp.arange(half, dtype=jnp.float32) / half))
    pos = jnp.arange(seq_len, dtype=jnp.float32)
    ang = jnp.outer(pos, inv_freq)                              # (S, half)
    cos, sin = jnp.cos(ang), jnp.sin(ang)
    tail0 = jnp.zeros((seq_len, feat_dim - rot_dim), jnp.float32)
    tail1 = jnp.ones((seq_len, feat_dim - rot_dim), jnp.float32)
    zeros_half = jnp.zeros((seq_len, half), jnp.float32)
    cos_full = jnp.concatenate([cos, cos, tail1], axis=-1)
    sin_lo = jnp.concatenate([-sin, zeros_half, tail0], axis=-1)
    sin_hi = jnp.concatenate([zeros_half, sin, tail0], axis=-1)
    return cos_full, sin_lo, sin_hi


# ---------------------------------------------------------------------------
# Full SlidingGQA forward.
# ---------------------------------------------------------------------------
def sliding_gqa_forward(prepared, x, rope_tables, *, hidden_dim, head_dim,
                        q_heads, kv_heads, window_size,
                        tm=256, tq=128, tkv=None):
    B, S, H = x.shape
    assert H == hidden_dim
    # The module's .view(B, S, -1, hidden_dim) + final .view(B, S, hidden_dim)
    # force a single "view head" of width hidden_dim for both q and kv.
    assert head_dim * q_heads == hidden_dim, "module views require head_dim*q_heads == hidden_dim"
    assert head_dim * kv_heads == hidden_dim, "GQA with one q view-head requires head_dim*kv_heads == hidden_dim"
    assert hidden_dim % 128 == 0, "lane-dense feature dim required"
    D = hidden_dim
    M = B * S

    # Tiling (defaults target v6e/v7x; on v5e prefer tm=128 with a larger tk).
    tm = _pick_tile(S, tm)                   # M tile (<= S: keeps rotary tables aligned)
    tk = _pick_tile(hidden_dim, 256)         # hidden-reduction tile (both projections)
    tn = _pick_tile(hidden_dim, 256)         # output-projection N tile
    tq = _pick_tile(S, tq)                   # attention q tile
    if tkv is None:                          # KV tile sized to the sliding window
        tkv = min(tq, max(64, 64 * (-(-window_size // 64))))
    tkv = _pick_tile(tq, tkv)

    cos_full, sin_lo, sin_hi = rope_tables
    assert cos_full.shape == (S, D)

    # 1) fused q/kv projection + RoPE over the flattened (B*S, H) activations.
    x2d = x.astype(jnp.bfloat16).reshape(M, H)
    q2d, k2d, v2d = qkv_rope_pallas(x2d, prepared["wqkv"], cos_full, sin_lo,
                                    sin_hi, D=D, rot_dim=head_dim, seq_len=S,
                                    tm=tm, tk=tk)
    q = q2d.reshape(B, S, D)
    k = k2d.reshape(B, S, D)
    v = v2d.reshape(B, S, D)

    # 2) sliding-window flash attention (scale already folded into Wq).
    o = sliding_attention_pallas(q, k, v, window=window_size, tq=tq, tkv=tkv)

    # 3) output projection back to (B, S, hidden).  out_dtype follows x.dtype
    #    for module fidelity (pass bf16 here if the next layer consumes bf16).
    tm3 = _pick_tile(M, 256)
    y2d = out_proj_pallas(o.reshape(M, D), prepared["wo"], tm=tm3, tn=tn, tk=tk,
                          out_dtype=x.dtype)
    return y2d.reshape(B, S, hidden_dim)


if __name__ == "__main__":
    # Shapes consistent with the module's view constraints
    # (head_dim * q_heads == head_dim * kv_heads == hidden_dim), lane-dense.
    hidden_dim, head_dim, q_heads, kv_heads, window_size = 128, 32, 4, 4, 64
    B, S = 2, 256

    key = jax.random.PRNGKey(0)
    kx, kp = jax.random.split(key)
    x = jax.random.normal(kx, (B, S, hidden_dim), jnp.float32)
    params = init_params(kp, hidden_dim, head_dim, q_heads, kv_heads)
    prepared = prepare_params(params, hidden_dim=hidden_dim)
    rope_tables = make_rope_tables(S, head_dim, hidden_dim)   # hoisted out of forward

    fwd = jax.jit(functools.partial(
        sliding_gqa_forward,
        hidden_dim=hidden_dim, head_dim=head_dim,
        q_heads=q_heads, kv_heads=kv_heads, window_size=window_size))
    y = fwd(prepared, x, rope_tables)
    jax.block_until_ready(y)

    assert y.shape == (B, S, hidden_dim) and y.dtype == jnp.float32
    assert bool(jnp.all(jnp.isfinite(y)))
    print("KERNEL_OK")
</pallas_src>

<mosaic_0001>
module attributes {stable_mosaic.version = 11 : i64} {
  func.func @_swa_kernel(%arg0: i32, %arg1: i32, %arg2: i32, %arg3: memref<1x128x128xbf16, #tpu.memory_space<vmem>>, %arg4: memref<1x64x128xbf16, #tpu.memory_space<vmem>>, %arg5: memref<1x64x128xbf16, #tpu.memory_space<vmem>>, %arg6: memref<1x128x128xbf16, #tpu.memory_space<vmem>>, %arg7: memref<128x1xf32, #tpu.memory_space<vmem>>, %arg8: memref<128x1xf32, #tpu.memory_space<vmem>>, %arg9: memref<128x128xf32, #tpu.memory_space<vmem>>) attributes {dimension_semantics = [#tpu.dimension_semantics<parallel>, #tpu.dimension_semantics<parallel>, #tpu.dimension_semantics<arbitrary>], iteration_bounds = array<i64: 2, 2, 3>, scalar_prefetch = 0 : i64, scratch_operands = 3 : i64, tpu.core_type = #tpu.core_type<tc>, window_params = [{transform_indices = @transform_0, window_bounds = array<i64: 1, 128, 128>}, {transform_indices = @transform_1, window_bounds = array<i64: 1, 64, 128>}, {transform_indices = @transform_2, window_bounds = array<i64: 1, 64, 128>}, {transform_indices = @transform_3, window_bounds = array<i64: 1, 128, 128>}]} {
    %c2_i32 = arith.constant 2 : i32
    %0 = arith.muli %arg1, %c2_i32 : i32
    %c-1_i32 = arith.constant -1 : i32
    %1 = arith.addi %0, %c-1_i32 : i32
    %2 = arith.addi %1, %arg2 : i32
    %c0_i32 = arith.constant 0 : i32
    %3 = arith.cmpi eq, %arg2, %c0_i32 : i32
    %4 = arith.extui %3 : i1 to i32
    %c0_i32_0 = arith.constant 0 : i32
    %5 = arith.cmpi ne, %4, %c0_i32_0 : i32
    scf.if %5 {
      %cst = arith.constant -9.99999944E+27 : f32
      %12 = vector.broadcast %cst : f32 to vector<128x1xf32>
      %c0 = arith.constant 0 : index
      %c0_5 = arith.constant 0 : index
      %13 = vector.load %arg7[%c0, %c0_5] : memref<128x1xf32, #tpu.memory_space<vmem>>, vector<128x1xf32>
      tpu.vector_store %arg7[%c0, %c0_5], %12 {strides = array<i32>} : memref<128x1xf32, #tpu.memory_space<vmem>>, vector<128x1xf32>,
      %cst_6 = arith.constant 0.000000e+00 : f32
      %14 = vector.broadcast %cst_6 : f32 to vector<128x1xf32>
      %c0_7 = arith.constant 0 : index
      %c0_8 = arith.constant 0 : index
      %15 = vector.load %arg8[%c0_7, %c0_8] : memref<128x1xf32, #tpu.memory_space<vmem>>, vector<128x1xf32>
      tpu.vector_store %arg8[%c0_7, %c0_8], %14 {strides = array<i32>} : memref<128x1xf32, #tpu.memory_space<vmem>>, vector<128x1xf32>,
      %cst_9 = arith.constant 0.000000e+00 : f32
      %16 = vector.broadcast %cst_9 : f32 to vector<128x128xf32>
      %c0_10 = arith.constant 0 : index
      %c0_11 = arith.constant 0 : index
      %17 = vector.load %arg9[%c0_10, %c0_11] : memref<128x128xf32, #tpu.memory_space<vmem>>, vector<128x128xf32>
      tpu.vector_store %arg9[%c0_10, %c0_11], %16 {strides = array<i32>} : memref<128x128xf32, #tpu.memory_space<vmem>>, vector<128x128xf32>,
    } else {
    }
    %c0_i32_1 = arith.constant 0 : i32
    %6 = arith.cmpi sge, %2, %c0_i32_1 : i32
    %7 = arith.extui %6 : i1 to i32
    %c0_i32_2 = arith.constant 0 : i32
    %8 = arith.cmpi ne, %7, %c0_i32_2 : i32
    scf.if %8 {
      %c0 = arith.constant 0 : index
      %c0_5 = arith.constant 0 : index
      %c0_6 = arith.constant 0 : index
      %12 = vector.load %arg3[%c0, %c0_5, %c0_6] : memref<1x128x128xbf16, #tpu.memory_space<vmem>>, vector<1x128x128xbf16>
      %13 = vector.shape_cast %12 : vector<1x128x128xbf16> to vector<128x128xbf16>
      %c0_7 = arith.constant 0 : index
      %c0_8 = arith.constant 0 : index
      %c0_9 = arith.constant 0 : index
      %14 = vector.load %arg4[%c0_7, %c0_8, %c0_9] : memref<1x64x128xbf16, #tpu.memory_space<vmem>>, vector<1x64x128xbf16>
      %15 = vector.shape_cast %14 : vector<1x64x128xbf16> to vector<64x128xbf16>
      %c0_10 = arith.constant 0 : index
      %c0_11 = arith.constant 0 : index
      %c0_12 = arith.constant 0 : index
      %16 = vector.load %arg5[%c0_10, %c0_11, %c0_12] : memref<1x64x128xbf16, #tpu.memory_space<vmem>>, vector<1x64x128xbf16>
      %17 = vector.shape_cast %16 : vector<1x64x128xbf16> to vector<64x128xbf16>
      %cst = arith.constant dense<0.000000e+00> : vector<128x64xf32>
      %18 = tpu.matmul %13, %15, %cst {dimension_numbers = #tpu.dot_dimension_numbers<[1], [1], [0], [0], [0, 0, 1, 0], [], []>} : vector<128x128xbf16>, vector<64x128xbf16>, vector<128x64xf32> -> vector<128x64xf32>
      %c128_i32 = arith.constant 128 : i32
      %19 = arith.muli %arg1, %c128_i32 : i32
      %20 = tpu.iota {dimensions = array<i32: 0>} : vector<128x64xi32>
      %21 = vector.broadcast %19 : i32 to vector<128x64xi32>
      %22 = arith.addi %21, %20 : vector<128x64xi32>
      %c64_i32 = arith.constant 64 : i32
      %23 = arith.muli %2, %c64_i32 : i32
      %24 = tpu.iota {dimensions = array<i32: 1>} : vector<128x64xi32>
      %25 = vector.broadcast %23 : i32 to vector<128x64xi32>
      %26 = arith.addi %25, %24 : vector<128x64xi32>
      %27 = arith.cmpi sle, %26, %22 : vector<128x64xi32>
      %28 = arith.subi %22, %26 : vector<128x64xi32>
      %c64_i32_13 = arith.constant 64 : i32
      %29 = vector.broadcast %c64_i32_13 : i32 to vector<128x64xi32>
      %30 = arith.cmpi sle, %28, %29 : vector<128x64xi32>
      %31 = arith.andi %27, %30 : vector<128x64xi1>
      %cst_14 = arith.constant -1.000000e+30 : f32
      %32 = vector.broadcast %cst_14 : f32 to vector<128x64xf32>
      %33 = arith.select %31, %18, %32 : vector<128x64xi1>, vector<128x64xf32>
      %c0_15 = arith.constant 0 : index
      %c0_16 = arith.constant 0 : index
      %34 = vector.load %arg7[%c0_15, %c0_16] : memref<128x1xf32, #tpu.memory_space<vmem>>, vector<128x1xf32>
      %cst_17 = arith.constant dense<0xFF800000> : vector<128xf32>
      %35 = vector.multi_reduction <maximumf>, %33, %cst_17 [1] : vector<128x64xf32> to vector<128xf32>
      %36 = vector.shape_cast %35 : vector<128xf32> to vector<128x1xf32>
      %37 = arith.maximumf %34, %36 : vector<128x1xf32>
      %38 = arith.subf %34, %37 : vector<128x1xf32>
      %39 = math.exp %38 : vector<128x1xf32>
      %40 = vector.broadcast %37 : vector<128x1xf32> to vector<128x64xf32>
      %41 = arith.subf %33, %40 : vector<128x64xf32>
      %42 = math.exp %41 : vector<128x64xf32>
      %c0_18 = arith.constant 0 : index
      %c0_19 = arith.constant 0 : index
      %43 = vector.load %arg8[%c0_18, %c0_19] : memref<128x1xf32, #tpu.memory_space<vmem>>, vector<128x1xf32>
      %44 = arith.mulf %39, %43 : vector<128x1xf32>
      %cst_20 = arith.constant dense<0.000000e+00> : vector<128xf32>
      %45 = vector.multi_reduction <add>, %42, %cst_20 [1] : vector<128x64xf32> to vector<128xf32>
      %46 = vector.shape_cast %45 : vector<128xf32> to vector<128x1xf32>
      %47 = arith.addf %44, %46 : vector<128x1xf32>
      %c0_21 = arith.constant 0 : index
      %c0_22 = arith.constant 0 : index
      %48 = vector.load %arg8[%c0_21, %c0_22] : memref<128x1xf32, #tpu.memory_space<vmem>>, vector<128x1xf32>
      tpu.vector_store %arg8[%c0_21, %c0_22], %47 {strides = array<i32>} : memref<128x1xf32, #tpu.memory_space<vmem>>, vector<128x1xf32>,
      %49 = arith.truncf %42 : vector<128x64xf32> to vector<128x64xbf16>
      %cst_23 = arith.constant dense<0.000000e+00> : vector<128x128xf32>
      %50 = tpu.matmul %49, %17, %cst_23 {dimension_numbers = #tpu.dot_dimension_numbers<[1], [0], [0], [1], [0, 0, 1, 1], [], []>} : vector<128x64xbf16>, vector<64x128xbf16>, vector<128x128xf32> -> vector<128x128xf32>
      %c0_24 = arith.constant 0 : index
      %c0_25 = arith.constant 0 : index
      %51 = vector.load %arg9[%c0_24, %c0_25] : memref<128x128xf32, #tpu.memory_space<vmem>>, vector<128x128xf32>
      %52 = vector.broadcast %39 : vector<128x1xf32> to vector<128x128xf32>
      %53 = arith.mulf %52, %51 : vector<128x128xf32>
      %54 = arith.addf %53, %50 : vector<128x128xf32>
      %c0_26 = arith.constant 0 : index
      %c0_27 = arith.constant 0 : index
      %55 = vector.load %arg9[%c0_26, %c0_27] : memref<128x128xf32, #tpu.memory_space<vmem>>, vector<128x128xf32>
      tpu.vector_store %arg9[%c0_26, %c0_27], %54 {strides = array<i32>} : memref<128x128xf32, #tpu.memory_space<vmem>>, vector<128x128xf32>,
      %c0_28 = arith.constant 0 : index
      %c0_29 = arith.constant 0 : index
      %56 = vector.load %arg7[%c0_28, %c0_29] : memref<128x1xf32, #tpu.memory_space<vmem>>, vector<128x1xf32>
      tpu.vector_store %arg7[%c0_28, %c0_29], %37 {strides = array<i32>} : memref<128x1xf32, #tpu.memory_space<vmem>>, vector<128x1xf32>,
    } else {
    }
    %c2_i32_3 = arith.constant 2 : i32
    %9 = arith.cmpi eq, %arg2, %c2_i32_3 : i32
    %10 = arith.extui %9 : i1 to i32
    %c0_i32_4 = arith.constant 0 : i32
    %11 = arith.cmpi ne, %10, %c0_i32_4 : i32
    scf.if %11 {
      %c0 = arith.constant 0 : index
      %c0_5 = arith.constant 0 : index
      %12 = vector.load %arg8[%c0, %c0_5] : memref<128x1xf32, #tpu.memory_space<vmem>>, vector<128x1xf32>
      %13 = tpu.reciprocal %12 {approx = true} : vector<128x1xf32> -> vector<128x1xf32>
      %c0_6 = arith.constant 0 : index
      %c0_7 = arith.constant 0 : index
      %14 = vector.load %arg9[%c0_6, %c0_7] : memref<128x128xf32, #tpu.memory_space<vmem>>, vector<128x128xf32>
      %15 = vector.broadcast %13 : vector<128x1xf32> to vector<128x128xf32>
      %16 = arith.mulf %14, %15 : vector<128x128xf32>
      %17 = arith.truncf %16 : vector<128x128xf32> to vector<128x128xbf16>
      %c0_8 = arith.constant 0 : index
      %c0_9 = arith.constant 0 : index
      %c0_10 = arith.constant 0 : index
      %18 = vector.load %arg6[%c0_8, %c0_9, %c0_10] : memref<1x128x128xbf16, #tpu.memory_space<vmem>>, vector<1x128x128xbf16>
      %19 = vector.shape_cast %18 : vector<1x128x128xbf16> to vector<128x128xbf16>
      %20 = vector.shape_cast %17 : vector<128x128xbf16> to vector<1x128x128xbf16>
      tpu.vector_store %arg6[%c0_8, %c0_9, %c0_10], %20 {strides = array<i32>} : memref<1x128x128xbf16, #tpu.memory_space<vmem>>, vector<1x128x128xbf16>,
    } else {
    }
    return
  }
  func.func @transform_0(%arg0: i32, %arg1: i32, %arg2: i32) -> (i32, i32, i32) {
    %c0_i32 = arith.constant 0 : i32
    %c0_i32_0 = arith.constant 0 : i32
    return %arg0, %arg1, %c0_i32 : i32, i32, i32
  }
  func.func @transform_1(%arg0: i32, %arg1: i32, %arg2: i32) -> (i32, i32, i32) {
    %c2_i32 = arith.constant 2 : i32
    %0 = arith.muli %arg1, %c2_i32 : i32
    %c-1_i32 = arith.constant -1 : i32
    %1 = arith.addi %0, %c-1_i32 : i32
    %2 = arith.addi %1, %arg2 : i32
    %c0_i32 = arith.constant 0 : i32
    %3 = arith.maxsi %2, %c0_i32 : i32
    %c0_i32_0 = arith.constant 0 : i32
    %c0_i32_1 = arith.constant 0 : i32
    return %arg0, %3, %c0_i32_0 : i32, i32, i32
  }
  func.func @transform_2(%arg0: i32, %arg1: i32, %arg2: i32) -> (i32, i32, i32) {
    %c2_i32 = arith.constant 2 : i32
    %0 = arith.muli %arg1, %c2_i32 : i32
    %c-1_i32 = arith.constant -1 : i32
    %1 = arith.addi %0, %c-1_i32 : i32
    %2 = arith.addi %1, %arg2 : i32
    %c0_i32 = arith.constant 0 : i32
    %3 = arith.maxsi %2, %c0_i32 : i32
    %c0_i32_0 = arith.constant 0 : i32
    %c0_i32_1 = arith.constant 0 : i32
    return %arg0, %3, %c0_i32_0 : i32, i32, i32
  }
  func.func @transform_3(%arg0: i32, %arg1: i32, %arg2: i32) -> (i32, i32, i32) {
    %c0_i32 = arith.constant 0 : i32
    %c0_i32_0 = arith.constant 0 : i32
    return %arg0, %arg1, %c0_i32 : i32, i32, i32
  }
}

module attributes {stable_mosaic.version = 11 : i64} {
  func.func @_out_proj_kernel(%arg0: i32, %arg1: i32, %arg2: i32, %arg3: memref<256x128xbf16, #tpu.memory_space<vmem>>, %arg4: memref<128x128xbf16, #tpu.memory_space<vmem>>, %arg5: memref<256x128xf32, #tpu.memory_space<vmem>>, %arg6: memref<256x128xf32, #tpu.memory_space<vmem>>) attributes {dimension_semantics = [#tpu.dimension_semantics<parallel>, #tpu.dimension_semantics<parallel>, #tpu.dimension_semantics<arbitrary>], iteration_bounds = array<i64: 2, 1, 1>, scalar_prefetch = 0 : i64, scratch_operands = 1 : i64, tpu.core_type = #tpu.core_type<tc>, window_params = [{transform_indices = @transform_0, window_bounds = array<i64: 256, 128>}, {transform_indices = @transform_1, window_bounds = array<i64: 128, 128>}, {transform_indices = @transform_2, window_bounds = array<i64: 256, 128>}]} {
    %c0_i32 = arith.constant 0 : i32
    %0 = arith.cmpi eq, %arg2, %c0_i32 : i32
    %1 = arith.extui %0 : i1 to i32
    %c0_i32_0 = arith.constant 0 : i32
    %2 = arith.cmpi ne, %1, %c0_i32_0 : i32
    scf.if %2 {
      %cst_10 = arith.constant 0.000000e+00 : f32
      %12 = vector.broadcast %cst_10 : f32 to vector<256x128xf32>
      %c0_11 = arith.constant 0 : index
      %c0_12 = arith.constant 0 : index
      %13 = vector.load %arg6[%c0_11, %c0_12] : memref<256x128xf32, #tpu.memory_space<vmem>>, vector<256x128xf32>
      tpu.vector_store %arg6[%c0_11, %c0_12], %12 {strides = array<i32>} : memref<256x128xf32, #tpu.memory_space<vmem>>, vector<256x128xf32>,
    } else {
    }
    %c0 = arith.constant 0 : index
    %c0_1 = arith.constant 0 : index
    %3 = vector.load %arg6[%c0, %c0_1] : memref<256x128xf32, #tpu.memory_space<vmem>>, vector<256x128xf32>
    %c0_2 = arith.constant 0 : index
    %c0_3 = arith.constant 0 : index
    %4 = vector.load %arg3[%c0_2, %c0_3] : memref<256x128xbf16, #tpu.memory_space<vmem>>, vector<256x128xbf16>
    %c0_4 = arith.constant 0 : index
    %c0_5 = arith.constant 0 : index
    %5 = vector.load %arg4[%c0_4, %c0_5] : memref<128x128xbf16, #tpu.memory_space<vmem>>, vector<128x128xbf16>
    %cst = arith.constant dense<0.000000e+00> : vector<256x128xf32>
    %6 = tpu.matmul %4, %5, %cst {dimension_numbers = #tpu.dot_dimension_numbers<[1], [0], [0], [1], [0, 0, 1, 1], [], []>} : vector<256x128xbf16>, vector<128x128xbf16>, vector<256x128xf32> -> vector<256x128xf32>
    %7 = arith.addf %3, %6 : vector<256x128xf32>
    %c0_6 = arith.constant 0 : index
    %c0_7 = arith.constant 0 : index
    %8 = vector.load %arg6[%c0_6, %c0_7] : memref<256x128xf32, #tpu.memory_space<vmem>>, vector<256x128xf32>
    tpu.vector_store %arg6[%c0_6, %c0_7], %7 {strides = array<i32>} : memref<256x128xf32, #tpu.memory_space<vmem>>, vector<256x128xf32>,
    %c0_i32_8 = arith.constant 0 : i32
    %9 = arith.cmpi eq, %arg2, %c0_i32_8 : i32
    %10 = arith.extui %9 : i1 to i32
    %c0_i32_9 = arith.constant 0 : i32
    %11 = arith.cmpi ne, %10, %c0_i32_9 : i32
    scf.if %11 {
      %c0_10 = arith.constant 0 : index
      %c0_11 = arith.constant 0 : index
      %12 = vector.load %arg6[%c0_10, %c0_11] : memref<256x128xf32, #tpu.memory_space<vmem>>, vector<256x128xf32>
      %c0_12 = arith.constant 0 : index
      %c0_13 = arith.constant 0 : index
      %13 = vector.load %arg5[%c0_12, %c0_13] : memref<256x128xf32, #tpu.memory_space<vmem>>, vector<256x128xf32>
      tpu.vector_store %arg5[%c0_12, %c0_13], %12 {strides = array<i32>} : memref<256x128xf32, #tpu.memory_space<vmem>>, vector<256x128xf32>,
    } else {
    }
    return
  }
  func.func @transform_0(%arg0: i32, %arg1: i32, %arg2: i32) -> (i32, i32) {
    %c0_i32 = arith.constant 0 : i32
    return %arg0, %arg2 : i32, i32
  }
  func.func @transform_1(%arg0: i32, %arg1: i32, %arg2: i32) -> (i32, i32) {
    %c0_i32 = arith.constant 0 : i32
    return %arg2, %arg1 : i32, i32
  }
  func.func @transform_2(%arg0: i32, %arg1: i32, %arg2: i32) -> (i32, i32) {
    %c0_i32 = arith.constant 0 : i32
    return %arg0, %arg1 : i32, i32
  }
}

module attributes {stable_mosaic.version = 11 : i64} {
  func.func @_qkv_rope_kernel(%arg0: i32, %arg1: i32, %arg2: memref<256x128xbf16, #tpu.memory_space<vmem>>, %arg3: memref<128x384xbf16, #tpu.memory_space<vmem>>, %arg4: memref<256x128xf32, #tpu.memory_space<vmem>>, %arg5: memref<256x128xf32, #tpu.memory_space<vmem>>, %arg6: memref<256x128xf32, #tpu.memory_space<vmem>>, %arg7: memref<256x128xbf16, #tpu.memory_space<vmem>>, %arg8: memref<256x128xbf16, #tpu.memory_space<vmem>>, %arg9: memref<256x128xbf16, #tpu.memory_space<vmem>>, %arg10: memref<256x384xf32, #tpu.memory_space<vmem>>) attributes {dimension_semantics = [#tpu.dimension_semantics<parallel>, #tpu.dimension_semantics<arbitrary>], iteration_bounds = array<i64: 2, 1>, scalar_prefetch = 0 : i64, scratch_operands = 1 : i64, tpu.core_type = #tpu.core_type<tc>, window_params = [{transform_indices = @transform_0, window_bounds = array<i64: 256, 128>}, {transform_indices = @transform_1, window_bounds = array<i64: 128, 384>}, {transform_indices = @transform_2, window_bounds = array<i64: 256, 128>}, {transform_indices = @transform_3, window_bounds = array<i64: 256, 128>}, {transform_indices = @transform_4, window_bounds = array<i64: 256, 128>}, {transform_indices = @transform_5, window_bounds = array<i64: 256, 128>}, {transform_indices = @transform_6, window_bounds = array<i64: 256, 128>}, {transform_indices = @transform_7, window_bounds = array<i64: 256, 128>}]} {
    %c0_i32 = arith.constant 0 : i32
    %0 = arith.cmpi eq, %arg1, %c0_i32 : i32
    %1 = arith.extui %0 : i1 to i32
    %c0_i32_0 = arith.constant 0 : i32
    %2 = arith.cmpi ne, %1, %c0_i32_0 : i32
    scf.if %2 {
      %cst_10 = arith.constant 0.000000e+00 : f32
      %12 = vector.broadcast %cst_10 : f32 to vector<256x384xf32>
      %c0_11 = arith.constant 0 : index
      %c0_12 = arith.constant 0 : index
      %13 = vector.load %arg10[%c0_11, %c0_12] : memref<256x384xf32, #tpu.memory_space<vmem>>, vector<256x384xf32>
      tpu.vector_store %arg10[%c0_11, %c0_12], %12 {strides = array<i32>} : memref<256x384xf32, #tpu.memory_space<vmem>>, vector<256x384xf32>,
    } else {
    }
    %c0 = arith.constant 0 : index
    %c0_1 = arith.constant 0 : index
    %3 = vector.load %arg10[%c0, %c0_1] : memref<256x384xf32, #tpu.memory_space<vmem>>, vector<256x384xf32>
    %c0_2 = arith.constant 0 : index
    %c0_3 = arith.constant 0 : index
    %4 = vector.load %arg2[%c0_2, %c0_3] : memref<256x128xbf16, #tpu.memory_space<vmem>>, vector<256x128xbf16>
    %c0_4 = arith.constant 0 : index
    %c0_5 = arith.constant 0 : index
    %5 = vector.load %arg3[%c0_4, %c0_5] : memref<128x384xbf16, #tpu.memory_space<vmem>>, vector<128x384xbf16>
    %cst = arith.constant dense<0.000000e+00> : vector<256x384xf32>
    %6 = tpu.matmul %4, %5, %cst {dimension_numbers = #tpu.dot_dimension_numbers<[1], [0], [0], [1], [0, 0, 1, 1], [], []>} : vector<256x128xbf16>, vector<128x384xbf16>, vector<256x384xf32> -> vector<256x384xf32>
    %7 = arith.addf %3, %6 : vector<256x384xf32>
    %c0_6 = arith.constant 0 : index
    %c0_7 = arith.constant 0 : index
    %8 = vector.load %arg10[%c0_6, %c0_7] : memref<256x384xf32, #tpu.memory_space<vmem>>, vector<256x384xf32>
    tpu.vector_store %arg10[%c0_6, %c0_7], %7 {strides = array<i32>} : memref<256x384xf32, #tpu.memory_space<vmem>>, vector<256x384xf32>,
    %c0_i32_8 = arith.constant 0 : i32
    %9 = arith.cmpi eq, %arg1, %c0_i32_8 : i32
    %10 = arith.extui %9 : i1 to i32
    %c0_i32_9 = arith.constant 0 : i32
    %11 = arith.cmpi ne, %10, %c0_i32_9 : i32
    scf.if %11 {
      %c0_10 = arith.constant 0 : index
      %c0_11 = arith.constant 0 : index
      %12 = vector.load %arg4[%c0_10, %c0_11] : memref<256x128xf32, #tpu.memory_space<vmem>>, vector<256x128xf32>
      %c0_12 = arith.constant 0 : index
      %c0_13 = arith.constant 0 : index
      %13 = vector.load %arg5[%c0_12, %c0_13] : memref<256x128xf32, #tpu.memory_space<vmem>>, vector<256x128xf32>
      %c0_14 = arith.constant 0 : index
      %c0_15 = arith.constant 0 : index
      %14 = vector.load %arg6[%c0_14, %c0_15] : memref<256x128xf32, #tpu.memory_space<vmem>>, vector<256x128xf32>
      %c0_16 = arith.constant 0 : index
      %c0_17 = arith.constant 0 : index
      %15 = vector.load %arg10[%c0_16, %c0_17] : memref<256x384xf32, #tpu.memory_space<vmem>>, vector<256x128xf32>
      %c112_i32 = arith.constant 112 : i32
      %16 = tpu.dynamic_rotate %15 by %c112_i32 dim 1 : vector<256x128xf32>, i32 -> vector<256x128xf32>
      %c16_i32 = arith.constant 16 : i32
      %17 = tpu.dynamic_rotate %15 by %c16_i32 dim 1 : vector<256x128xf32>, i32 -> vector<256x128xf32>
      %18 = arith.mulf %15, %12 : vector<256x128xf32>
      %19 = arith.mulf %16, %13 : vector<256x128xf32>
      %20 = arith.addf %18, %19 : vector<256x128xf32>
      %21 = arith.mulf %17, %14 : vector<256x128xf32>
      %22 = arith.addf %20, %21 : vector<256x128xf32>
      %23 = arith.truncf %22 : vector<256x128xf32> to vector<256x128xbf16>
      %c0_18 = arith.constant 0 : index
      %c0_19 = arith.constant 0 : index
      %24 = vector.load %arg7[%c0_18, %c0_19] : memref<256x128xbf16, #tpu.memory_space<vmem>>, vector<256x128xbf16>
      tpu.vector_store %arg7[%c0_18, %c0_19], %23 {strides = array<i32>} : memref<256x128xbf16, #tpu.memory_space<vmem>>, vector<256x128xbf16>,
      %c0_20 = arith.constant 0 : index
      %c128 = arith.constant 128 : index
      %25 = vector.load %arg10[%c0_20, %c128] : memref<256x384xf32, #tpu.memory_space<vmem>>, vector<256x128xf32>
      %c112_i32_21 = arith.constant 112 : i32
      %26 = tpu.dynamic_rotate %25 by %c112_i32_21 dim 1 : vector<256x128xf32>, i32 -> vector<256x128xf32>
      %c16_i32_22 = arith.constant 16 : i32
      %27 = tpu.dynamic_rotate %25 by %c16_i32_22 dim 1 : vector<256x128xf32>, i32 -> vector<256x128xf32>
      %28 = arith.mulf %25, %12 : vector<256x128xf32>
      %29 = arith.mulf %26, %13 : vector<256x128xf32>
      %30 = arith.addf %28, %29 : vector<256x128xf32>
      %31 = arith.mulf %27, %14 : vector<256x128xf32>
      %32 = arith.addf %30, %31 : vector<256x128xf32>
      %33 = arith.truncf %32 : vector<256x128xf32> to vector<256x128xbf16>
      %c0_23 = arith.constant 0 : index
      %c0_24 = arith.constant 0 : index
      %34 = vector.load %arg8[%c0_23, %c0_24] : memref<256x128xbf16, #tpu.memory_space<vmem>>, vector<256x128xbf16>
      tpu.vector_store %arg8[%c0_23, %c0_24], %33 {strides = array<i32>} : memref<256x128xbf16, #tpu.memory_space<vmem>>, vector<256x128xbf16>,
      %c0_25 = arith.constant 0 : index
      %c256 = arith.constant 256 : index
      %35 = vector.load %arg10[%c0_25, %c256] : memref<256x384xf32, #tpu.memory_space<vmem>>, vector<256x128xf32>
      %36 = arith.truncf %35 : vector<256x128xf32> to vector<256x128xbf16>
      %c0_26 = arith.constant 0 : index
      %c0_27 = arith.constant 0 : index
      %37 = vector.load %arg9[%c0_26, %c0_27] : memref<256x128xbf16, #tpu.memory_space<vmem>>, vector<256x128xbf16>
      tpu.vector_store %arg9[%c0_26, %c0_27], %36 {strides = array<i32>} : memref<256x128xbf16, #tpu.memory_space<vmem>>, vector<256x128xbf16>,
    } else {
    }
    return
  }
  func.func @transform_0(%arg0: i32, %arg1: i32) -> (i32, i32) {
    %c0_i32 = arith.constant 0 : i32
    return %arg0, %arg1 : i32, i32
  }
  func.func @transform_1(%arg0: i32, %arg1: i32) -> (i32, i32) {
    %c0_i32 = arith.constant 0 : i32
    %c0_i32_0 = arith.constant 0 : i32
    return %arg1, %c0_i32 : i32, i32
  }
  func.func @transform_2(%arg0: i32, %arg1: i32) -> (i32, i32) {
    %c1_i32 = arith.constant 1 : i32
    %c0_i32 = arith.constant 0 : i32
    %0 = arith.cmpi eq, %c1_i32, %c0_i32 : i32
    %c1_i32_0 = arith.constant 1 : i32
    %1 = arith.select %0, %c1_i32_0, %c1_i32 : i32
    %2 = arith.remsi %arg0, %1 : i32
    %c0_i32_1 = arith.constant 0 : i32
    %3 = arith.cmpi ne, %2, %c0_i32_1 : i32
    %c0_i32_2 = arith.constant 0 : i32
    %4 = arith.cmpi slt, %2, %c0_i32_2 : i32
    %c0_i32_3 = arith.constant 0 : i32
    %5 = arith.cmpi slt, %1, %c0_i32_3 : i32
    %6 = arith.xori %4, %5 : i1
    %7 = arith.andi %6, %3 : i1
    %8 = arith.addi %2, %1 : i32
    %9 = arith.select %7, %8, %2 : i32
    %c0_i32_4 = arith.constant 0 : i32
    %c0_i32_5 = arith.constant 0 : i32
    return %9, %c0_i32_4 : i32, i32
  }
  func.func @transform_3(%arg0: i32, %arg1: i32) -> (i32, i32) {
    %c1_i32 = arith.constant 1 : i32
    %c0_i32 = arith.constant 0 : i32
    %0 = arith.cmpi eq, %c1_i32, %c0_i32 : i32
    %c1_i32_0 = arith.constant 1 : i32
    %1 = arith.select %0, %c1_i32_0, %c1_i32 : i32
    %2 = arith.remsi %arg0, %1 : i32
    %c0_i32_1 = arith.constant 0 : i32
    %3 = arith.cmpi ne, %2, %c0_i32_1 : i32
    %c0_i32_2 = arith.constant 0 : i32
    %4 = arith.cmpi slt, %2, %c0_i32_2 : i32
    %c0_i32_3 = arith.constant 0 : i32
    %5 = arith.cmpi slt, %1, %c0_i32_3 : i32
    %6 = arith.xori %4, %5 : i1
    %7 = arith.andi %6, %3 : i1
    %8 = arith.addi %2, %1 : i32
    %9 = arith.select %7, %8, %2 : i32
    %c0_i32_4 = arith.constant 0 : i32
    %c0_i32_5 = arith.constant 0 : i32
    return %9, %c0_i32_4 : i32, i32
  }
  func.func @transform_4(%arg0: i32, %arg1: i32) -> (i32, i32) {
    %c1_i32 = arith.constant 1 : i32
    %c0_i32 = arith.constant 0 : i32
    %0 = arith.cmpi eq, %c1_i32, %c0_i32 : i32
    %c1_i32_0 = arith.constant 1 : i32
    %1 = arith.select %0, %c1_i32_0, %c1_i32 : i32
    %2 = arith.remsi %arg0, %1 : i32
    %c0_i32_1 = arith.constant 0 : i32
    %3 = arith.cmpi ne, %2, %c0_i32_1 : i32
    %c0_i32_2 = arith.constant 0 : i32
    %4 = arith.cmpi slt, %2, %c0_i32_2 : i32
    %c0_i32_3 = arith.constant 0 : i32
    %5 = arith.cmpi slt, %1, %c0_i32_3 : i32
    %6 = arith.xori %4, %5 : i1
    %7 = arith.andi %6, %3 : i1
    %8 = arith.addi %2, %1 : i32
    %9 = arith.select %7, %8, %2 : i32
    %c0_i32_4 = arith.constant 0 : i32
    %c0_i32_5 = arith.constant 0 : i32
    return %9, %c0_i32_4 : i32, i32
  }
  func.func @transform_5(%arg0: i32, %arg1: i32) -> (i32, i32) {
    %c0_i32 = arith.constant 0 : i32
    %c0_i32_0 = arith.constant 0 : i32
    return %arg0, %c0_i32 : i32, i32
  }
  func.func @transform_6(%arg0: i32, %arg1: i32) -> (i32, i32) {
    %c0_i32 = arith.constant 0 : i32
    %c0_i32_0 = arith.constant 0 : i32
    return %arg0, %c0_i32 : i32, i32
  }
  func.func @transform_7(%arg0: i32, %arg1: i32) -> (i32, i32) {
    %c0_i32 = arith.constant 0 : i32
    %c0_i32_0 = arith.constant 0 : i32
    return %arg0, %c0_i32 : i32, i32
  }
}

</mosaic_0001>

<bundles_post_ra>
// kernel: sliding_gqa_forward.5
= control target key start
LH: loop header
LB: loop body
LE: loop exit
PB: predicated region body
PF: predicated region fallthrough
CT: control target
= control target key end

     0   :  { %7 = vsyncpa [#allocation4], 0  ;;  %s1375_s0 = inlined_call_operand.vmem [shape: bf16[512,128], index: 0, kind: input, shape index: {}]   ;;  %s1376_s1 = inlined_call_operand.vmem [shape: bf16[128,128], index: 1, kind: input, shape index: {}]   ;;  %s1377_s2 = inlined_call_operand.hbm [shape: f32[512,128], index: 2, kind: output, shape index: {}]  }
   0x1   :  { %9 = vsyncpa [#allocation4 + $0x1], 0  ;;  %s1180_s9 = smov 0   ;;  %s1182_s10 = smov 0  }
   0x2   :  { %s1184_s11 = smov 0   ;;  %s1186_s12 = smov 0  }
   0x3   :  { %s1188_s13 = smov 0   ;;  %s1190_s14 = smov 0  }
   0x4 LB: > { %s874_s15 = sadd.s32 4294967295, %s1160_s14   ;;  %s875_s16 = sadd.s32 4294967294, %s1160_s14   ;;  %s1160_s14 = sphi %s1190_s14, %s15_s14   ;;  %s1156_s13 = sphi %s1188_s13, %s1384_s13   ;;  %s1152_s12 = sphi %s1186_s12, %s1383_s12   ;;  %s1148_s11 = sphi %s1184_s11, %s1382_s11   ;;  %s1144_s10 = sphi %s1182_s10, %s1381_s10   ;;  %s1140_s9 = sphi %s1180_s9, %s1380_s9  }
   0x5   : > { %s34_s17 = sadd.s32 1, %s1156_s13  ;;  %s99_s18 = sadd.s32 1, %s1148_s11 }
   0x6   : > { %p36_p0 = scmp.ge.s32.totalorder %s34_s17, 2  ;;  %p109_p1 = scmp.ne.s32.totalorder %s1148_s11, %s1144_s10 }
   0x7   : > { %p110_p2 = scmp.eq.s32.totalorder %s874_s15, 1  ;;  %p115_p3 = scmp.ne.s32.totalorder %s1144_s10, %s1140_s9 }
   0x8   : > { %s1386_s17 = smov (%p36_p0, %s34_s17), 0  ;;  %p116_p5 = scmp.eq.s32.totalorder %s875_s16, 1 }
   0x9   : > { %p1220_p4 = por %p110_p2, %p109_p1  ;;  %s94_s20 = ssub.s32 %s1156_s13, %s1386_s17 }
   0xa   : > { %p879_p6 = scmp.ge.s32.totalorder %s1160_s14, 1  ;;  %p97_p7 = scmp.eq.s32.totalorder %s94_s20, 0 }
   0xb   : > { %p1227_p8 = por %p116_p5, %p115_p3  ;;  %p158_p9 = scmp.lt.s32.totalorder %s1160_s14, 3 }
   0xc   : > { %s1233_s22 = scalar_select %p97_p7, %s1148_s11, %s99_s18  }
   0xd   : > { %p159_p10 = pnand %p879_p6, %p158_p9 }
   0xe   : > { %v1058_v0 = vld [vmem:[%s1376_s1] sm:$0xff] (!%p159_p10)   ;;  %s881_s25 = sshll.u32 (!%p159_p10), %s1152_s12, 5  ;;  %v1059_v1 = vld [vmem:[%s1376_s1 + $0x8] sm:$0xff] (!%p159_p10)   ;;  %v1060_v2 = vld [vmem:[%s1376_s1 + $0x10] sm:$0xff] (!%p159_p10)   ;;  %s188_s26 = sand.u32 (!%p159_p10), 1, %s1144_s10  }
   0xf   : > { %162 = sbr.rel (%p159_p10) target bundleno = 301 (0x12d), region = 28  ;;  %p192_p11 = scmp.lt.s32.totalorder (!%p159_p10), %s881_s25, 63  ;;  %937 = vmatprep.subr.bf16.mxu0 (!%p159_p10), %v1058_v0  ;;  %985 = vmatprep.subr.bf16.mxu1 (!%p159_p10), %v1058_v0  ;;  %v1061_v3 = vld [vmem:[%s1376_s1 + $0x18] sm:$0xff] (!%p159_p10)   ;;  %v1062_v6 = vld [vmem:[%s1376_s1 + $0x20] sm:$0xff] (!%p159_p10)   ;;  %v1063_v7 = vld [vmem:[%s1376_s1 + $0x28] sm:$0xff] (!%p159_p10)  }
  0x10   : > { %938 = vmatpush3.bf16.msra.mxu0 (!%p159_p10), %v1058_v0  ;;  %993 = vmatpush3.bf16.msra.mxu1 (!%p159_p10), %v1058_v0  ;;  %v1064_v8 = vld [vmem:[%s1376_s1 + $0x30] sm:$0xff] (!%p159_p10)   ;;  %v1065_v9 = vld [vmem:[%s1376_s1 + $0x38] sm:$0xff] (!%p159_p10)   ;;  %s880_s27 = sshll.u32 (!%p159_p10), %s188_s26, 8  ;;  %s912_s29 = sshll.u32 (!%p159_p10), %s1152_s12, 12 }
  0x11   : > { %939 = vmatprep.subr.bf16.mxu0 (!%p159_p10), %v1059_v1  ;;  %986 = vmatprep.subr.bf16.mxu1 (!%p159_p10), %v1059_v1  ;;  %s1284_s28 = scalar_lea.vmem (!%p159_p10), [#allocation3], %s880_s27  ;;  %s1329_s12 = scalar_lea.sflag (!%p159_p10), [#allocation4], %s188_s26 }
  0x12   : > { %s1162_s7 = smov (!%p159_p10), [#allocation3]  }
  0x13   : > { %s1086_s8 = sshll.u32 (!%p159_p10), %s1162_s7, 4  ;;  %s1087_s8 = int_to_ptr.vmem [resolvable:$false] %s1086_s8 }
  0x14   : > { %940 = vmatpush3.bf16.msra.mxu0 (!%p159_p10), %v1059_v1  ;;  %994 = vmatpush3.bf16.msra.mxu1 (!%p159_p10), %v1059_v1  ;;  %s1088_s15 = scalar_lea.vmem (!%p159_p10), %s1087_s8, 8192 }
  0x15   : > { %941 = vmatprep.subr.bf16.mxu0 (!%p159_p10), %v1060_v2  ;;  %987 = vmatprep.subr.bf16.mxu1 (!%p159_p10), %v1060_v2 }
  0x16   : > { %s1388_s25 = smov (!%p192_p11, %s881_s25), 63 }
  0x17   : > { %s882_s30 = sshll.u32 %s1388_s25, 2 }
  0x18   : > { %s1248_s5 = scalar_lea.vmem %s1375_s0, %s882_s30  ;;  %942 = vmatpush3.bf16.msra.mxu0 %v1060_v2  ;;  %995 = vmatpush3.bf16.msra.mxu1 %v1060_v2  ;;  %s778_s30 = sshll.u32 %s1284_s28, 4  ;;  %s1319_s30 = int_to_ptr.vmem [resolvable:$true] %s778_s30 }
  0x19   : > { %v1066_v4 = vld [vmem:[%s1248_s5] sm:$0xff]   ;;  %943 = vmatprep.subr.bf16.mxu0 %v1061_v3  ;;  %988 = vmatprep.subr.bf16.mxu1 %v1061_v3  ;;  %v1068_v10 = vld [vmem:[%s1248_s5 + $0x8] sm:$0xff]   ;;  %v1070_v12 = vld [vmem:[%s1248_s5 + $0x10] sm:$0xff]   ;;  %s1082_s6 = scalar_lea.vmem %s1319_s30, 4096  ;;  %p1089_p1 = scmp.lt.s32.totalorder %s1319_s30, %s1087_s8 }
  0x1a   : > { %v1067_v5 = vld [vmem:[%s1248_s5 + $0x40] sm:$0xff]   ;;  %953 = vmatprep.mubr.bf16.mxu0 %v1066_v4  ;;  %v1069_v11 = vld [vmem:[%s1248_s5 + $0x48] sm:$0xff]   ;;  %v1071_v13 = vld [vmem:[%s1248_s5 + $0x50] sm:$0xff]   ;;  %p1083_p12 = scmp.ne.s32.totalorder %s1319_s30, %s1082_s6  ;;  %p1090_p2 = scmp.lt.s32.totalorder %s1088_s15, %s1082_s6 }
  0x1b   : > { %969 = vmatprep.mubr.bf16.mxu1 %v1067_v5  ;;  %v1072_v14 = vld [vmem:[%s1248_s5 + $0x18] sm:$0xff]   ;;  %v1074_v16 = vld [vmem:[%s1248_s5 + $0x20] sm:$0xff]   ;;  %v1076_v18 = vld [vmem:[%s1248_s5 + $0x28] sm:$0xff]  }
  0x1c   : > { %944 = vmatpush3.bf16.msra.mxu0 %v1061_v3  ;;  %996 = vmatpush3.bf16.msra.mxu1 %v1061_v3  ;;  %v1073_v15 = vld [vmem:[%s1248_s5 + $0x58] sm:$0xff]   ;;  %v1075_v17 = vld [vmem:[%s1248_s5 + $0x60] sm:$0xff]   ;;  %v1077_v19 = vld [vmem:[%s1248_s5 + $0x68] sm:$0xff]   ;;  %p1084_p13 = pnand %p1083_p12, %p1220_p4  ;;  %p1091_p3 = por %p1090_p2, %p1089_p1 }
  0x1d   : > { %945 = vmatprep.subr.bf16.mxu0 %v1062_v6  ;;  %989 = vmatprep.subr.bf16.mxu1 %v1062_v6  ;;  %v1078_v20 = vld [vmem:[%s1248_s5 + $0x30] sm:$0xff]   ;;  %v1080_v22 = vld [vmem:[%s1248_s5 + $0x38] sm:$0xff]  }
  0x1e   : > { %v1079_v21 = vld [vmem:[%s1248_s5 + $0x70] sm:$0xff]   ;;  %v1081_v23 = vld [vmem:[%s1248_s5 + $0x78] sm:$0xff]   ;;  %s1317_s5 = scalar_lea.hbm %s1377_s2, %s912_s29  ;;  %p1085_p0 = pneg %p1084_p13 }
  0x20   : > { %946 = vmatpush3.bf16.msra.mxu0 %v1062_v6  ;;  %997 = vmatpush3.bf16.msra.mxu1 %v1062_v6  ;;  %p1092_p5 = pnand %p1091_p3, %p1085_p0 }
  0x21   : > { %947 = vmatprep.subr.bf16.mxu0 %v1063_v7  ;;  %990 = vmatprep.subr.bf16.mxu1 %v1063_v7 }
  0x24   : > { %948 = vmatpush3.bf16.msra.mxu0 %v1063_v7  ;;  %998 = vmatpush3.bf16.msra.mxu1 %v1063_v7 }
  0x25   : > { %949 = vmatprep.subr.bf16.mxu0 %v1064_v8  ;;  %991 = vmatprep.subr.bf16.mxu1 %v1064_v8 }
  0x28   : > { %950 = vmatpush3.bf16.msra.mxu0 %v1064_v8  ;;  %999 = vmatpush3.bf16.msra.mxu1 %v1064_v8 }
  0x29   : > { %951 = vmatprep.subr.bf16.mxu0 %v1065_v9  ;;  %992 = vmatprep.subr.bf16.mxu1 %v1065_v9 }
  0x2c   : > { %952 = vmatpush3.bf16.msra.mxu0 %v1065_v9  ;;  %1000 = vmatpush3.bf16.msra.mxu1 %v1065_v9 }
  0x2f   : > { %954 = vmatmul.mubr.bf16.vlgmr.msra.gmra.mrb[0].mxu0 %v1068_v10  ;;  %970 = vmatmul.mubr.bf16.vlgmr.msra.gmra.mrb[0].mxu1 %v1069_v11 }
  0x30   : > { %957 = vmatprep.mubr.bf16.mxu0 %v1070_v12  ;;  %973 = vmatprep.mubr.bf16.mxu1 %v1071_v13 }
  0x37   : > { %958 = vmatmul.mubr.bf16.gmra.mrb[4].mxu0 %v1072_v14  ;;  %974 = vmatmul.mubr.bf16.gmra.mrb[4].mxu1 %v1073_v15 }
  0x38   : > { %961 = vmatprep.mubr.bf16.mxu0 %v1074_v16  ;;  %977 = vmatprep.mubr.bf16.mxu1 %v1075_v17 }
  0x3f   : > { %962 = vmatmul.mubr.bf16.gmra.mrb[8].mxu0 %v1076_v18  ;;  %978 = vmatmul.mubr.bf16.gmra.mrb[8].mxu1 %v1077_v19 }
  0x40   : > { %965 = vmatprep.mubr.bf16.mxu0 %v1078_v20  ;;  %981 = vmatprep.mubr.bf16.mxu1 %v1079_v21 }
  0x47   : > { %966 = vmatmul.mubr.bf16.gmra.mrb[12].mxu0 %v1080_v22  ;;  %982 = vmatmul.mubr.bf16.gmra.mrb[12].mxu1 %v1081_v23 }
 0x102   : > { %v955_v24 = vpop.f32.mrb[0].mxu0  ;;  %v971_v25 = vpop.f32.mrb[0].mxu1 }
 0x103   : > { %733 = vst [vmem:[%s1284_s28 + $0x10] sm:$0xff] %v955_v24  ;;  %749 = vst [vmem:[%s1284_s28 + $0x90] sm:$0xff] %v971_v25  ;;  %v505_v26 = vpop.f32.mrb[1].mxu0  ;;  %v569_v27 = vpop.f32.mrb[1].mxu1 }
 0x104   : > { %731 = vst [vmem:[%s1284_s28] sm:$0xff] %v505_v26  ;;  %747 = vst [vmem:[%s1284_s28 + $0x80] sm:$0xff] %v569_v27  ;;  %v956_v28 = vpop.f32.mrb[2].mxu0  ;;  %v972_v29 = vpop.f32.mrb[2].mxu1 }
 0x105   : > { %734 = vst [vmem:[%s1284_s28 + $0x18] sm:$0xff] %v956_v28  ;;  %750 = vst [vmem:[%s1284_s28 + $0x98] sm:$0xff] %v972_v29  ;;  %v508_v30 = vpop.f32.mrb[3].mxu0  ;;  %v572_v31 = vpop.f32.mrb[3].mxu1 }
 0x106   : > { %732 = vst [vmem:[%s1284_s28 + $0x8] sm:$0xff] %v508_v30  ;;  %748 = vst [vmem:[%s1284_s28 + $0x88] sm:$0xff] %v572_v31 }
 0x10a   : > { %v959_v32 = vpop.f32.mrb[4].mxu0  ;;  %v975_v33 = vpop.f32.mrb[4].mxu1 }
 0x10b   : > { %737 = vst [vmem:[%s1284_s28 + $0x30] sm:$0xff] %v959_v32  ;;  %753 = vst [vmem:[%s1284_s28 + $0xb0] sm:$0xff] %v975_v33  ;;  %v521_v34 = vpop.f32.mrb[5].mxu0  ;;  %v585_v35 = vpop.f32.mrb[5].mxu1 }
 0x10c   : > { %735 = vst [vmem:[%s1284_s28 + $0x20] sm:$0xff] %v521_v34  ;;  %751 = vst [vmem:[%s1284_s28 + $0xa0] sm:$0xff] %v585_v35  ;;  %v960_v36 = vpop.f32.mrb[6].mxu0  ;;  %v976_v37 = vpop.f32.mrb[6].mxu1 }
 0x10d   : > { %738 = vst [vmem:[%s1284_s28 + $0x38] sm:$0xff] %v960_v36  ;;  %754 = vst [vmem:[%s1284_s28 + $0xb8] sm:$0xff] %v976_v37  ;;  %v524_v38 = vpop.f32.mrb[7].mxu0  ;;  %v588_v39 = vpop.f32.mrb[7].mxu1 }
 0x10e   : > { %736 = vst [vmem:[%s1284_s28 + $0x28] sm:$0xff] %v524_v38  ;;  %752 = vst [vmem:[%s1284_s28 + $0xa8] sm:$0xff] %v588_v39 }
 0x112   : > { %v963_v40 = vpop.f32.mrb[8].mxu0  ;;  %v979_v41 = vpop.f32.mrb[8].mxu1 }
 0x113   : > { %741 = vst [vmem:[%s1284_s28 + $0x50] sm:$0xff] %v963_v40  ;;  %757 = vst [vmem:[%s1284_s28 + $0xd0] sm:$0xff] %v979_v41  ;;  %v537_v42 = vpop.f32.mrb[9].mxu0  ;;  %v601_v43 = vpop.f32.mrb[9].mxu1 }
 0x114   : > { %739 = vst [vmem:[%s1284_s28 + $0x40] sm:$0xff] %v537_v42  ;;  %755 = vst [vmem:[%s1284_s28 + $0xc0] sm:$0xff] %v601_v43  ;;  %v964_v44 = vpop.f32.mrb[10].mxu0  ;;  %v980_v45 = vpop.f32.mrb[10].mxu1 }
 0x115   : > { %742 = vst [vmem:[%s1284_s28 + $0x58] sm:$0xff] %v964_v44  ;;  %758 = vst [vmem:[%s1284_s28 + $0xd8] sm:$0xff] %v980_v45  ;;  %v540_v46 = vpop.f32.mrb[11].mxu0  ;;  %v604_v47 = vpop.f32.mrb[11].mxu1 }
 0x116   : > { %740 = vst [vmem:[%s1284_s28 + $0x48] sm:$0xff] %v540_v46  ;;  %756 = vst [vmem:[%s1284_s28 + $0xc8] sm:$0xff] %v604_v47 }
 0x11a   : > { %v967_v48 = vpop.f32.mrb[12].mxu0  ;;  %v983_v49 = vpop.f32.mrb[12].mxu1 }
 0x11b   : > { %745 = vst [vmem:[%s1284_s28 + $0x70] sm:$0xff] %v967_v48  ;;  %761 = vst [vmem:[%s1284_s28 + $0xf0] sm:$0xff] %v983_v49  ;;  %v553_v50 = vpop.f32.mrb[13].mxu0  ;;  %v617_v51 = vpop.f32.mrb[13].mxu1 }
 0x11c   : > { %743 = vst [vmem:[%s1284_s28 + $0x60] sm:$0xff] %v553_v50  ;;  %759 = vst [vmem:[%s1284_s28 + $0xe0] sm:$0xff] %v617_v51  ;;  %v968_v52 = vpop.f32.mrb[14].mxu0  ;;  %v984_v53 = vpop.f32.mrb[14].mxu1 }
 0x11d   : > { %746 = vst [vmem:[%s1284_s28 + $0x78] sm:$0xff] %v968_v52  ;;  %762 = vst [vmem:[%s1284_s28 + $0xf8] sm:$0xff] %v984_v53  ;;  %v556_v54 = vpop.f32.mrb[15].mxu0  ;;  %v620_v55 = vpop.f32.mrb[15].mxu1 }
 0x11e   : > { %744 = vst [vmem:[%s1284_s28 + $0x68] sm:$0xff] %v556_v54  ;;  %760 = vst [vmem:[%s1284_s28 + $0xe8] sm:$0xff] %v620_v55 }
 0x11f   : > { %1095 = shalt.err (!%p1092_p5)
}
 0x120   : > { %s1096_s16 = scalar_lea.hbm %s1317_s5, 4096  ;;  %s1100_s23 = scalar_lea.hbm %s1377_s2, 8192 }
 0x121   : > { %p1097_p6 = scmp.ne.s32.totalorder %s1317_s5, %s1096_s16  ;;  %p1101_p10 = scmp.lt.u32.totalorder %s1317_s5, %s1377_s2 }
 0x122   : > { %p1102_p11 = scmp.lt.u32.totalorder %s1100_s23, %s1096_s16  ;;  %p1104_p13 = scmp.lt.u32.totalorder %s1096_s16, %s1317_s5 }
 0x123   : > { %p1098_p7 = pnand %p1097_p6, %p1220_p4 }
 0x124   : > { %p1103_p12 = por %p1102_p11, %p1101_p10 }
 0x125   : > { %p1099_p9 = pneg %p1098_p7 }
 0x126   : > { %p1105_p0 = por %p1104_p13, %p1103_p12 }
 0x128   : > { %p1106_p1 = pnand %p1105_p0, %p1099_p9 }
 0x12a   : > { %1109 = shalt.err (!%p1106_p1)
}
 0x12b   : > { %s1163_s26 = smov 128   ;;  %s1164_s27 = smov 8  }
 0x12c   : > { %1001 = dma.vmem_to_hbm [thread:$0]  (%p1220_p4), %s1319_s30, 4096, %s1317_s5, %s1329_s12, %s1163_s26, %s1163_s26, %s1164_s27  }
 0x12d PF: > { %p1007_p2 = scmp.ge.s32.totalorder %s1160_s14, 2  ;;  %s793_s28 = sand.u32 1, %s1140_s9  }
 0x12e   : > { %s794_s29 = scalar_lea.sflag [#allocation4], %s793_s28 }
 0x12f   : > { %p1004_p3 = pnand %p1007_p2, %p1227_p8 }
 0x131   : > { %1135 = dma.done.wait (!%p1004_p3), %s794_s29, 4096  }
 0x132   : > { %1137 = vsyncadd (!%p1004_p3), %s794_s29, 4294963200  ;;  %s15_s14 = sadd.s32 1, %s1160_s14   ;;  %s1380_s9 = smov %s1144_s10 }
 0x133   : > { %p12_p5 = scmp.ge.s32.totalorder %s15_s14, 4   ;;  %s1381_s10 = smov %s1148_s11 }
 0x134   : > { %s1382_s11 = smov %s1233_s22  ;;  %s1383_s12 = smov %s1156_s13 }
 0x135   : > { %s1384_s13 = smov %s1386_s17  ;;  %14 = sbr.rel (!%p12_p5) target bundleno = 4 (0x4), region = 74 }
 0x13c   :  { %799 = vsyncpa [#allocation4], 1 }
 0x13d   :  { %801 = vsyncpa [#allocation4 + $0x1], 1 }

// kernel: sliding_gqa_forward.4
= control target key start
LH: loop header
LB: loop body
LE: loop exit
PB: predicated region body
PF: predicated region fallthrough
CT: control target
= control target key end

     0   :  { %s2246_s12 = smov 0   ;;  %s2248_s13 = smov 0   ;;  %s2888_s0 = inlined_call_operand.vmem [shape: bf16[2,256,128], index: 0, kind: input, shape index: {}]   ;;  %s2889_s1 = inlined_call_operand.vmem [shape: bf16[2,256,128], index: 1, kind: input, shape index: {}]   ;;  %s2890_s2 = inlined_call_operand.vmem [shape: bf16[2,256,128], index: 2, kind: input, shape index: {}]   ;;  %s2891_s3 = inlined_call_operand.vmem [shape: bf16[2,256,128], index: 3, kind: output, shape index: {}]  }
   0x1   :  { %s2250_s14 = smov 0   ;;  %s2252_s15 = smov 0  }
   0x2   :  { %s2254_s16 = smov 0   ;;  %s2256_s17 = smov 0  }
   0x3   :  { %s2258_s18 = smov 0  }
   0x4 LB: > { %s25_s19 = sadd.s32 1, %s2208_s15  ;;  %s28_s20 = sadd.s32 1, %s2212_s16  ;;  %s2220_s18 = sphi %s2258_s18, %s13_s18   ;;  %s2216_s17 = sphi %s2256_s17, %s2905_s17   ;;  %s2212_s16 = sphi %s2254_s16, %s2904_s16   ;;  %s2208_s15 = sphi %s2252_s15, %s2903_s15   ;;  %s2204_s14 = sphi %s2250_s14, %s2902_s14   ;;  %s2200_s13 = sphi %s2248_s13, %s2901_s13   ;;  %s2196_s12 = sphi %s2246_s12, %s2900_s12  }
   0x5   : > { %p26_p0 = scmp.ge.s32.totalorder %s25_s19, 3  ;;  %p1792_p1 = scmp.ge.s32.totalorder %s2220_s18, 1 }
   0x6   : > { %p239_p2 = scmp.lt.s32.totalorder %s2220_s18, 13  ;;  %s32_s21 = sadd.s32 1, %s2216_s17 }
   0x7   : > { %s2907_s19 = smov (%p26_p0, %s25_s19), 0  ;;  %s2909_s20 = smov (!%p26_p0, %s28_s20), %s2212_s16 }
   0x8   : > { %p240_p3 = pnand %p1792_p1, %p239_p2  ;;  %p30_p4 = scmp.ge.s32.totalorder %s2909_s20, 2 }
   0x9   : > { %s1793_s22 = sshll.u32 (!%p240_p3), %s2200_s13, 4  ;;  %p300_p6 = scmp.lt.s32.totalorder (!%p240_p3), %s2204_s14, 1 }
   0xa   : > { %s2911_s20 = smov (%p30_p4, %s2909_s20), 0  ;;  %s2913_s21 = smov (!%p30_p4, %s32_s21), %s2216_s17 }
   0xb   : > { %p34_p5 = scmp.ge.s32.totalorder %s2913_s21, 2  ;;  %243 = sbr.rel (%p240_p3) target bundleno = 1016 (0x3f8), region = 32 }
   0xc   : > { %p302_p7 = scmp.lt.s32.totalorder (!%p240_p3), %s1793_s22, 31  ;;  %s1796_s23 = sshll.u32 (!%p240_p3), %s2200_s13, 1 }
   0xd   : > { %s2915_s21 = smov (%p34_p5, %s2913_s21), 0  ;;  %s310_s25 = sadd.s32 (!%p240_p3), 4294967295, %s1796_s23 }
   0xe   : > { %s2295_s27 = sadd.s32 (!%p240_p3), %s2196_s12, %s310_s25  ;;  %p1808_p10 = scmp.ne.s32.totalorder (!%p240_p3), %s2196_s12, 0 }
   0xf   : > { %p312_p8 = scmp.gt.s32.totalorder (!%p240_p3), %s2295_s27, 0 }
  0x12   : > { %s2917_s14 = smov (!%p300_p6, %s2204_s14), 1  ;;  %s2919_s22 = smov (!%p302_p7, %s1793_s22), 31 }
  0x13   : > { %s1794_s24 = sshll.u32 %s2917_s14, 5  ;;  %vm367_vm0 = vcmask (!%p1808_p10), 7168   ;;  %v2222_v0 = vmov (!%p1808_p10), -1e+28   ;;  %v2223_v1 = vmov (!%p1808_p10), 0.0  }
  0x14   : > { %s305_s26 = sadd.s32 %s1794_s24, %s2919_s22  ;;  %368 = vst.msk [vmem:[#allocation2] sm:$0xff] (!%p1808_p10), %vm367_vm0, %v2222_v0  ;;  %369 = vst.msk [vmem:[#allocation2 + $0x8] sm:$0xff] (!%p1808_p10), %vm367_vm0, %v2222_v0 }
  0x15   : > { %s1795_s28 = sshll.u32 %s305_s26, 2  ;;  %370 = vst.msk [vmem:[#allocation2 + $0x10] sm:$0xff] (!%p1808_p10), %vm367_vm0, %v2222_v0  ;;  %371 = vst.msk [vmem:[#allocation2 + $0x18] sm:$0xff] (!%p1808_p10), %vm367_vm0, %v2222_v0 }
  0x16   : > { %s2301_s4 = scalar_lea.vmem %s2888_s0, %s1795_s28  ;;  %s2306_s7 = scalar_lea.vmem %s2891_s3, %s1795_s28  ;;  %372 = vst.msk [vmem:[#allocation2 + $0x20] sm:$0xff] (!%p1808_p10), %vm367_vm0, %v2222_v0  ;;  %373 = vst.msk [vmem:[#allocation2 + $0x28] sm:$0xff] (!%p1808_p10), %vm367_vm0, %v2222_v0 }
  0x17   : > { %s313_s8 = scalar_select %p312_p8, %s2295_s27, 0 }
  0x18   : > { %374 = vst.msk [vmem:[#allocation2 + $0x30] sm:$0xff] (!%p1808_p10), %vm367_vm0, %v2222_v0  ;;  %375 = vst.msk [vmem:[#allocation2 + $0x38] sm:$0xff] (!%p1808_p10), %vm367_vm0, %v2222_v0 }
  0x19   : > { %s1797_s9 = sshll.u32 %s313_s8, 3  ;;  %366 = sbr.rel (%p1808_p10) target bundleno = 45 (0x2d), region = 36  ;;  %376 = vst.msk [vmem:[#allocation2 + $0x40] sm:$0xff] (!%p1808_p10), %vm367_vm0, %v2222_v0  ;;  %377 = vst.msk [vmem:[#allocation2 + $0x48] sm:$0xff] (!%p1808_p10), %vm367_vm0, %v2222_v0 }
  0x1a   : > { %p317_p9 = scmp.lt.s32.totalorder %s1797_s9, 31  ;;  %378 = vst.msk [vmem:[#allocation2 + $0x50] sm:$0xff] (!%p1808_p10), %vm367_vm0, %v2222_v0  ;;  %379 = vst.msk [vmem:[#allocation2 + $0x58] sm:$0xff] (!%p1808_p10), %vm367_vm0, %v2222_v0 }
  0x1b   : > { %380 = vst.msk [vmem:[#allocation2 + $0x60] sm:$0xff] (!%p1808_p10), %vm367_vm0, %v2222_v0  ;;  %381 = vst.msk [vmem:[#allocation2 + $0x68] sm:$0xff] (!%p1808_p10), %vm367_vm0, %v2222_v0 }
  0x1c   : > { %s2921_s9 = smov (!%p317_p9, %s1797_s9), 31  ;;  %382 = vst.msk [vmem:[#allocation2 + $0x70] sm:$0xff] (!%p1808_p10), %vm367_vm0, %v2222_v0  ;;  %383 = vst.msk [vmem:[#allocation2 + $0x78] sm:$0xff] (!%p1808_p10), %vm367_vm0, %v2222_v0 }
  0x1d   : > { %s320_s10 = sadd.s32 %s1794_s24, %s2921_s9  ;;  %384 = vst.msk [vmem:[#allocation3] sm:$0xff] (!%p1808_p10), %vm367_vm0, %v2223_v1  ;;  %385 = vst.msk [vmem:[#allocation3 + $0x8] sm:$0xff] (!%p1808_p10), %vm367_vm0, %v2223_v1 }
  0x1e   : > { %s1799_s11 = sshll.u32 %s320_s10, 2  ;;  %386 = vst.msk [vmem:[#allocation3 + $0x10] sm:$0xff] (!%p1808_p10), %vm367_vm0, %v2223_v1  ;;  %387 = vst.msk [vmem:[#allocation3 + $0x18] sm:$0xff] (!%p1808_p10), %vm367_vm0, %v2223_v1 }
  0x1f   : > { %s2312_s23 = scalar_lea.vmem %s2889_s1, %s1799_s11  ;;  %s2317_s29 = scalar_lea.vmem %s2890_s2, %s1799_s11  ;;  %388 = vst.msk [vmem:[#allocation3 + $0x20] sm:$0xff] (!%p1808_p10), %vm367_vm0, %v2223_v1  ;;  %389 = vst.msk [vmem:[#allocation3 + $0x28] sm:$0xff] (!%p1808_p10), %vm367_vm0, %v2223_v1 }
  0x20   : > { %390 = vst.msk [vmem:[#allocation3 + $0x30] sm:$0xff] %vm367_vm0, %v2223_v1  ;;  %391 = vst.msk [vmem:[#allocation3 + $0x38] sm:$0xff] %vm367_vm0, %v2223_v1 }
  0x21   : > { %392 = vst.msk [vmem:[#allocation3 + $0x40] sm:$0xff] %vm367_vm0, %v2223_v1  ;;  %393 = vst.msk [vmem:[#allocation3 + $0x48] sm:$0xff] %vm367_vm0, %v2223_v1 }
  0x22   : > { %394 = vst.msk [vmem:[#allocation3 + $0x50] sm:$0xff] %vm367_vm0, %v2223_v1  ;;  %395 = vst.msk [vmem:[#allocation3 + $0x58] sm:$0xff] %vm367_vm0, %v2223_v1 }
  0x23   : > { %396 = vst.msk [vmem:[#allocation3 + $0x60] sm:$0xff] %vm367_vm0, %v2223_v1  ;;  %397 = vst.msk [vmem:[#allocation3 + $0x68] sm:$0xff] %vm367_vm0, %v2223_v1 }
  0x24   : > { %398 = vst.msk [vmem:[#allocation3 + $0x70] sm:$0xff] %vm367_vm0, %v2223_v1  ;;  %399 = vst.msk [vmem:[#allocation3 + $0x78] sm:$0xff] %vm367_vm0, %v2223_v1 }
  0x25   : > { %400 = vst [vmem:[#allocation4] sm:$0xff] %v2223_v1  ;;  %401 = vst [vmem:[#allocation4 + $0x8] sm:$0xff] %v2223_v1 }
  0x26   : > { %402 = vst [vmem:[#allocation4 + $0x10] sm:$0xff] %v2223_v1  ;;  %403 = vst [vmem:[#allocation4 + $0x18] sm:$0xff] %v2223_v1 }
  0x27   : > { %404 = vst [vmem:[#allocation4 + $0x20] sm:$0xff] %v2223_v1  ;;  %405 = vst [vmem:[#allocation4 + $0x28] sm:$0xff] %v2223_v1 }
  0x28   : > { %406 = vst [vmem:[#allocation4 + $0x30] sm:$0xff] %v2223_v1  ;;  %407 = vst [vmem:[#allocation4 + $0x38] sm:$0xff] %v2223_v1 }
  0x29   : > { %408 = vst [vmem:[#allocation4 + $0x40] sm:$0xff] %v2223_v1  ;;  %409 = vst [vmem:[#allocation4 + $0x48] sm:$0xff] %v2223_v1 }
  0x2a   : > { %410 = vst [vmem:[#allocation4 + $0x50] sm:$0xff] %v2223_v1  ;;  %411 = vst [vmem:[#allocation4 + $0x58] sm:$0xff] %v2223_v1 }
  0x2b   : > { %412 = vst [vmem:[#allocation4 + $0x60] sm:$0xff] %v2223_v1  ;;  %413 = vst [vmem:[#allocation4 + $0x68] sm:$0xff] %v2223_v1 }
  0x2c   : > { %414 = vst [vmem:[#allocation4 + $0x70] sm:$0xff] %v2223_v1  ;;  %415 = vst [vmem:[#allocation4 + $0x78] sm:$0xff] %v2223_v1 }
  0x2d PF: > { %p1809_p11 = scmp.lt.s32.totalorder %s2295_s27, 0 }
  0x2e   : > { %v2052_v2 = vld [vmem:[%s2312_s23] sm:$0xff] (!%p1809_p11)   ;;  %v2053_v3 = vld [vmem:[%s2312_s23 + $0x8] sm:$0xff] (!%p1809_p11)   ;;  %v2054_v5 = vld [vmem:[%s2312_s23 + $0x10] sm:$0xff] (!%p1809_p11)   ;;  %v622_v14 = vlaneseq (!%p1809_p11)  ;;  %s1822_s24 = sshll.u32 (!%p1809_p11), %s2200_s13, 7  ;;  %s1823_s28 = sshll.u32 (!%p1809_p11), %s2295_s27, 6  ;;  %vm757_vm11 = vcmask (!%p1809_p11), 523264  }
  0x2f   : > { %419 = sbr.rel (%p1809_p11) target bundleno = 841 (0x349), region = 40  ;;  %1942 = vmatprep.subr.bf16.mxu0 (!%p1809_p11), %v2052_v2  ;;  %v2056_v4 = vld [vmem:[%s2301_s4] sm:$0xff] (!%p1809_p11)   ;;  %v2055_v6 = vld [vmem:[%s2312_s23 + $0x18] sm:$0xff] (!%p1809_p11)   ;;  %v2057_v7 = vld [vmem:[%s2301_s4 + $0x8] sm:$0xff] (!%p1809_p11)   ;;  %v2370_v18 = vstv (!%p1809_p11), %s1822_s24 }
  0x30   : > { %1943 = vmatpush3.bf16.xpose.msra.mxu0 (!%p1809_p11), %v2052_v2  ;;  %1950 = vmatprep.mubr.bf16.mxu0 (!%p1809_p11), %v2056_v4  ;;  %v2058_v8 = vld [vmem:[%s2301_s4 + $0x10] sm:$0xff] (!%p1809_p11)   ;;  %v2059_v9 = vld [vmem:[%s2301_s4 + $0x18] sm:$0xff] (!%p1809_p11)   ;;  %v2060_v10 = vld [vmem:[%s2301_s4 + $0x20] sm:$0xff] (!%p1809_p11)   ;;  %v2365_v15 = vshrl.u32 (!%p1809_p11), %v622_v14, 7  ;;  %v658_v17 = vand.u32 (!%p1809_p11), 127, %v622_v14  ;;  %v659_v19 = vstv (!%p1809_p11), %s1823_s28 }
  0x31   : > { %1944 = vmatprep.subr.bf16.mxu0 (!%p1809_p11), %v2053_v3  ;;  %v2061_v11 = vld [vmem:[%s2301_s4 + $0x28] sm:$0xff] (!%p1809_p11)   ;;  %v2062_v12 = vld [vmem:[%s2301_s4 + $0x30] sm:$0xff] (!%p1809_p11)   ;;  %v2063_v13 = vld [vmem:[%s2301_s4 + $0x38] sm:$0xff] (!%p1809_p11)  }
  0x32   : > { %v625_v16 = vadd.s32 (!%p1809_p11), 16, %v2365_v15  ;;  %v626_v20 = vadd.s32 (!%p1809_p11), 24, %v2365_v15  ;;  %v624_v21 = vadd.s32 (!%p1809_p11), 8, %v2365_v15  ;;  %v2375_v23 = vadd.s32 (!%p1809_p11), %v659_v19, %v658_v17 }
  0x33   : > { %v640_v24 = vadd.s32 (!%p1809_p11), %v2370_v18, %v2365_v15  ;;  %v627_v29 = vadd.s32 (!%p1809_p11), 32, %v2365_v15  ;;  %v629_v31 = vadd.s32 (!%p1809_p11), 48, %v2365_v15  ;;  %v630_v32 = vadd.s32 (!%p1809_p11), 56, %v2365_v15 }
  0x34   : > { %v642_v22 = vadd.s32 (!%p1809_p11), %v2370_v18, %v625_v16  ;;  %v643_v25 = vadd.s32 (!%p1809_p11), %v2370_v18, %v626_v20  ;;  %v641_v26 = vadd.s32 (!%p1809_p11), %v2370_v18, %v624_v21  ;;  %v628_v34 = vadd.s32 (!%p1809_p11), 40, %v2365_v15 }
  0x35   : > { %v677_v28 = vsub.s32 (!%p1809_p11), %v640_v24, %v2375_v23  ;;  %vm661_vm3 = vcmp.le.s32.totalorder (!%p1809_p11), %v2375_v23, %v640_v24  ;;  %v644_v35 = vadd.s32 (!%p1809_p11), %v2370_v18, %v627_v29  ;;  %v646_v36 = vadd.s32 (!%p1809_p11), %v2370_v18, %v629_v31 }
  0x36   : > { %v679_v27 = vsub.s32 %v642_v22, %v2375_v23  ;;  %v680_v30 = vsub.s32 %v643_v25, %v2375_v23  ;;  %v678_v33 = vsub.s32 %v641_v26, %v2375_v23  ;;  %vm663_vm1 = vcmp.le.s32.totalorder %v2375_v23, %v642_v22 }
  0x37   : > { %vm693_vm4 = vcmp.le.s32.totalorder %v677_v28, 64  ;;  %vm664_vm5 = vcmp.le.s32.totalorder %v2375_v23, %v643_v25  ;;  %v647_v37 = vadd.s32 %v2370_v18, %v630_v32  ;;  %vm662_vm8 = vcmp.le.s32.totalorder %v2375_v23, %v641_v26 }
  0x38   : > { %1945 = vmatpush3.bf16.xpose.msra.mxu0 %v2053_v3  ;;  %vm695_vm2 = vcmp.le.s32.totalorder %v679_v27, 64  ;;  %vm696_vm6 = vcmp.le.s32.totalorder %v680_v30, 64  ;;  %vm694_vm9 = vcmp.le.s32.totalorder %v678_v33, 64  ;;  %v631_v38 = vadd.s32 64, %v2365_v15  ;;  %vm709_vm10 = vmand %vm661_vm3, %vm693_vm4 }
  0x39   : > { %1946 = vmatprep.subr.bf16.mxu0 %v2054_v5  ;;  %vm711_vm7 = vmand %vm663_vm1, %vm695_vm2  ;;  %v645_v39 = vadd.s32 %v2370_v18, %v628_v34  ;;  %v681_v41 = vsub.s32 %v644_v35, %v2375_v23  ;;  %v633_v42 = vadd.s32 80, %v2365_v15  ;;  %v683_v45 = vsub.s32 %v646_v36, %v2375_v23 }
  0x3a   : > { %vm712_vm12 = vmand %vm664_vm5, %vm696_vm6  ;;  %v684_v46 = vsub.s32 %v647_v37, %v2375_v23  ;;  %v634_v47 = vadd.s32 88, %v2365_v15  ;;  %v648_v51 = vadd.s32 %v2370_v18, %v631_v38  ;;  %v632_v52 = vadd.s32 72, %v2365_v15 }
  0x3b   : > { %vm710_vm13 = vmand %vm662_vm8, %vm694_vm9  ;;  %v682_v56 = vsub.s32 %v645_v39, %v2375_v23  ;;  %vm665_vm14 = vcmp.le.s32.totalorder %v2375_v23, %v644_v35  ;;  %vm697_vm15 = vcmp.le.s32.totalorder %v681_v41, 64  ;;  %v650_v58 = vadd.s32 %v2370_v18, %v633_v42 }
  0x3c   : > { %vm667_vm0 = vcmp.le.s32.totalorder %v2375_v23, %v646_v36  ;;  %vm668_vm1 = vcmp.le.s32.totalorder %v2375_v23, %v647_v37  ;;  %vm700_vm2 = vcmp.le.s32.totalorder %v684_v46, 64  ;;  %v651_v59 = vadd.s32 %v2370_v18, %v634_v47  ;;  %vm713_vm4 = vmand %vm665_vm14, %vm697_vm15 }
  0x3d   : > { %vm699_vm3 = vcmp.le.s32.totalorder %v683_v45, 64  ;;  %v685_v61 = vsub.s32 %v648_v51, %v2375_v23  ;;  %v649_v62 = vadd.s32 %v2370_v18, %v632_v52  ;;  %vm666_vm5 = vcmp.le.s32.totalorder %v2375_v23, %v645_v39 }
  0x3e   : > { %vm698_vm6 = vcmp.le.s32.totalorder %v682_v56, 64  ;;  %v635_v0 = vadd.s32 96, %v2365_v15  ;;  %v687_v2 = vsub.s32 %v650_v58, %v2375_v23  ;;  %v637_v3 = vadd.s32 112, %v2365_v15  ;;  %vm2437_vm8 = vmand %vm667_vm0, %vm699_vm3 }
  0x3f   : > { %vm669_vm9 = vcmp.le.s32.totalorder %v2375_v23, %v648_v51  ;;  %vm672_vm15 = vcmp.le.s32.totalorder %v2375_v23, %v651_v59  ;;  %v2224_v37 = vmov 0  }
  0x40   : > { %1947 = vmatpush3.bf16.xpose.msra.mxu0 %v2054_v5  ;;  %v652_v17 = vadd.s32 %v2370_v18, %v635_v0  ;;  %vm703_vm14 = vcmp.le.s32.totalorder %v687_v2, 64  ;;  %2051 = vset.pattern.permute.xlu1 %v2224_v37  ;;  %v2545_v2 = vld [vmem:[#allocation2 + $0x18] sm:$0xff] }
  0x41   : > { %1948 = vmatprep.subr.bf16.mxu0 %v2055_v6  ;;  %2050 = vset.pattern.permute.xlu0 %v2224_v37  ;;  %v2614_v37 = vld [vmem:[#allocation2 + $0x48] sm:$0xff] }
  0x42   : > { %v689_v27 = vsub.s32 %v652_v17, %v2375_v23 }
  0x48   : > { %1949 = vmatpush3.bf16.xpose.msra.mxu0 %v2055_v6  ;;  %v688_v6 = vsub.s32 %v651_v59, %v2375_v23 }
  0x4a   : > { %vm704_vm0 = vcmp.le.s32.totalorder %v688_v6, 64 }
  0x4f   : > { %1951 = vmatmul.mubr.bf16.vlgmr.msra.gmra.mrb[0].mxu0 %v2057_v7  ;;  %v638_v7 = vadd.s32 120, %v2365_v15 }
  0x50   : > { %1954 = vmatprep.mubr.bf16.mxu0 %v2058_v8 }
  0x51   : > { %v655_v22 = vadd.s32 %v2370_v18, %v638_v7 }
  0x53   : > { %v692_v32 = vsub.s32 %v655_v22, %v2375_v23 }
  0x57   : > { %1955 = vmatmul.mubr.bf16.gmra.mrb[4].mxu0 %v2059_v9 }
  0x58   : > { %1958 = vmatprep.mubr.bf16.mxu0 %v2060_v10  ;;  %v2568_v10 = vld [vmem:[#allocation2 + $0x38] sm:$0xff] }
  0x5f   : > { %1959 = vmatmul.mubr.bf16.gmra.mrb[8].mxu0 %v2061_v11  ;;  %v686_v11 = vsub.s32 %v649_v62, %v2375_v23 }
  0x60   : > { %1962 = vmatprep.mubr.bf16.mxu0 %v2062_v12  ;;  %v636_v12 = vadd.s32 104, %v2365_v15  ;;  %v654_v15 = vadd.s32 %v2370_v18, %v637_v3  ;;  %v2550_v3 = vld [vmem:[#allocation2 + $0x8] sm:$0xff] }
  0x61   : > { %vm702_vm3 = vcmp.le.s32.totalorder %v686_v11, 64 }
  0x62   : > { %v653_v25 = vadd.s32 %v2370_v18, %v636_v12  ;;  %v691_v30 = vsub.s32 %v654_v15, %v2375_v23 }
  0x64   : > { %v690_v36 = vsub.s32 %v653_v25, %v2375_v23 }
  0x67   : > { %1963 = vmatmul.mubr.bf16.gmra.mrb[12].mxu0 %v2063_v13 }
 0x122   : > { %v1952_v40 = vpop.f32.mrb[0].mxu0 }
 0x123   : > { %v2400_v43 = vsel %vm711_vm7, %v1952_v40, -1e+30  ;;  %v558_v44 = vpop.f32.mrb[1].mxu0  ;;  %vm716_vm7 = vmand %vm668_vm1, %vm700_vm2  ;;  %vm670_vm2 = vcmp.le.s32.totalorder %v2375_v23, %v649_v62 }
 0x124   : > { %v2405_v48 = vsel %vm709_vm10, %v558_v44, -1e+30  ;;  %v1953_v49 = vpop.f32.mrb[2].mxu0  ;;  %v764_v50 = vsel %vm757_vm11, %v2400_v43, -inf  ;;  %vm714_vm10 = vmand %vm666_vm5, %vm698_vm6 }
 0x125   : > { %v2411_v53 = vsel %vm712_vm12, %v1953_v49, -1e+30  ;;  %765 = vmax.xlane.f32.xlu1 %v764_v50  ;;  %v561_v54 = vpop.f32.mrb[3].mxu0  ;;  %v758_v55 = vsel %vm757_vm11, %v2405_v48, -inf  ;;  %vm2448_vm12 = vcmp.le.s32.totalorder %v685_v61, 64  ;;  %vm720_vm5 = vmand %vm672_vm15, %vm704_vm0  ;;  %vm674_vm15 = vcmp.le.s32.totalorder %v2375_v23, %v653_v25  ;;  %v2537_v61 = vld [vmem:[#allocation2] sm:$0xff] }
 0x126   : > { %v2416_v57 = vsel %vm710_vm13, %v561_v54, -1e+30  ;;  %759 = vmax.xlane.f32.xlu0 %v758_v55  ;;  %v767_v60 = vsel %vm757_vm11, %v2411_v53, -inf  ;;  %vm671_vm13 = vcmp.le.s32.totalorder %v2375_v23, %v650_v58  ;;  %vm2475_vm1 = vmand %vm669_vm9, %vm2448_vm12  ;;  %vm675_vm9 = vcmp.le.s32.totalorder %v2375_v23, %v654_v15  ;;  %v2582_v15 = vld [vmem:[#allocation2 + $0x28] sm:$0xff] }
 0x127   : > { %v761_v63 = vsel %vm757_vm11, %v2416_v57, -inf  ;;  %vm2489_vm6 = vmand %vm670_vm2, %vm702_vm3  ;;  %vm676_vm12 = vcmp.le.s32.totalorder %v2375_v23, %v655_v22  ;;  %vm706_vm0 = vcmp.le.s32.totalorder %v690_v36, 64  ;;  %v2066_v36 = vld [vmem:[%s2317_s29 + $0x10] sm:$0xff]  }
 0x128   : > { %vm722_vm3 = vmand %vm674_vm15, %vm706_vm0 }
 0x129   : > { %768 = vmax.xlane.f32.xlu1 %v767_v60  ;;  %v2535_v60 = vld [vmem:[#allocation2 + $0x10] sm:$0xff] }
 0x12a   : > { %762 = vmax.xlane.f32.xlu0 %v761_v63  ;;  %v1956_v1 = vpop.f32.mrb[4].mxu0 }
 0x12b   : > { %v574_v5 = vpop.f32.mrb[5].mxu0  ;;  %v2462_v19 = vsel %vm2437_vm8, %v1956_v1, -1e+30  ;;  %vm705_vm8 = vcmp.le.s32.totalorder %v689_v27, 64  ;;  %v2592_v27 = vld [vmem:[#allocation2 + $0x40] sm:$0xff] }
 0x12c   : > { %v2444_v8 = vsel %vm713_vm4, %v574_v5, -1e+30  ;;  %v1957_v9 = vpop.f32.mrb[6].mxu0  ;;  %v776_v26 = vsel %vm757_vm11, %v2462_v19, -inf  ;;  %vm719_vm4 = vmand %vm671_vm13, %vm703_vm14  ;;  %vm708_vm13 = vcmp.le.s32.totalorder %v692_v32, 64 }
 0x12d   : > { %v2454_v13 = vsel %vm716_vm7, %v1957_v9, -1e+30  ;;  %v577_v14 = vpop.f32.mrb[7].mxu0  ;;  %v770_v16 = vsel %vm757_vm11, %v2444_v8, -inf  ;;  %vm673_vm7 = vcmp.le.s32.totalorder %v2375_v23, %v652_v17  ;;  %vm724_vm2 = vmand %vm676_vm12, %vm708_vm13  ;;  %v2564_v9 = vld [vmem:[#allocation2 + $0x20] sm:$0xff]  ;;  %v2577_v17 = vld [vmem:[#allocation2 + $0x30] sm:$0xff] }
 0x12e   : > { %771 = vmax.xlane.f32.xlu0 %v770_v16  ;;  %v779_v20 = vsel %vm757_vm11, %v2454_v13, -inf  ;;  %v2467_v21 = vsel %vm714_vm10, %v577_v14, -1e+30  ;;  %vm707_vm10 = vcmp.le.s32.totalorder %v691_v30, 64  ;;  %vm721_vm14 = vmand %vm673_vm7, %vm705_vm8 }
 0x12f   : > { %780 = vmax.xlane.f32.xlu1 %v779_v20  ;;  %v773_v29 = vsel %vm757_vm11, %v2467_v21, -inf  ;;  %v2064_v20 = vld [vmem:[%s2317_s29] sm:$0xff]  }
 0x130   : > { %1966 = vmatprep.subr.bf16.mxu1 %v2064_v20 }
 0x131   : > { %1967 = vmatpush3.bf16.msra.mxu1 %v2064_v20 }
 0x132   : > { %777 = vmax.xlane.f32.xlu0 %v776_v26  ;;  %v1960_v28 = vpop.f32.mrb[8].mxu0 }
 0x133   : > { %774 = vmax.xlane.f32.xlu1 %v773_v29  ;;  %v590_v31 = vpop.f32.mrb[9].mxu0  ;;  %v2494_v33 = vsel %vm719_vm4, %v1960_v28, -1e+30  ;;  %vm1094_vm4 = vcmask 7168   ;;  %v2065_v28 = vld [vmem:[%s2317_s29 + $0x8] sm:$0xff]   ;;  %v2598_v29 = vld [vmem:[#allocation2 + $0x58] sm:$0xff] }
 0x134   : > { %v2498_v34 = vsel %vm2475_vm1, %v590_v31, -1e+30  ;;  %v1961_v35 = vpop.f32.mrb[10].mxu0  ;;  %v788_v44 = vsel %vm757_vm11, %v2494_v33, -inf  ;;  %vm723_vm1 = vmand %vm675_vm9, %vm707_vm10  ;;  %1968 = vmatprep.subr.bf16.mxu1 %v2065_v28 }
 0x135   : > { %v2501_v38 = vsel %vm720_vm5, %v1961_v35, -1e+30  ;;  %v782_v39 = vsel %vm757_vm11, %v2498_v34, -inf  ;;  %v593_v40 = vpop.f32.mrb[11].mxu0  ;;  %1969 = vmatpush3.bf16.msra.mxu1 %v2065_v28  ;;  %v2608_v35 = vld [vmem:[#allocation2 + $0x50] sm:$0xff] }
 0x136   : > { %v791_v41 = vsel %vm757_vm11, %v2501_v38, -inf  ;;  %783 = vmax.xlane.f32.xlu0 %v782_v39  ;;  %v2510_v42 = vsel %vm2489_vm6, %v593_v40, -1e+30  ;;  %1970 = vmatprep.subr.bf16.mxu1 %v2066_v36 }
 0x137   : > { %792 = vmax.xlane.f32.xlu1 %v791_v41  ;;  %v785_v45 = vsel %vm757_vm11, %v2510_v42, -inf }
 0x139   : > { %1971 = vmatpush3.bf16.msra.mxu1 %v2066_v36 }
 0x13a   : > { %v1964_v46 = vpop.f32.mrb[12].mxu0  ;;  %789 = vmax.xlane.f32.xlu0 %v788_v44 }
 0x13b   : > { %786 = vmax.xlane.f32.xlu1 %v785_v45  ;;  %v606_v47 = vpop.f32.mrb[13].mxu0  ;;  %v2519_v49 = vsel %vm723_vm1, %v1964_v46, -1e+30  ;;  %v2626_v46 = vld [vmem:[#allocation2 + $0x60] sm:$0xff] }
 0x13c   : > { %v2521_v50 = vsel %vm721_vm14, %v606_v47, -1e+30  ;;  %v1965_v51 = vpop.f32.mrb[14].mxu0  ;;  %v800_v58 = vsel %vm757_vm11, %v2519_v49, -inf  ;;  %v2067_v47 = vld [vmem:[%s2317_s29 + $0x18] sm:$0xff]  }
 0x13d   : > { %v2523_v52 = vsel %vm724_vm2, %v1965_v51, -1e+30  ;;  %v794_v54 = vsel %vm757_vm11, %v2521_v50, -inf  ;;  %v609_v55 = vpop.f32.mrb[15].mxu0  ;;  %v2632_v51 = vld [vmem:[#allocation2 + $0x78] sm:$0xff]  ;;  %1972 = vmatprep.subr.bf16.mxu1 %v2067_v47 }
 0x13e   : > { %v803_v23 = vsel %vm757_vm11, %v2523_v52, -inf  ;;  %795 = vmax.xlane.f32.xlu0 %v794_v54  ;;  %v2529_v56 = vsel %vm722_vm3, %v609_v55, -1e+30  ;;  %1973 = vmatpush3.bf16.msra.mxu1 %v2067_v47 }
 0x13f   : > { %804 = vmax.xlane.f32.xlu1 %v803_v23  ;;  %v797_v59 = vsel %vm757_vm11, %v2529_v56, -inf }
 0x142   : > { %801 = vmax.xlane.f32.xlu0 %v800_v58 }
 0x143   : > { %798 = vmax.xlane.f32.xlu1 %v797_v59 }
 0x1b2   : > { %v766_v62 = vpop.xlane.xlu1 %765 }
 0x1b3   : > { %v2540_v63 = vmax.f32 %v2535_v60, %v766_v62  ;;  %v760_v0 = vpop.xlane.xlu0 %759  ;;  %v2645_v62 = vld [vmem:[#allocation2 + $0x70] sm:$0xff] }
 0x1b4   : > { %v2543_v1 = vmax.f32 %v2537_v61, %v760_v0  ;;  %v754_v0 = vld [vmem:[#allocation2 + $0x68] sm:$0xff] }
 0x1b5   : > { %1410 = vst.msk [vmem:[#allocation2 + $0x10] sm:$0xff] %vm1094_vm4, %v2540_v63  ;;  %882 = vperm.xlu1 %2051, %v2540_v63  }
 0x1b6   : > { %1408 = vst.msk [vmem:[#allocation2] sm:$0xff] %vm1094_vm4, %v2543_v1  ;;  %v769_v4 = vpop.xlane.xlu1 %768  ;;  %872 = vperm.xlu0 %2050, %v2543_v1   ;;  %v822_v40 = vsub.f32 %v2537_v61, %v2543_v1 }
 0x1b7   : > { %v2556_v5 = vmax.f32 %v2545_v2, %v769_v4  ;;  %v763_v6 = vpop.xlane.xlu0 %762 }
 0x1b8   : > { %v2559_v7 = vmax.f32 %v2550_v3, %v763_v6  ;;  %v838_v55 = vmul.f32 1.442695, %v822_v40 }
 0x1b9   : > { %1411 = vst.msk [vmem:[#allocation2 + $0x18] sm:$0xff] %vm1094_vm4, %v2556_v5  ;;  %887 = vperm.xlu1 %2051, %v2556_v5   ;;  %v825_v23 = vsub.f32 %v2545_v2, %v2556_v5 }
 0x1ba   : > { %1409 = vst.msk [vmem:[#allocation2 + $0x8] sm:$0xff] %vm1094_vm4, %v2559_v7  ;;  %v823_v1 = vsub.f32 %v2550_v3, %v2559_v7  ;;  %2068 = vpow2.f32 %v838_v55 }
 0x1bb   : > { %v772_v11 = vpop.xlane.xlu0 %771  ;;  %v844_v5 = vmul.f32 1.442695, %v825_v23 }
 0x1bc   : > { %v2571_v12 = vmax.f32 %v2564_v9, %v772_v11  ;;  %v781_v14 = vpop.xlane.xlu1 %780 }
 0x1bd   : > { %v2574_v16 = vmax.f32 %v2568_v10, %v781_v14  ;;  %877 = vperm.xlu1 %2051, %v2559_v7   ;;  %v824_v7 = vsub.f32 %v2535_v60, %v2540_v63  ;;  %2070 = vpow2.f32 %v844_v5 }
 0x1be   : > { %1412 = vst.msk [vmem:[#allocation2 + $0x20] sm:$0xff] %vm1094_vm4, %v2571_v12  ;;  %v826_v28 = vsub.f32 %v2564_v9, %v2571_v12 }
 0x1bf   : > { %1415 = vst.msk [vmem:[#allocation2 + $0x38] sm:$0xff] %vm1094_vm4, %v2574_v16  ;;  %v778_v22 = vpop.xlane.xlu0 %777 }
 0x1c0   : > { %v2587_v24 = vmax.f32 %v2577_v17, %v778_v22  ;;  %v775_v25 = vpop.xlane.xlu1 %774  ;;  %v840_v22 = vmul.f32 1.442695, %v823_v1 }
 0x1c1   : > { %v2590_v26 = vmax.f32 %v2582_v15, %v775_v25 }
 0x1c2   : > { %1414 = vst.msk [vmem:[#allocation2 + $0x30] sm:$0xff] %vm1094_vm4, %v2587_v24  ;;  %902 = vperm.xlu1 %2051, %v2587_v24   ;;  %2072 = vpow2.f32 %v840_v22 }
 0x1c3   : > { %1413 = vst.msk [vmem:[#allocation2 + $0x28] sm:$0xff] %vm1094_vm4, %v2590_v26  ;;  %v784_v30 = vpop.xlane.xlu0 %783  ;;  %v827_v6 = vsub.f32 %v2582_v15, %v2590_v26  ;;  %v829_v15 = vsub.f32 %v2568_v10, %v2574_v16  ;;  %v846_v10 = vmul.f32 1.442695, %v826_v28 }
 0x1c4   : > { %v793_v31 = vpop.xlane.xlu1 %792  ;;  %v2603_v18 = vmax.f32 %v2592_v27, %v784_v30  ;;  %v2678_v63 = vpop.eup %2068 }
 0x1c5   : > { %v2606_v32 = vmax.f32 %v2598_v29, %v793_v31  ;;  %v848_v25 = vmul.f32 1.442695, %v827_v6  ;;  %v852_v30 = vmul.f32 1.442695, %v829_v15 }
 0x1c6   : > { %1416 = vst.msk [vmem:[#allocation2 + $0x40] sm:$0xff] %vm1094_vm4, %v2603_v18  ;;  %892 = vperm.xlu1 %2051, %v2571_v12  }
 0x1c7   : > { %1419 = vst.msk [vmem:[#allocation2 + $0x58] sm:$0xff] %vm1094_vm4, %v2606_v32  ;;  %v790_v39 = vpop.xlane.xlu0 %789  ;;  %2074 = vpow2.f32 %v848_v25  ;;  %v833_v60 = vsub.f32 %v2598_v29, %v2606_v32  ;;  %v2686_v31 = vpop.eup %2070 }
 0x1c8   : > { %v787_v41 = vpop.xlane.xlu1 %786  ;;  %v2621_v44 = vmax.f32 %v2608_v35, %v790_v39 }
 0x1c9   : > { %v2624_v45 = vmax.f32 %v2614_v37, %v787_v41  ;;  %v860_v9 = vmul.f32 1.442695, %v833_v60 }
 0x1ca   : > { %1418 = vst.msk [vmem:[#allocation2 + $0x50] sm:$0xff] %vm1094_vm4, %v2621_v44  ;;  %897 = vperm.xlu1 %2051, %v2590_v26   ;;  %v842_v26 = vmul.f32 1.442695, %v824_v7 }
 0x1cb   : > { %1417 = vst.msk [vmem:[#allocation2 + $0x48] sm:$0xff] %vm1094_vm4, %v2624_v45  ;;  %917 = vperm.xlu0 %2050, %v2624_v45   ;;  %v796_v54 = vpop.xlane.xlu0 %795  ;;  %v831_v12 = vsub.f32 %v2614_v37, %v2624_v45  ;;  %v830_v37 = vsub.f32 %v2592_v27, %v2603_v18 }
 0x1cc   : > { %v805_v58 = vpop.xlane.xlu1 %804  ;;  %v2640_v59 = vmax.f32 %v2626_v46, %v796_v54  ;;  %2076 = vpow2.f32 %v842_v26  ;;  %v2692_v36 = vpop.eup %2072 }
 0x1cd   : > { %v2643_v61 = vmax.f32 %v2632_v51, %v805_v58  ;;  %2078 = vpow2.f32 %v852_v30  ;;  %v854_v45 = vmul.f32 1.442695, %v830_v37 }
 0x1ce   : > { %1420 = vst.msk [vmem:[#allocation2 + $0x60] sm:$0xff] %vm1094_vm4, %v2640_v59  ;;  %907 = vperm.xlu1 %2051, %v2574_v16   ;;  %v828_v16 = vsub.f32 %v2577_v17, %v2587_v24  ;;  %2080 = vpow2.f32 %v846_v10  ;;  %v856_v17 = vmul.f32 1.442695, %v831_v12  ;;  %v834_v47 = vsub.f32 %v2626_v46, %v2640_v59 }
 0x1cf   : > { %v837_v2 = vsub.f32 %v2632_v51, %v2643_v61  ;;  %1423 = vst.msk [vmem:[#allocation2 + $0x78] sm:$0xff] %vm1094_vm4, %v2643_v61  ;;  %927 = vperm.xlu0 %2050, %v2606_v32   ;;  %v802_v4 = vpop.xlane.xlu0 %801  ;;  %v832_v32 = vsub.f32 %v2608_v35, %v2621_v44  ;;  %2082 = vpow2.f32 %v860_v9 }
 0x1d0   : > { %v799_v11 = vpop.xlane.xlu1 %798  ;;  %v2660_v14 = vmax.f32 %v2645_v62, %v802_v4  ;;  %v850_v29 = vmul.f32 1.442695, %v828_v16  ;;  %v862_v54 = vmul.f32 1.442695, %v834_v47 }
 0x1d1   : > { %v819_v20 = vmax.f32 %v754_v0, %v799_v11  ;;  %v2694_v39 = vpop.eup %2074  ;;  %v858_v40 = vmul.f32 1.442695, %v832_v32 }
 0x1d2   : > { %v836_v3 = vsub.f32 %v2645_v62, %v2660_v14  ;;  %1422 = vst.msk [vmem:[#allocation2 + $0x70] sm:$0xff] %vm1094_vm4, %v2660_v14  ;;  %912 = vperm.xlu1 %2051, %v2603_v18   ;;  %2084 = vpow2.f32 %v850_v29 }
 0x1d3   : > { %1421 = vst.msk [vmem:[#allocation2 + $0x68] sm:$0xff] %vm1094_vm4, %v819_v20  ;;  %937 = vperm.xlu0 %2050, %v819_v20   ;;  %v835_v24 = vsub.f32 %v754_v0, %v819_v20  ;;  %2086 = vpow2.f32 %v856_v17 }
 0x1d4   : > { %2088 = vpow2.f32 %v858_v40 }
 0x1d5   : > { %v864_v35 = vmul.f32 1.442695, %v835_v24 }
 0x1d6   : > { %922 = vperm.xlu1 %2051, %v2621_v44   ;;  %v2700_v41 = vpop.eup %2076 }
 0x1d7   : > { %947 = vperm.xlu0 %2050, %v2643_v61   ;;  %v2702_v44 = vpop.eup %2078  ;;  %2090 = vpow2.f32 %v864_v35 }
 0x1d8   : > { %v2708_v27 = vpop.eup %2080  ;;  %2092 = vpow2.f32 %v854_v45 }
 0x1d9   : > { %v2710_v18 = vpop.eup %2082  ;;  %2094 = vpow2.f32 %v862_v54 }
 0x1da   : > { %932 = vperm.xlu1 %2051, %v2640_v59  }
 0x1db   : > { %1282 = vperm.xlu0 %2050, %v2678_v63  }
 0x1dc   : > { %v2714_v55 = vpop.eup %2084 }
 0x1dd   : > { %v2716_v23 = vpop.eup %2086 }
 0x1de   : > { %942 = vperm.xlu1 %2051, %v2660_v14   ;;  %v2720_v46 = vpop.eup %2088 }
 0x1df   : > { %1297 = vperm.xlu0 %2050, %v2686_v31  }
 0x1e1   : > { %v2722_v58 = vpop.eup %2090 }
 0x1e2   : > { %1287 = vperm.xlu1 %2051, %v2692_v36   ;;  %v2726_v59 = vpop.eup %2092 }
 0x1e3   : > { %1307 = vperm.xlu0 %2050, %v2694_v39   ;;  %v2729_v0 = vpop.eup %2094 }
 0x1e6   : > { %1292 = vperm.xlu1 %2051, %v2700_v41  }
 0x1e7   : > { %1317 = vperm.xlu0 %2050, %v2702_v44  }
 0x1ea   : > { %1302 = vperm.xlu1 %2051, %v2708_v27  }
 0x1eb   : > { %1337 = vperm.xlu0 %2050, %v2710_v18  }
 0x1ee   : > { %1312 = vperm.xlu1 %2051, %v2714_v55  }
 0x1ef   : > { %1327 = vperm.xlu0 %2050, %v2716_v23  }
 0x1f2   : > { %1332 = vperm.xlu1 %2051, %v2720_v46  }
 0x1f3   : > { %1347 = vperm.xlu0 %2050, %v2722_v58  }
 0x1f6   : > { %1322 = vperm.xlu1 %2051, %v2726_v59  }
 0x1fa   : > { %1342 = vperm.xlu1 %2051, %v2729_v0  }
 0x234   : > { %v883_v1 = vpop.permute.xlu1 %882 }
 0x235   : > { %v952_v4 = vsub.f32 %v2400_v43, %v883_v1  ;;  %v873_v5 = vpop.permute.xlu0 %872 }
 0x236   : > { %v950_v6 = vsub.f32 %v2405_v48, %v873_v5 }
 0x237   : > { %v970_v11 = vmul.f32 1.442695, %v952_v4 }
 0x238   : > { %v966_v20 = vmul.f32 1.442695, %v950_v6  ;;  %v888_v7 = vpop.permute.xlu1 %887 }
 0x239   : > { %2096 = vpow2.f32 %v970_v11  ;;  %v953_v22 = vsub.f32 %v2411_v53, %v888_v7 }
 0x23a   : > { %2098 = vpow2.f32 %v966_v20 }
 0x23b   : > { %v972_v15 = vmul.f32 1.442695, %v953_v22 }
 0x23c   : > { %v878_v25 = vpop.permute.xlu1 %877 }
 0x23d   : > { %2100 = vpow2.f32 %v972_v15  ;;  %v951_v26 = vsub.f32 %v2416_v57, %v878_v25 }
 0x23f   : > { %v968_v28 = vmul.f32 1.442695, %v951_v26 }
 0x241   : > { %2102 = vpow2.f32 %v968_v28  ;;  %v903_v30 = vpop.permute.xlu1 %902 }
 0x242   : > { %v956_v43 = vsub.f32 %v2462_v19, %v903_v30 }
 0x243   : > { %v2097_v60 = vpop.eup %2096 }
 0x244   : > { %v2099_v10 = vpop.eup %2098  ;;  %v978_v48 = vmul.f32 1.442695, %v956_v43  ;;  %v1036_v16 = vsel %vm757_vm11, %v2097_v60, 0.0 }
 0x245   : > { %1037 = vadd.xlane.f32.xlu0 %v1036_v16  ;;  %v893_v9 = vpop.permute.xlu1 %892  ;;  %v1030_v53 = vsel %vm757_vm11, %v2099_v10, 0.0 }
 0x246   : > { %2104 = vpow2.f32 %v978_v48  ;;  %v954_v12 = vsub.f32 %v2444_v8, %v893_v9  ;;  %1031 = vadd.xlane.f32.xlu1 %v1030_v53 }
 0x247   : > { %v2101_v29 = vpop.eup %2100 }
 0x248   : > { %v974_v57 = vmul.f32 1.442695, %v954_v12  ;;  %v1039_v32 = vsel %vm757_vm11, %v2101_v29, 0.0  ;;  %v1112_v54 = vpack.c.bf16 %v2101_v29, %v2097_v60 }
 0x249   : > { %v898_v17 = vpop.permute.xlu1 %897 }
 0x24a   : > { %2106 = vpow2.f32 %v974_v57  ;;  %v955_v19 = vsub.f32 %v2467_v21, %v898_v17  ;;  %v918_v24 = vpop.permute.xlu0 %917  ;;  %1040 = vadd.xlane.f32.xlu1 %v1039_v32 }
 0x24b   : > { %v2103_v37 = vpop.eup %2102  ;;  %v959_v47 = vsub.f32 %v2510_v42, %v918_v24 }
 0x24c   : > { %v976_v40 = vmul.f32 1.442695, %v955_v19  ;;  %v1033_v35 = vsel %vm757_vm11, %v2103_v37, 0.0  ;;  %v1111_v45 = vpack.c.bf16 %v2103_v37, %v2099_v10 }
 0x24d   : > { %1034 = vadd.xlane.f32.xlu0 %v1033_v35  ;;  %v908_v8 = vpop.permute.xlu1 %907  ;;  %v984_v11 = vmul.f32 1.442695, %v959_v47 }
 0x24e   : > { %2108 = vpow2.f32 %v976_v40  ;;  %v957_v1 = vsub.f32 %v2454_v13, %v908_v8  ;;  %v928_v4 = vpop.permute.xlu0 %927  ;;  %1974 = vmatprep.mubr.msk.bf16.mxu1 %vm757_vm11, %v1111_v45 }
 0x24f   : > { %1975 = vmatmul.mubr.msk.bf16.vlgmr.msra.gmra.mrb[0].mxu1 %vm757_vm11, %v1112_v54  ;;  %v961_v6 = vsub.f32 %v2501_v38, %v928_v4 }
 0x250   : > { %v2105_v21 = vpop.eup %2104  ;;  %v980_v5 = vmul.f32 1.442695, %v957_v1 }
 0x251   : > { %v913_v20 = vpop.permute.xlu1 %912  ;;  %v1048_v7 = vsel %vm757_vm11, %v2105_v21, 0.0  ;;  %v988_v13 = vmul.f32 1.442695, %v961_v6 }
 0x252   : > { %2110 = vpow2.f32 %v980_v5  ;;  %v958_v42 = vsub.f32 %v2498_v34, %v913_v20  ;;  %v938_v22 = vpop.permute.xlu0 %937  ;;  %1049 = vadd.xlane.f32.xlu0 %v1048_v7 }
 0x253   : > { %2112 = vpow2.f32 %v984_v11  ;;  %v963_v26 = vsub.f32 %v2529_v56, %v938_v22 }
 0x254   : > { %v2107_v15 = vpop.eup %2106  ;;  %v982_v25 = vmul.f32 1.442695, %v958_v42 }
 0x255   : > { %v923_v28 = vpop.permute.xlu1 %922  ;;  %v1042_v30 = vsel %vm757_vm11, %v2107_v15, 0.0  ;;  %v992_v48 = vmul.f32 1.442695, %v963_v26 }
 0x256   : > { %2114 = vpow2.f32 %v982_v25  ;;  %v960_v38 = vsub.f32 %v2494_v33, %v923_v28  ;;  %v948_v43 = vpop.permute.xlu0 %947  ;;  %1043 = vadd.xlane.f32.xlu0 %v1042_v30 }
 0x257   : > { %2116 = vpow2.f32 %v988_v13  ;;  %v965_v34 = vsub.f32 %v2523_v52, %v948_v43  ;;  %v868_v13 = vmul.f32 1.442695, %v837_v2 }
 0x258   : > { %v2109_v60 = vpop.eup %2108  ;;  %v986_v10 = vmul.f32 1.442695, %v960_v38 }
 0x259   : > { %v933_v16 = vpop.permute.xlu1 %932  ;;  %v1113_v9 = vpack.c.bf16 %v2109_v60, %v2107_v15  ;;  %v996_v12 = vmul.f32 1.442695, %v965_v34  ;;  %v1045_v24 = vsel %vm757_vm11, %v2109_v60, 0.0  ;;  %v866_v15 = vmul.f32 1.442695, %v836_v3 }
 0x25a   : > { %2118 = vpow2.f32 %v986_v10  ;;  %v962_v53 = vsub.f32 %v2521_v50, %v933_v16  ;;  %v2784_v28 = vpop.permute.xlu0 %1282 }
 0x25b   : > { %1978 = vmatprep.mubr.msk.bf16.mxu1 %vm757_vm11, %v1113_v9  ;;  %2120 = vpow2.f32 %v992_v48  ;;  %v1000_v48 = vld [vmem:[#allocation3 + $0x10] sm:$0xff]  ;;  %v998_v9 = vld [vmem:[#allocation3] sm:$0xff] }
 0x25c   : > { %v2111_v56 = vpop.eup %2110  ;;  %v990_v29 = vmul.f32 1.442695, %v962_v53  ;;  %v1016_v53 = vmul.f32 %v2700_v41, %v1000_v48 }
 0x25d   : > { %v943_v33 = vpop.permute.xlu1 %942  ;;  %v1051_v57 = vsel %vm757_vm11, %v2111_v56, 0.0  ;;  %v1114_v32 = vpack.c.bf16 %v2111_v56, %v2105_v21  ;;  %v2113_v52 = vpop.eup %2112 }
 0x25e   : > { %2122 = vpow2.f32 %v990_v29  ;;  %v964_v17 = vsub.f32 %v2519_v49, %v943_v33  ;;  %1052 = vadd.xlane.f32.xlu1 %v1051_v57  ;;  %v1057_v1 = vsel %vm757_vm11, %v2113_v52, 0.0  ;;  %v2788_v62 = vpop.permute.xlu0 %1297  ;;  %v1001_v57 = vld [vmem:[#allocation3 + $0x18] sm:$0xff] }
 0x25f   : > { %1979 = vmatmul.mubr.msk.bf16.gmra.mrb[4].mxu1 %vm757_vm11, %v1114_v32  ;;  %2124 = vpow2.f32 %v996_v12  ;;  %v1014_v12 = vmul.f32 %v2678_v63, %v998_v9  ;;  %v1004_v63 = vld [vmem:[#allocation3 + $0x30] sm:$0xff] }
 0x260   : > { %v2115_v19 = vpop.eup %2114  ;;  %v994_v50 = vmul.f32 1.442695, %v964_v17  ;;  %v1017_v17 = vmul.f32 %v2686_v31, %v1001_v57 }
 0x261   : > { %v1115_v37 = vpack.c.bf16 %v2113_v52, %v2115_v19  ;;  %v2117_v40 = vpop.eup %2116  ;;  %v1054_v4 = vsel %vm757_vm11, %v2115_v19, 0.0  ;;  %v2786_v30 = vpop.permute.xlu1 %1287  ;;  %v999_v52 = vld [vmem:[#allocation3 + $0x8] sm:$0xff] }
 0x262   : > { %2126 = vpow2.f32 %v994_v50  ;;  %1046 = vadd.xlane.f32.xlu1 %v1045_v24  ;;  %v1063_v45 = vsel %vm757_vm11, %v2117_v40, 0.0  ;;  %v2792_v3 = vpop.permute.xlu0 %1307  ;;  %v1015_v24 = vmul.f32 %v2692_v36, %v999_v52  ;;  %v1005_v36 = vld [vmem:[#allocation3 + $0x38] sm:$0xff]  ;;  %v1010_v52 = vld [vmem:[#allocation3 + $0x60] sm:$0xff] }
 0x263   : > { %1982 = vmatprep.mubr.msk.bf16.mxu1 %vm757_vm11, %v1115_v37  ;;  %2128 = vpow2.f32 %v866_v15  ;;  %v1007_v15 = vld [vmem:[#allocation3 + $0x48] sm:$0xff] }
 0x264   : > { %v2119_v35 = vpop.eup %2118  ;;  %2130 = vpow2.f32 %v868_v13  ;;  %v1023_v9 = vmul.f32 %v2716_v23, %v1007_v15 }
 0x265   : > { %v1060_v49 = vsel %vm757_vm11, %v2119_v35, 0.0  ;;  %v1116_v47 = vpack.c.bf16 %v2117_v40, %v2119_v35  ;;  %v2121_v8 = vpop.eup %2120  ;;  %v2790_v14 = vpop.permute.xlu1 %1292  ;;  %v1020_v40 = vmul.f32 %v2714_v55, %v1004_v63 }
 0x266   : > { %1064 = vadd.xlane.f32.xlu1 %v1063_v45  ;;  %1061 = vadd.xlane.f32.xlu0 %v1060_v49  ;;  %v1069_v42 = vsel %vm757_vm11, %v2121_v8, 0.0  ;;  %v2796_v61 = vpop.permute.xlu0 %1317  ;;  %v1002_v45 = vld [vmem:[#allocation3 + $0x20] sm:$0xff] }
 0x267   : > { %1983 = vmatmul.mubr.msk.bf16.gmra.mrb[8].mxu1 %vm757_vm11, %v1116_v47  ;;  %v1018_v31 = vmul.f32 %v2708_v27, %v1002_v45  ;;  %v1265_v45 = vld [vmem:[#allocation4 + $0x8] sm:$0xff] }
 0x268   : > { %v2123_v54 = vpop.eup %2122 }
 0x269   : > { %v1117_v21 = vpack.c.bf16 %v2121_v8, %v2123_v54  ;;  %v2125_v5 = vpop.eup %2124  ;;  %v1066_v22 = vsel %vm757_vm11, %v2123_v54, 0.0  ;;  %v2794_v51 = vpop.permute.xlu1 %1302  ;;  %v1021_v54 = vmul.f32 %v2702_v44, %v1005_v36  ;;  %v1006_v44 = vld [vmem:[#allocation3 + $0x40] sm:$0xff]  ;;  %v1361_v36 = vmul.f32 %v2786_v30, %v1265_v45 }
 0x26a   : > { %1058 = vadd.xlane.f32.xlu1 %v1057_v1  ;;  %1055 = vadd.xlane.f32.xlu0 %v1054_v4  ;;  %v1075_v11 = vsel %vm757_vm11, %v2125_v5, 0.0  ;;  %v2800_v38 = vpop.permute.xlu0 %1337  ;;  %v1003_v4 = vld [vmem:[#allocation3 + $0x28] sm:$0xff] }
 0x26b   : > { %1986 = vmatprep.mubr.msk.bf16.mxu1 %vm757_vm11, %v1117_v21  ;;  %v1019_v55 = vmul.f32 %v2694_v39, %v1003_v4  ;;  %v1022_v39 = vmul.f32 %v2726_v59, %v1006_v44  ;;  %v1011_v59 = vld [vmem:[#allocation3 + $0x68] sm:$0xff] }
 0x26c   : > { %v2127_v6 = vpop.eup %2126 }
 0x26d   : > { %v1072_v20 = vsel %vm757_vm11, %v2127_v6, 0.0  ;;  %v1118_v7 = vpack.c.bf16 %v2125_v5, %v2127_v6  ;;  %v2778_v25 = vpop.eup %2128  ;;  %v2798_v2 = vpop.permute.xlu1 %1312  ;;  %v1008_v6 = vld [vmem:[#allocation3 + $0x50] sm:$0xff] }
 0x26e   : > { %1076 = vadd.xlane.f32.xlu1 %v1075_v11  ;;  %1073 = vadd.xlane.f32.xlu0 %v1072_v20  ;;  %v2781_v26 = vpop.eup %2130  ;;  %v2804_v60 = vpop.permute.xlu0 %1327  ;;  %v1009_v11 = vld [vmem:[#allocation3 + $0x58] sm:$0xff]  ;;  %v1024_v27 = vmul.f32 %v2720_v46, %v1008_v6 }
 0x26f   : > { %1987 = vmatmul.mubr.msk.bf16.gmra.mrb[12].mxu1 %vm757_vm11, %v1118_v7  ;;  %v1025_v7 = vmul.f32 %v2710_v18, %v1009_v11  ;;  %v1013_v46 = vld [vmem:[#allocation3 + $0x78] sm:$0xff] }
 0x270   : > { %v1029_v57 = vmul.f32 %v2781_v26, %v1013_v46  ;;  %v1271_v6 = vld [vmem:[#allocation4 + $0x38] sm:$0xff] }
 0x271   : > { %v2802_v43 = vpop.permute.xlu1 %1332  ;;  %v1367_v30 = vmul.f32 %v2796_v61, %v1271_v6 }
 0x272   : > { %1070 = vadd.xlane.f32.xlu1 %v1069_v42  ;;  %1067 = vadd.xlane.f32.xlu0 %v1066_v22  ;;  %v2808_v34 = vpop.permute.xlu0 %1347 }
 0x275   : > { %v2806_v10 = vpop.permute.xlu1 %1322 }
 0x279   : > { %v2810_v16 = vpop.permute.xlu1 %1342 }
 0x283   : > { %1352 = vperm.xlu1 %2051, %v2778_v25  }
 0x288   : > { %1357 = vperm.xlu0 %2050, %v2781_v26   ;;  %v1266_v26 = vld [vmem:[#allocation4 + $0x10] sm:$0xff] }
 0x2d2   : > { %v1038_v56 = vpop.xlane.xlu0 %1037 }
 0x2d3   : > { %v1080_v29 = vadd.f32 %v1038_v56, %v1016_v53  ;;  %v1032_v33 = vpop.xlane.xlu1 %1031 }
 0x2d4   : > { %v1078_v32 = vadd.f32 %v1032_v33, %v1014_v12  ;;  %v1012_v12 = vld [vmem:[#allocation3 + $0x70] sm:$0xff] }
 0x2d5   : > { %1097 = vst.msk [vmem:[#allocation3 + $0x10] sm:$0xff] %vm1094_vm4, %v1080_v29  ;;  %v1028_v33 = vmul.f32 %v2778_v25, %v1012_v12 }
 0x2d6   : > { %1095 = vst.msk [vmem:[#allocation3] sm:$0xff] %vm1094_vm4, %v1078_v32 }
 0x2d7   : > { %v1041_v19 = vpop.xlane.xlu1 %1040 }
 0x2d8   : > { %v1081_v50 = vadd.f32 %v1041_v19, %v1017_v17 }
 0x2da   : > { %1098 = vst.msk [vmem:[#allocation3 + $0x18] sm:$0xff] %vm1094_vm4, %v1081_v50  ;;  %v1035_v41 = vpop.xlane.xlu0 %1034  ;;  %v1026_v50 = vmul.f32 %v2729_v0, %v1010_v52 }
 0x2db   : > { %v1079_v37 = vadd.f32 %v1035_v41, %v1015_v24  ;;  %v1027_v24 = vmul.f32 %v2722_v58, %v1011_v59 }
 0x2dd   : > { %1096 = vst.msk [vmem:[#allocation3 + $0x8] sm:$0xff] %vm1094_vm4, %v1079_v37 }
 0x2df   : > { %v1050_v35 = vpop.xlane.xlu0 %1049 }
 0x2e0   : > { %v1084_v49 = vadd.f32 %v1050_v35, %v1020_v40  ;;  %v1264_v40 = vld [vmem:[#allocation4] sm:$0xff]  ;;  %v1267_v35 = vld [vmem:[#allocation4 + $0x18] sm:$0xff] }
 0x2e1   : > { %v1363_v0 = vmul.f32 %v2788_v62, %v1267_v35 }
 0x2e2   : > { %1101 = vst.msk [vmem:[#allocation3 + $0x30] sm:$0xff] %vm1094_vm4, %v1084_v49  ;;  %v1362_v49 = vmul.f32 %v2790_v14, %v1266_v26  ;;  %v1268_v14 = vld [vmem:[#allocation4 + $0x20] sm:$0xff] }
 0x2e3   : > { %v1044_v47 = vpop.xlane.xlu0 %1043  ;;  %v1364_v62 = vmul.f32 %v2794_v51, %v1268_v14  ;;  %v1273_v51 = vld [vmem:[#allocation4 + $0x48] sm:$0xff] }
 0x2e4   : > { %v1082_v8 = vadd.f32 %v1044_v47, %v1018_v31  ;;  %v1360_v31 = vmul.f32 %v2784_v28, %v1264_v40  ;;  %v1269_v28 = vld [vmem:[#allocation4 + $0x28] sm:$0xff] }
 0x2e6   : > { %1099 = vst.msk [vmem:[#allocation3 + $0x20] sm:$0xff] %vm1094_vm4, %v1082_v8 }
 0x2eb   : > { %v1053_v1 = vpop.xlane.xlu1 %1052 }
 0x2ec   : > { %v1085_v21 = vadd.f32 %v1053_v1, %v1021_v54 }
 0x2ee   : > { %1102 = vst.msk [vmem:[#allocation3 + $0x38] sm:$0xff] %vm1094_vm4, %v1085_v21 }
 0x2ef   : > { %v1047_v5 = vpop.xlane.xlu1 %1046 }
 0x2f0   : > { %v1083_v20 = vadd.f32 %v1047_v5, %v1019_v55  ;;  %v1270_v5 = vld [vmem:[#allocation4 + $0x30] sm:$0xff] }
 0x2f1   : > { %v1366_v11 = vmul.f32 %v2798_v2, %v1270_v5  ;;  %v1275_v2 = vld [vmem:[#allocation4 + $0x58] sm:$0xff] }
 0x2f2   : > { %1100 = vst.msk [vmem:[#allocation3 + $0x28] sm:$0xff] %vm1094_vm4, %v1083_v20 }
 0x2f3   : > { %v1062_v42 = vpop.xlane.xlu0 %1061  ;;  %v1065_v22 = vpop.xlane.xlu1 %1064 }
 0x2f4   : > { %v1088_v13 = vadd.f32 %v1062_v42, %v1024_v27  ;;  %v1089_v48 = vadd.f32 %v1065_v22, %v1025_v7  ;;  %v1365_v42 = vmul.f32 %v2792_v3, %v1269_v28  ;;  %v1371_v3 = vmul.f32 %v2800_v38, %v1275_v2 }
 0x2f6   : > { %1105 = vst.msk [vmem:[#allocation3 + $0x50] sm:$0xff] %vm1094_vm4, %v1088_v13  ;;  %1106 = vst.msk [vmem:[#allocation3 + $0x58] sm:$0xff] %vm1094_vm4, %v1089_v48  ;;  %v1274_v48 = vld [vmem:[#allocation4 + $0x50] sm:$0xff] }
 0x2f7   : > { %v1056_v53 = vpop.xlane.xlu0 %1055  ;;  %v1059_v56 = vpop.xlane.xlu1 %1058 }
 0x2f8   : > { %v1086_v29 = vadd.f32 %v1056_v53, %v1022_v39  ;;  %v1087_v18 = vadd.f32 %v1059_v56, %v1023_v9  ;;  %v1272_v9 = vld [vmem:[#allocation4 + $0x40] sm:$0xff]  ;;  %v1370_v53 = vmul.f32 %v2802_v43, %v1274_v48  ;;  %v1279_v43 = vld [vmem:[#allocation4 + $0x78] sm:$0xff] }
 0x2f9   : > { %v1368_v61 = vmul.f32 %v2806_v10, %v1272_v9 }
 0x2fa   : > { %1103 = vst.msk [vmem:[#allocation3 + $0x40] sm:$0xff] %vm1094_vm4, %v1086_v29  ;;  %1104 = vst.msk [vmem:[#allocation3 + $0x48] sm:$0xff] %vm1094_vm4, %v1087_v18  ;;  %v1369_v29 = vmul.f32 %v2804_v60, %v1273_v51 }
 0x2fb   : > { %v1074_v32 = vpop.xlane.xlu0 %1073  ;;  %v1077_v17 = vpop.xlane.xlu1 %1076 }
 0x2fc   : > { %v1092_v19 = vadd.f32 %v1074_v32, %v1028_v33  ;;  %v1093_v23 = vadd.f32 %v1077_v17, %v1029_v57  ;;  %v1278_v17 = vld [vmem:[#allocation4 + $0x70] sm:$0xff] }
 0x2fe   : > { %1109 = vst.msk [vmem:[#allocation3 + $0x70] sm:$0xff] %vm1094_vm4, %v1092_v19  ;;  %1110 = vst.msk [vmem:[#allocation3 + $0x78] sm:$0xff] %vm1094_vm4, %v1093_v23  ;;  %v1276_v19 = vld [vmem:[#allocation4 + $0x60] sm:$0xff]  ;;  %v1277_v23 = vld [vmem:[#allocation4 + $0x68] sm:$0xff] }
 0x2ff   : > { %v1068_v41 = vpop.xlane.xlu0 %1067  ;;  %v1071_v37 = vpop.xlane.xlu1 %1070 }
 0x300   : > { %v1090_v63 = vadd.f32 %v1068_v41, %v1026_v50  ;;  %v1091_v25 = vadd.f32 %v1071_v37, %v1027_v24  ;;  %v1372_v50 = vmul.f32 %v2810_v16, %v1276_v19 }
 0x302   : > { %1107 = vst.msk [vmem:[#allocation3 + $0x60] sm:$0xff] %vm1094_vm4, %v1090_v63  ;;  %1108 = vst.msk [vmem:[#allocation3 + $0x68] sm:$0xff] %vm1094_vm4, %v1091_v25  ;;  %v1373_v63 = vmul.f32 %v2808_v34, %v1277_v23 }
 0x303   : > { %v1353_v52 = vpop.permute.xlu1 %1352 }
 0x304   : > { %v1374_v38 = vmul.f32 %v1353_v52, %v1278_v17 }
 0x307   : > { %v1358_v10 = vpop.permute.xlu0 %1357 }
 0x308   : > { %v1375_v60 = vmul.f32 %v1358_v10, %v1279_v43 }
 0x322   : > { %v1976_v47 = vpop.f32.mrb[0].mxu1 }
 0x323   : > { %v1378_v58 = vadd.f32 %v1976_v47, %v1362_v49  ;;  %v1201_v8 = vpop.f32.mrb[1].mxu1 }
 0x324   : > { %v1376_v54 = vadd.f32 %v1360_v31, %v1201_v8  ;;  %v1977_v1 = vpop.f32.mrb[2].mxu1 }
 0x325   : > { %1394 = vst [vmem:[#allocation4 + $0x10] sm:$0xff] %v1378_v58  ;;  %v1379_v4 = vadd.f32 %v1977_v1, %v1363_v0  ;;  %v1204_v21 = vpop.f32.mrb[3].mxu1 }
 0x326   : > { %1392 = vst [vmem:[#allocation4] sm:$0xff] %v1376_v54  ;;  %v1377_v55 = vadd.f32 %v1361_v36, %v1204_v21 }
 0x327   : > { %1395 = vst [vmem:[#allocation4 + $0x18] sm:$0xff] %v1379_v4 }
 0x328   : > { %1393 = vst [vmem:[#allocation4 + $0x8] sm:$0xff] %v1377_v55 }
 0x332   : > { %v1980_v20 = vpop.f32.mrb[4].mxu1 }
 0x333   : > { %v1382_v27 = vadd.f32 %v1980_v20, %v1366_v11  ;;  %v1217_v7 = vpop.f32.mrb[5].mxu1 }
 0x334   : > { %v1380_v22 = vadd.f32 %v1364_v62, %v1217_v7  ;;  %v1981_v44 = vpop.f32.mrb[6].mxu1 }
 0x335   : > { %1398 = vst [vmem:[#allocation4 + $0x30] sm:$0xff] %v1382_v27  ;;  %v1383_v15 = vadd.f32 %v1981_v44, %v1367_v30  ;;  %v1220_v13 = vpop.f32.mrb[7].mxu1 }
 0x336   : > { %1396 = vst [vmem:[#allocation4 + $0x20] sm:$0xff] %v1380_v22  ;;  %v1381_v39 = vadd.f32 %v1365_v42, %v1220_v13 }
 0x337   : > { %1399 = vst [vmem:[#allocation4 + $0x38] sm:$0xff] %v1383_v15 }
 0x338   : > { %1397 = vst [vmem:[#allocation4 + $0x28] sm:$0xff] %v1381_v39 }
 0x33a   : > { %v1984_v56 = vpop.f32.mrb[8].mxu1 }
 0x33b   : > { %v1386_v12 = vadd.f32 %v1984_v56, %v1370_v53  ;;  %v1233_v46 = vpop.f32.mrb[9].mxu1 }
 0x33c   : > { %v1384_v18 = vadd.f32 %v1368_v61, %v1233_v46  ;;  %v1985_v33 = vpop.f32.mrb[10].mxu1 }
 0x33d   : > { %1402 = vst [vmem:[#allocation4 + $0x50] sm:$0xff] %v1386_v12  ;;  %v1387_v57 = vadd.f32 %v1985_v33, %v1371_v3  ;;  %v1236_v32 = vpop.f32.mrb[11].mxu1 }
 0x33e   : > { %1400 = vst [vmem:[#allocation4 + $0x40] sm:$0xff] %v1384_v18  ;;  %v1385_v59 = vadd.f32 %v1369_v29, %v1236_v32 }
 0x33f   : > { %1403 = vst [vmem:[#allocation4 + $0x58] sm:$0xff] %v1387_v57 }
 0x340   : > { %1401 = vst [vmem:[#allocation4 + $0x48] sm:$0xff] %v1385_v59 }
 0x342   : > { %v1988_v24 = vpop.f32.mrb[12].mxu1 }
 0x343   : > { %v1390_v41 = vadd.f32 %v1988_v24, %v1374_v38  ;;  %v1249_v37 = vpop.f32.mrb[13].mxu1 }
 0x344   : > { %v1388_v25 = vadd.f32 %v1372_v50, %v1249_v37  ;;  %v1989_v26 = vpop.f32.mrb[14].mxu1 }
 0x345   : > { %1406 = vst [vmem:[#allocation4 + $0x70] sm:$0xff] %v1390_v41  ;;  %v1391_v40 = vadd.f32 %v1989_v26, %v1375_v60  ;;  %v1252_v35 = vpop.f32.mrb[15].mxu1 }
 0x346   : > { %1404 = vst [vmem:[#allocation4 + $0x60] sm:$0xff] %v1388_v25  ;;  %v1389_v45 = vadd.f32 %v1373_v63, %v1252_v35 }
 0x347   : > { %1407 = vst [vmem:[#allocation4 + $0x78] sm:$0xff] %v1391_v40 }
 0x348   : > { %1405 = vst [vmem:[#allocation4 + $0x68] sm:$0xff] %v1389_v45 }
 0x349 PF: > { %p1836_p12 = scmp.ne.s32.totalorder %s2196_s12, 2 }
 0x34a   : > { %v1430_v16 = vld [vmem:[#allocation3 + $0x10] sm:$0xff] (!%p1836_p12)  ;;  %v1428_v49 = vld [vmem:[#allocation3] sm:$0xff] (!%p1836_p12)  ;;  %v1431_v31 = vld [vmem:[#allocation3 + $0x18] sm:$0xff] (!%p1836_p12)  ;;  %v2225_v47 = vmov (!%p1836_p12), 0  }
 0x34b   : > { %1427 = sbr.rel (%p1836_p12) target bundleno = 1016 (0x3f8), region = 44  ;;  %2133 = vset.pattern.permute.xlu1 (!%p1836_p12), %v2225_v47  ;;  %2132 = vset.pattern.permute.xlu0 (!%p1836_p12), %v2225_v47  ;;  %2134 = vrcp.f32 (!%p1836_p12), %v1430_v16  ;;  %v1429_v34 = vld [vmem:[#allocation3 + $0x8] sm:$0xff] (!%p1836_p12)  ;;  %v1432_v58 = vld [vmem:[#allocation3 + $0x20] sm:$0xff] (!%p1836_p12)  ;;  %v1435_v8 = vld [vmem:[#allocation3 + $0x38] sm:$0xff] (!%p1836_p12) }
 0x34c   : > { %2136 = vrcp.f32 (!%p1836_p12), %v1428_v49  ;;  %v1433_v0 = vld [vmem:[#allocation3 + $0x28] sm:$0xff] (!%p1836_p12)  ;;  %v1434_v36 = vld [vmem:[#allocation3 + $0x30] sm:$0xff] (!%p1836_p12)  ;;  %v1436_v55 = vld [vmem:[#allocation3 + $0x40] sm:$0xff] (!%p1836_p12) }
 0x34d   : > { %2138 = vrcp.f32 (!%p1836_p12), %v1431_v31  ;;  %v1437_v4 = vld [vmem:[#allocation3 + $0x48] sm:$0xff] (!%p1836_p12)  ;;  %v1439_v14 = vld [vmem:[#allocation3 + $0x58] sm:$0xff] (!%p1836_p12)  ;;  %v1438_v28 = vld [vmem:[#allocation3 + $0x50] sm:$0xff] (!%p1836_p12) }
 0x34e   : > { %2140 = vrcp.f32 (!%p1836_p12), %v1429_v34  ;;  %v1441_v62 = vld [vmem:[#allocation3 + $0x68] sm:$0xff] (!%p1836_p12)  ;;  %v1440_v30 = vld [vmem:[#allocation3 + $0x60] sm:$0xff] (!%p1836_p12)  ;;  %v1443_v7 = vld [vmem:[#allocation3 + $0x78] sm:$0xff] (!%p1836_p12) }
 0x34f   : > { %2142 = vrcp.f32 (!%p1836_p12), %v1433_v0  ;;  %v1442_v22 = vld [vmem:[#allocation3 + $0x70] sm:$0xff] (!%p1836_p12)  ;;  %v1463_v56 = vld [vmem:[#allocation4 + $0x18] sm:$0xff] (!%p1836_p12)  ;;  %v1460_v3 = vld [vmem:[#allocation4] sm:$0xff] (!%p1836_p12) }
 0x350   : > { %2144 = vrcp.f32 (!%p1836_p12), %v1432_v58  ;;  %v1462_v61 = vld [vmem:[#allocation4 + $0x10] sm:$0xff] (!%p1836_p12)  ;;  %v1461_v12 = vld [vmem:[#allocation4 + $0x8] sm:$0xff] (!%p1836_p12)  ;;  %v1464_v59 = vld [vmem:[#allocation4 + $0x20] sm:$0xff] (!%p1836_p12) }
 0x351   : > { %2146 = vrcp.f32 (!%p1836_p12), %v1435_v8  ;;  %v1465_v17 = vld [vmem:[#allocation4 + $0x28] sm:$0xff] (!%p1836_p12)  ;;  %v1467_v50 = vld [vmem:[#allocation4 + $0x38] sm:$0xff] (!%p1836_p12)  ;;  %v1466_v24 = vld [vmem:[#allocation4 + $0x30] sm:$0xff] (!%p1836_p12) }
 0x352   : > { %2148 = vrcp.f32 %v1434_v36  ;;  %v1469_v26 = vld [vmem:[#allocation4 + $0x48] sm:$0xff]  ;;  %v1468_v40 = vld [vmem:[#allocation4 + $0x40] sm:$0xff]  ;;  %v1471_v47 = vld [vmem:[#allocation4 + $0x58] sm:$0xff] }
 0x353   : > { %2150 = vrcp.f32 %v1437_v4  ;;  %v1470_v34 = vld [vmem:[#allocation4 + $0x50] sm:$0xff]  ;;  %v1472_v4 = vld [vmem:[#allocation4 + $0x60] sm:$0xff] }
 0x354   : > { %2152 = vrcp.f32 %v1436_v55 }
 0x355   : > { %v2135_v54 = vpop.eup %2134  ;;  %2154 = vrcp.f32 %v1439_v14 }
 0x356   : > { %v2137_v1 = vpop.eup %2136  ;;  %1488 = vperm.xlu1 %2133, %v2135_v54   ;;  %2156 = vrcp.f32 %v1438_v28  ;;  %v1475_v28 = vld [vmem:[#allocation4 + $0x78] sm:$0xff] }
 0x357   : > { %v2139_v21 = vpop.eup %2138  ;;  %1478 = vperm.xlu0 %2132, %v2137_v1   ;;  %2158 = vrcp.f32 %v1441_v62  ;;  %v1473_v1 = vld [vmem:[#allocation4 + $0x68] sm:$0xff] }
 0x358   : > { %v2141_v5 = vpop.eup %2140  ;;  %2160 = vrcp.f32 %v1440_v30 }
 0x359   : > { %v2143_v6 = vpop.eup %2142  ;;  %2162 = vrcp.f32 %v1443_v7 }
 0x35a   : > { %1493 = vperm.xlu1 %2133, %v2139_v21   ;;  %v2145_v11 = vpop.eup %2144  ;;  %2164 = vrcp.f32 %v1442_v22 }
 0x35b   : > { %1483 = vperm.xlu0 %2132, %v2141_v5   ;;  %v2147_v20 = vpop.eup %2146 }
 0x35c   : > { %v2149_v27 = vpop.eup %2148 }
 0x35d   : > { %v2151_v42 = vpop.eup %2150 }
 0x35e   : > { %1503 = vperm.xlu1 %2133, %v2143_v6   ;;  %v2153_v44 = vpop.eup %2152 }
 0x35f   : > { %1498 = vperm.xlu0 %2132, %v2145_v11   ;;  %v2155_v15 = vpop.eup %2154  ;;  %v1474_v11 = vld [vmem:[#allocation4 + $0x70] sm:$0xff] }
 0x360   : > { %v2157_v13 = vpop.eup %2156 }
 0x361   : > { %v2159_v48 = vpop.eup %2158 }
 0x362   : > { %1513 = vperm.xlu1 %2133, %v2147_v20   ;;  %v2161_v39 = vpop.eup %2160 }
 0x363   : > { %1508 = vperm.xlu0 %2132, %v2149_v27   ;;  %v2163_v9 = vpop.eup %2162 }
 0x364   : > { %v2165_v2 = vpop.eup %2164 }
 0x366   : > { %1523 = vperm.xlu1 %2133, %v2151_v42  }
 0x367   : > { %1518 = vperm.xlu0 %2132, %v2153_v44  }
 0x36a   : > { %1533 = vperm.xlu1 %2133, %v2155_v15  }
 0x36b   : > { %1528 = vperm.xlu0 %2132, %v2157_v13  }
 0x36e   : > { %1543 = vperm.xlu1 %2133, %v2159_v48  }
 0x36f   : > { %1538 = vperm.xlu0 %2132, %v2161_v39  }
 0x372   : > { %1553 = vperm.xlu1 %2133, %v2163_v9  }
 0x373   : > { %1548 = vperm.xlu0 %2132, %v2165_v2  }
 0x3d5   : > { %v1489_v51 = vpop.permute.xlu1 %1488 }
 0x3d6   : > { %v1479_v53 = vpop.permute.xlu0 %1478  ;;  %v1558_v29 = vmul.f32 %v1489_v51, %v1462_v61 }
 0x3d7   : > { %v1556_v57 = vmul.f32 %v1479_v53, %v1460_v3 }
 0x3d9   : > { %v1494_v46 = vpop.permute.xlu1 %1493 }
 0x3da   : > { %v1559_v18 = vmul.f32 %v1494_v46, %v1463_v56  ;;  %v1484_v33 = vpop.permute.xlu0 %1483 }
 0x3db   : > { %v1557_v32 = vmul.f32 %v1484_v33, %v1461_v12 }
 0x3dc   : > { %v1879_v52 = vpack.c.bf16 %v1559_v18, %v1558_v29 }
 0x3dd   : > { %v1874_v19 = vpack.c.bf16 %v1557_v32, %v1556_v57  ;;  %v1504_v43 = vpop.permute.xlu1 %1503 }
 0x3de   : > { %1911 = vst [vmem:[%s2306_s7 + $0x8] sm:$0xff] %v1879_v52   ;;  %v1561_v10 = vmul.f32 %v1504_v43, %v1465_v17  ;;  %v1499_v23 = vpop.permute.xlu0 %1498 }
 0x3df   : > { %1875 = vst [vmem:[%s2306_s7] sm:$0xff] %v1874_v19   ;;  %v1560_v38 = vmul.f32 %v1499_v23, %v1464_v59 }
 0x3e1   : > { %v1884_v60 = vpack.c.bf16 %v1561_v10, %v1560_v38  ;;  %v1514_v41 = vpop.permute.xlu1 %1513 }
 0x3e2   : > { %v1563_v37 = vmul.f32 %v1514_v41, %v1467_v50  ;;  %v1509_v63 = vpop.permute.xlu0 %1508 }
 0x3e3   : > { %1912 = vst [vmem:[%s2306_s7 + $0x10] sm:$0xff] %v1884_v60   ;;  %v1562_v25 = vmul.f32 %v1509_v63, %v1466_v24 }
 0x3e5   : > { %v1889_v35 = vpack.c.bf16 %v1563_v37, %v1562_v25  ;;  %v1524_v45 = vpop.permute.xlu1 %1523 }
 0x3e6   : > { %v1565_v16 = vmul.f32 %v1524_v45, %v1469_v26  ;;  %v1519_v49 = vpop.permute.xlu0 %1518 }
 0x3e7   : > { %1913 = vst [vmem:[%s2306_s7 + $0x18] sm:$0xff] %v1889_v35   ;;  %v1564_v31 = vmul.f32 %v1519_v49, %v1468_v40 }
 0x3e9   : > { %v1894_v0 = vpack.c.bf16 %v1565_v16, %v1564_v31  ;;  %v1534_v58 = vpop.permute.xlu1 %1533 }
 0x3ea   : > { %v1567_v8 = vmul.f32 %v1534_v58, %v1471_v47  ;;  %v1529_v36 = vpop.permute.xlu0 %1528 }
 0x3eb   : > { %1914 = vst [vmem:[%s2306_s7 + $0x20] sm:$0xff] %v1894_v0   ;;  %v1566_v54 = vmul.f32 %v1529_v36, %v1470_v34 }
 0x3ed   : > { %v1899_v21 = vpack.c.bf16 %v1567_v8, %v1566_v54  ;;  %v1544_v55 = vpop.permute.xlu1 %1543 }
 0x3ee   : > { %v1569_v5 = vmul.f32 %v1544_v55, %v1473_v1  ;;  %v1539_v14 = vpop.permute.xlu0 %1538 }
 0x3ef   : > { %1915 = vst [vmem:[%s2306_s7 + $0x28] sm:$0xff] %v1899_v21   ;;  %v1568_v6 = vmul.f32 %v1539_v14, %v1472_v4 }
 0x3f1   : > { %v1904_v62 = vpack.c.bf16 %v1569_v5, %v1568_v6  ;;  %v1554_v20 = vpop.permute.xlu1 %1553 }
 0x3f2   : > { %v1571_v30 = vmul.f32 %v1554_v20, %v1475_v28  ;;  %v1549_v27 = vpop.permute.xlu0 %1548 }
 0x3f3   : > { %1916 = vst [vmem:[%s2306_s7 + $0x30] sm:$0xff] %v1904_v62   ;;  %v1570_v7 = vmul.f32 %v1549_v27, %v1474_v11 }
 0x3f5   : > { %v1909_v42 = vpack.c.bf16 %v1571_v30, %v1570_v7 }
 0x3f7   : > { %1917 = vst [vmem:[%s2306_s7 + $0x38] sm:$0xff] %v1909_v42  }
 0x3f8 PF: > { %s13_s18 = sadd.s32 1, %s2220_s18   ;;  %s2900_s12 = smov %s2208_s15 }
 0x3f9   : > { %p10_p13 = scmp.ge.s32.totalorder %s13_s18, 14   ;;  %s2901_s13 = smov %s2212_s16 }
 0x3fa   : > { %s2902_s14 = smov %s2216_s17  ;;  %s2903_s15 = smov %s2907_s19 }
 0x3fb   : > { %s2904_s16 = smov %s2911_s20  ;;  %s2905_s17 = smov %s2915_s21 }
 0x3fc   :  { %12 = sbr.rel (!%p10_p13) target bundleno = 4 (0x4), region = 80 }

// kernel: sliding_gqa_forward.3
= control target key start
LH: loop header
LB: loop body
LE: loop exit
PB: predicated region body
PF: predicated region fallthrough
CT: control target
= control target key end

     0   :  { %13 = vsyncpa [#allocation4], 0  ;;  %s3601_s24 = smov 0   ;;  %s3603_s25 = smov 0   ;;  %s4641_s0 = inlined_call_operand.vmem [shape: bf16[512,128], index: 0, kind: input, shape index: {}]   ;;  %s4642_s1 = inlined_call_operand.hbm [shape: bf16[128,384], index: 1, kind: input, shape index: {}]   ;;  %s4643_s2 = inlined_call_operand.vmem [shape: f32[256,128], index: 2, kind: input, shape index: {}]   ;;  %s4644_s3 = inlined_call_operand.vmem [shape: f32[256,128], index: 3, kind: input, shape index: {}]   ;;  %s4645_s4 = inlined_call_operand.vmem [shape: f32[256,128], index: 4, kind: input, shape index: {}]   ;;  %s4646_s5 = inlined_call_operand.vmem [shape: bf16[512,128], index: 5, kind: output, shape index: {0}]   ;;  %s4647_s6 = inlined_call_operand.vmem [shape: bf16[512,128], index: 6, kind: output, shape index: {1}]   ;;  %s4648_s7 = inlined_call_operand.vmem [shape: bf16[512,128], index: 7, kind: output, shape index: {2}]  }
   0x1   :  { %s3605_s26 = smov 0  }
   0x2 LB: > { %s2789_s27 = sadd.s32 4294967295, %s3553_s26   ;;  %s31_s28 = sadd.s32 1, %s3549_s25  ;;  %s3553_s26 = sphi %s3605_s26, %s19_s26   ;;  %s3549_s25 = sphi %s3603_s25, %s4758_s25   ;;  %s3545_s24 = sphi %s3601_s24, %s4757_s24  }
   0x3   : > { %p33_p0 = scmp.ge.s32.totalorder %s31_s28, 2  ;;  %p2791_p1 = scmp.ge.s32.totalorder %s3553_s26, 1 }
   0x4   : > { %p231_p2 = scmp.lt.s32.totalorder %s3553_s26, 3  ;;  %p3626_p4 = scmp.eq.s32.totalorder %s2789_s27, 0 }
   0x5   : > { %s4760_s28 = smov (%p33_p0, %s31_s28), 0  ;;  %s3555_s8 = smov [#allocation3]  }
   0x6   : > { %p3622_p3 = pnand %p2791_p1, %p231_p2  ;;  %s247_s9 = sshll.u32 %s3555_s8, 4  ;;  %s248_s9 = int_to_ptr.vmem [resolvable:$true] %s247_s9 }
   0x7   : > { %s4685_s30 = scalar_select %p3626_p4, 1, 0 }
   0x8   : > { %s4684_s29 = scalar_select %p3622_p3, 1, 0 }
   0x9   : > { %p3415_p5 = pneg %p3622_p3  ;;  %s3499_s13 = scalar_lea.hbm %s4642_s1, 3072 }
   0xa   : > { %p3500_p7 = scmp.ne.s32.totalorder %s4642_s1, %s3499_s13  ;;  %p3506_p11 = scmp.lt.u32.totalorder %s3499_s13, %s4642_s1 }
   0xb   : > { %p3634_p6 = pnand %p3626_p4, %p3415_p5 }
   0xd   : > { %p3501_p8 = pneg %p3634_p6 }
   0xf   : > { %p3502_p9 = pnand %p3501_p8, %p3500_p7 }
  0x11   : > { %p3503_p10 = pneg %p3502_p9 }
  0x13   : > { %p3508_p12 = pnand %p3506_p11, %p3503_p10 }
  0x15   : > { %3511 = shalt.err (!%p3508_p12)
}
  0x16   : > { %s3512_s18 = scalar_lea.vmem %s248_s9, 3072  ;;  %p3520_p2 = scmp.lt.s32.totalorder %s248_s9, %s248_s9 }
  0x17   : > { %p3513_p13 = scmp.ne.s32.totalorder %s248_s9, %s3512_s18  ;;  %p3521_p5 = scmp.lt.s32.totalorder %s3512_s18, %s3512_s18 }
  0x19   : > { %p3515_p0 = pnand %p3513_p13, %p3501_p8  ;;  %p3522_p4 = por %p3521_p5, %p3520_p2 }
  0x1b   : > { %p3516_p1 = pneg %p3515_p0 }
  0x1d   : > { %p3523_p3 = pnand %p3522_p4, %p3516_p1 }
  0x1f   : > { %3526 = shalt.err (!%p3523_p3)
}
  0x20   : > { %s3556_s19 = smov 192   ;;  %s3557_s20 = smov 12  }
  0x21   : > { %3418 = dma.hbm_to_vmem [thread:$0]  (!%p3634_p6), %s4642_s1, 3072, %s248_s9, [#allocation4], %s3556_s19, %s3556_s19, %s3557_s20  }
  0x22   : > { %p4687_p7 = scmp.ne.s32.totalorder %s4684_s29, 0 }
  0x24   : > { %284 = sbr.rel (%p4687_p7) target bundleno = 668 (0x29c), region = 40 }
  0x2b   : > { %p4688_p9 = scmp.ne.s32.totalorder %s4685_s30, 0 }
  0x2d   : > { %3540 = dma.done.wait (%p4688_p9), [#allocation4], 3072  }
  0x2e   : > { %3542 = vsyncadd (%p4688_p9), [#allocation4], 4294964224  ;;  %v3558_v0 = vmov 0   ;;  %s2796_s23 = sshll.u32 %s3545_s24, 5  ;;  %v3451_v1 = vld [vmem:[#allocation3 + $0x4] ss:$12 sps:$4 sm:$0xff]  }
  0x2f   : > { %874 = vmatprep.mubr.bf16.mxu0 %v3558_v0  ;;  %994 = vmatprep.mubr.bf16.mxu1 %v3558_v0  ;;  %p330_p3 = scmp.lt.s32.totalorder %s2796_s23, 63  ;;  %v3453_v2 = vld [vmem:[#allocation3] ss:$12 sps:$4 sm:$0xff]   ;;  %v3454_v3 = vld [vmem:[#allocation3 + $0x1c] ss:$12 sps:$4 sm:$0xff]   ;;  %s3559_s8 = smov 112  }
  0x30   : > { %842 = vmatprep.subr.bf16.mxu0 %v3451_v1  ;;  %3395 = vmatprep.subr.bf16.mxu1 %v3451_v1  ;;  %v3456_v4 = vld [vmem:[#allocation3 + $0x18] ss:$12 sps:$4 sm:$0xff]   ;;  %v3457_v5 = vld [vmem:[#allocation3 + $0x34] ss:$12 sps:$4 sm:$0xff]   ;;  %v3459_v6 = vld [vmem:[#allocation3 + $0x30] ss:$12 sps:$4 sm:$0xff]  }
  0x31   : > { %s4762_s23 = smov (!%p330_p3, %s2796_s23), 63  ;;  %843 = vmatpush1.bf16.msra.mxu0 %v3453_v2  ;;  %3403 = vmatpush1.bf16.msra.mxu1 %v3453_v2  ;;  %v3460_v7 = vld [vmem:[#allocation3 + $0x4c] ss:$12 sps:$4 sm:$0xff]   ;;  %v3462_v8 = vld [vmem:[#allocation3 + $0x48] ss:$12 sps:$4 sm:$0xff]   ;;  %s3560_s9 = smov 16  }
  0x32   : > { %844 = vmatprep.subr.bf16.mxu0 %v3454_v3  ;;  %3396 = vmatprep.subr.bf16.mxu1 %v3454_v3  ;;  %s3663_s27 = sshll.u32 %s4762_s23, 2  ;;  %v3463_v9 = vld [vmem:[#allocation3 + $0x64] ss:$12 sps:$4 sm:$0xff]   ;;  %v3465_v10 = vld [vmem:[#allocation3 + $0x60] ss:$12 sps:$4 sm:$0xff]  }
  0x33   : > { %s3669_s30 = scalar_lea.vmem %s4641_s0, %s3663_s27  ;;  %v3466_v11 = vld [vmem:[#allocation3 + $0x7c] ss:$12 sps:$4 sm:$0xff]   ;;  %v3468_v12 = vld [vmem:[#allocation3 + $0x78] ss:$12 sps:$4 sm:$0xff]   ;;  %v3469_v13 = vld [vmem:[#allocation3 + $0x94] ss:$12 sps:$4 sm:$0xff]   ;;  %s4027_s11 = scalar_lea.vmem %s4646_s5, %s3663_s27 }
  0x34   : > { %v3471_v14 = vld [vmem:[#allocation3 + $0x90] ss:$12 sps:$4 sm:$0xff]   ;;  %v3472_v15 = vld [vmem:[#allocation3 + $0xac] ss:$12 sps:$4 sm:$0xff]   ;;  %v3474_v16 = vld [vmem:[#allocation3 + $0xa8] ss:$12 sps:$4 sm:$0xff]   ;;  %s4228_s29 = scalar_lea.vmem %s4648_s7, %s3663_s27 }
  0x35   : > { %845 = vmatpush1.bf16.msra.mxu0 %v3456_v4  ;;  %3404 = vmatpush1.bf16.msra.mxu1 %v3456_v4  ;;  %v3475_v17 = vld [vmem:[%s3669_s30] sm:$0xff]   ;;  %v3679_v19 = vld [vmem:[%s3669_s30 + $0x8] sm:$0xff]   ;;  %v3479_v21 = vld [vmem:[%s3669_s30 + $0x10] sm:$0xff]  }
  0x36   : > { %846 = vmatprep.subr.bf16.mxu0 %v3457_v5  ;;  %3397 = vmatprep.subr.bf16.mxu1 %v3457_v5  ;;  %v3673_v18 = vld [vmem:[%s3669_s30 + $0x60] sm:$0xff]   ;;  %v3682_v20 = vld [vmem:[%s3669_s30 + $0x68] sm:$0xff]   ;;  %v3690_v22 = vld [vmem:[%s3669_s30 + $0x70] sm:$0xff]  }
  0x37   : > { %v3481_v23 = vld [vmem:[%s3669_s30 + $0x18] sm:$0xff]   ;;  %v3483_v25 = vld [vmem:[%s3669_s30 + $0x20] sm:$0xff]   ;;  %v3484_v26 = vld [vmem:[%s3669_s30 + $0x28] sm:$0xff]  }
  0x38   : > { %v3697_v24 = vld [vmem:[%s3669_s30 + $0x78] sm:$0xff]   ;;  %v3485_v27 = vld [vmem:[%s3669_s30 + $0x30] sm:$0xff]   ;;  %v3487_v29 = vld [vmem:[%s3669_s30 + $0x40] sm:$0xff]  }
  0x39   : > { %847 = vmatpush1.bf16.msra.mxu0 %v3459_v6  ;;  %3405 = vmatpush1.bf16.msra.mxu1 %v3459_v6  ;;  %v3486_v28 = vld [vmem:[%s3669_s30 + $0x38] sm:$0xff]   ;;  %v3488_v30 = vld [vmem:[%s3669_s30 + $0x48] sm:$0xff]   ;;  %v3489_v31 = vld [vmem:[%s3669_s30 + $0x50] sm:$0xff]  }
  0x3a   : > { %848 = vmatprep.subr.bf16.mxu0 %v3460_v7  ;;  %3398 = vmatprep.subr.bf16.mxu1 %v3460_v7  ;;  %v3490_v32 = vld [vmem:[%s3669_s30 + $0x58] sm:$0xff]   ;;  %v3491_v33 = vld [vmem:[#allocation3 + $0x8] ss:$12 sps:$4 sm:$0xff]   ;;  %v3492_v34 = vld [vmem:[#allocation3 + $0x20] ss:$12 sps:$4 sm:$0xff]   ;;  %s4068_s30 = scalar_lea.vmem %s4647_s6, %s3663_s27 }
  0x3b   : > { %v3493_v35 = vld [vmem:[#allocation3 + $0x38] ss:$12 sps:$4 sm:$0xff]   ;;  %v3494_v36 = vld [vmem:[#allocation3 + $0x50] ss:$12 sps:$4 sm:$0xff]   ;;  %v3495_v37 = vld [vmem:[#allocation3 + $0x68] ss:$12 sps:$4 sm:$0xff]  }
  0x3c   : > { %v3496_v38 = vld [vmem:[#allocation3 + $0x80] ss:$12 sps:$4 sm:$0xff]   ;;  %v3497_v39 = vld [vmem:[#allocation3 + $0x98] ss:$12 sps:$4 sm:$0xff]   ;;  %v3498_v40 = vld [vmem:[#allocation3 + $0xb0] ss:$12 sps:$4 sm:$0xff]  }
  0x3d   : > { %849 = vmatpush1.bf16.msra.mxu0 %v3462_v8  ;;  %3406 = vmatpush1.bf16.msra.mxu1 %v3462_v8  ;;  %v3795_v1 = vld [vmem:[%s4643_s2 + $0xf0] sm:$0xff]  ;;  %v3810_v6 = vld [vmem:[%s4643_s2 + $0xf8] sm:$0xff] }
  0x3e   : > { %850 = vmatprep.subr.bf16.mxu0 %v3463_v9  ;;  %3399 = vmatprep.subr.bf16.mxu1 %v3463_v9  ;;  %4694 = vst [vmem:[#allocation11_spill] sm:$0xff] %v3795_v1  ;;  %4699 = vst [vmem:[#allocation16_spill] sm:$0xff] %v3810_v6 }
  0x41   : > { %851 = vmatpush1.bf16.msra.mxu0 %v3465_v10  ;;  %3407 = vmatpush1.bf16.msra.mxu1 %v3465_v10 }
  0x42   : > { %852 = vmatprep.subr.bf16.mxu0 %v3466_v11  ;;  %3400 = vmatprep.subr.bf16.mxu1 %v3466_v11 }
  0x45   : > { %853 = vmatpush1.bf16.msra.mxu0 %v3468_v12  ;;  %3408 = vmatpush1.bf16.msra.mxu1 %v3468_v12 }
  0x46   : > { %854 = vmatprep.subr.bf16.mxu0 %v3469_v13  ;;  %3401 = vmatprep.subr.bf16.mxu1 %v3469_v13 }
  0x49   : > { %855 = vmatpush1.bf16.msra.mxu0 %v3471_v14  ;;  %3409 = vmatpush1.bf16.msra.mxu1 %v3471_v14 }
  0x4a   : > { %856 = vmatprep.subr.bf16.mxu0 %v3472_v15  ;;  %3402 = vmatprep.subr.bf16.mxu1 %v3472_v15 }
  0x4d   : > { %857 = vmatpush1.bf16.msra.mxu0 %v3474_v16  ;;  %3410 = vmatpush1.bf16.msra.mxu1 %v3474_v16 }
  0x4e   : > { %3347 = vmatprep.subr.bf16.mxu1 %v3491_v33 }
  0x50   : > { %875 = vmatmul.mubr.bf16.vlgmr.msra.gmra.mrb[0].mxu0 %v3475_v17  ;;  %995 = vmatmul.mubr.bf16.vlgmr.msra.gmra.mrb[0].mxu1 %v3673_v18 }
  0x51   : > { %884 = vmatprep.mubr.bf16.mxu0 %v3558_v0  ;;  %1004 = vmatprep.mubr.bf16.mxu1 %v3558_v0 }
  0x52   : > { %3348 = vmatpush3.bf16.msra.mxu1 %v3491_v33 }
  0x53   : > { %3349 = vmatprep.subr.bf16.mxu1 %v3492_v34 }
  0x56   : > { %3350 = vmatpush3.bf16.msra.mxu1 %v3492_v34 }
  0x57   : > { %3351 = vmatprep.subr.bf16.mxu1 %v3493_v35 }
  0x58   : > { %885 = vmatmul.mubr.bf16.gmra.mrb[4].mxu0 %v3679_v19  ;;  %1005 = vmatmul.mubr.bf16.gmra.mrb[4].mxu1 %v3682_v20 }
  0x59   : > { %894 = vmatprep.mubr.bf16.mxu0 %v3558_v0  ;;  %1014 = vmatprep.mubr.bf16.mxu1 %v3558_v0 }
  0x5a   : > { %3352 = vmatpush3.bf16.msra.mxu1 %v3493_v35 }
  0x5b   : > { %3353 = vmatprep.subr.bf16.mxu1 %v3494_v36 }
  0x5e   : > { %3354 = vmatpush3.bf16.msra.mxu1 %v3494_v36 }
  0x5f   : > { %3355 = vmatprep.subr.bf16.mxu1 %v3495_v37 }
  0x60   : > { %895 = vmatmul.mubr.bf16.gmra.mrb[8].mxu0 %v3479_v21  ;;  %1015 = vmatmul.mubr.bf16.gmra.mrb[8].mxu1 %v3690_v22 }
  0x61   : > { %904 = vmatprep.mubr.bf16.mxu0 %v3558_v0  ;;  %1024 = vmatprep.mubr.bf16.mxu1 %v3558_v0 }
  0x62   : > { %3356 = vmatpush3.bf16.msra.mxu1 %v3495_v37 }
  0x63   : > { %3357 = vmatprep.subr.bf16.mxu1 %v3496_v38 }
  0x66   : > { %3358 = vmatpush3.bf16.msra.mxu1 %v3496_v38 }
  0x67   : > { %3359 = vmatprep.subr.bf16.mxu1 %v3497_v39 }
  0x68   : > { %905 = vmatmul.mubr.bf16.gmra.mrb[12].mxu0 %v3481_v23  ;;  %1025 = vmatmul.mubr.bf16.gmra.mrb[12].mxu1 %v3697_v24 }
  0x69   : > { %914 = vmatprep.mubr.bf16.mxu0 %v3558_v0  ;;  %3363 = vmatprep.mubr.bf16.mxu1 %v3475_v17 }
  0x6a   : > { %3360 = vmatpush3.bf16.msra.mxu1 %v3497_v39 }
  0x6b   : > { %3361 = vmatprep.subr.bf16.mxu1 %v3498_v40 }
  0x6e   : > { %3362 = vmatpush3.bf16.msra.mxu1 %v3498_v40 }
  0x70   : > { %915 = vmatmul.mubr.bf16.gmra.mrb[16].mxu0 %v3483_v25 }
  0x71   : > { %924 = vmatprep.mubr.bf16.mxu0 %v3558_v0  ;;  %3364 = vmatmul.mubr.bf16.vlgmr.msra.gmra.mrb[16].mxu1 %v3679_v19 }
  0x72   : > { %3367 = vmatprep.mubr.bf16.mxu1 %v3479_v21 }
  0x78   : > { %925 = vmatmul.mubr.bf16.gmra.mrb[20].mxu0 %v3484_v26 }
  0x79   : > { %934 = vmatprep.mubr.bf16.mxu0 %v3558_v0  ;;  %3368 = vmatmul.mubr.bf16.gmra.mrb[20].mxu1 %v3481_v23 }
  0x7a   : > { %3371 = vmatprep.mubr.bf16.mxu1 %v3483_v25 }
  0x80   : > { %935 = vmatmul.mubr.bf16.gmra.mrb[24].mxu0 %v3485_v27 }
  0x81   : > { %944 = vmatprep.mubr.bf16.mxu0 %v3558_v0  ;;  %3372 = vmatmul.mubr.bf16.gmra.mrb[24].mxu1 %v3484_v26 }
  0x82   : > { %3375 = vmatprep.mubr.bf16.mxu1 %v3485_v27 }
  0x88   : > { %945 = vmatmul.mubr.bf16.gmra.mrb[28].mxu0 %v3486_v28 }
  0x89   : > { %954 = vmatprep.mubr.bf16.mxu0 %v3558_v0  ;;  %3376 = vmatmul.mubr.bf16.gmra.mrb[28].mxu1 %v3486_v28 }
  0x8a   : > { %3379 = vmatprep.mubr.bf16.mxu1 %v3487_v29 }
  0x90   : > { %955 = vmatmul.mubr.bf16.gmra.mrb[32].mxu0 %v3487_v29 }
  0x91   : > { %964 = vmatprep.mubr.bf16.mxu0 %v3558_v0  ;;  %3380 = vmatmul.mubr.bf16.gmra.mrb[32].mxu1 %v3488_v30 }
  0x92   : > { %3383 = vmatprep.mubr.bf16.mxu1 %v3489_v31 }
  0x98   : > { %965 = vmatmul.mubr.bf16.gmra.mrb[36].mxu0 %v3488_v30 }
  0x99   : > { %974 = vmatprep.mubr.bf16.mxu0 %v3558_v0  ;;  %3384 = vmatmul.mubr.bf16.gmra.mrb[36].mxu1 %v3490_v32 }
  0x9a   : > { %3387 = vmatprep.mubr.bf16.mxu1 %v3673_v18 }
  0xa0   : > { %975 = vmatmul.mubr.bf16.gmra.mrb[40].mxu0 %v3489_v31 }
  0xa1   : > { %984 = vmatprep.mubr.bf16.mxu0 %v3558_v0  ;;  %3388 = vmatmul.mubr.bf16.gmra.mrb[40].mxu1 %v3682_v20 }
  0xa2   : > { %3391 = vmatprep.mubr.bf16.mxu1 %v3690_v22 }
  0xa8   : > { %985 = vmatmul.mubr.bf16.gmra.mrb[44].mxu0 %v3490_v32 }
  0xa9   : > { %3392 = vmatmul.mubr.bf16.gmra.mrb[44].mxu1 %v3697_v24 }
 0x123   : > { %v3717_v41 = vpop.f32.mrb[0].mxu0  ;;  %v3719_v42 = vpop.f32.mrb[0].mxu1 }
 0x124   : > { %v3721_v43 = vpop.f32.mrb[1].mxu1  ;;  %1519 = vrot.lane.b32.xlu0 %v3717_v41, %s3559_s8  ;;  %v3725_v44 = vpop.f32.mrb[1].mxu0 }
 0x125   : > { %v3727_v45 = vpop.f32.mrb[2].mxu0  ;;  %v3729_v46 = vpop.f32.mrb[2].mxu1 }
 0x126   : > { %1569 = vrot.lane.b32.xlu1 %v3729_v46, %s3559_s8  ;;  %v3733_v47 = vpop.f32.mrb[3].mxu0  ;;  %v3735_v48 = vpop.f32.mrb[3].mxu1 }
 0x128   : > { %1567 = vrot.lane.b32.xlu0 %v3719_v42, %s3559_s8 }
 0x12a   : > { %1585 = vrot.lane.b32.xlu1 %v3727_v45, %s3560_s9 }
 0x12b   : > { %v3741_v49 = vpop.f32.mrb[4].mxu0  ;;  %v3743_v50 = vpop.f32.mrb[4].mxu1 }
 0x12c   : > { %1583 = vrot.lane.b32.xlu0 %v3717_v41, %s3560_s9  ;;  %v3747_v51 = vpop.f32.mrb[5].mxu0  ;;  %v3749_v52 = vpop.f32.mrb[5].mxu1 }
 0x12d   : > { %v3751_v53 = vpop.f32.mrb[6].mxu0  ;;  %v3753_v54 = vpop.f32.mrb[6].mxu1 }
 0x12e   : > { %1633 = vrot.lane.b32.xlu1 %v3729_v46, %s3560_s9  ;;  %v3757_v55 = vpop.f32.mrb[7].mxu0  ;;  %v3759_v56 = vpop.f32.mrb[7].mxu1 }
 0x130   : > { %1631 = vrot.lane.b32.xlu0 %v3719_v42, %s3560_s9 }
 0x132   : > { %2001 = vrot.lane.b32.xlu1 %v3733_v47, %s3559_s8 }
 0x133   : > { %v3766_v57 = vpop.f32.mrb[8].mxu0  ;;  %v3768_v58 = vpop.f32.mrb[8].mxu1 }
 0x134   : > { %1999 = vrot.lane.b32.xlu0 %v3725_v44, %s3559_s8  ;;  %v3772_v59 = vpop.f32.mrb[9].mxu0  ;;  %v3774_v60 = vpop.f32.mrb[9].mxu1 }
 0x135   : > { %4689 = vst [vmem:[#allocation6_spill] sm:$0xff] %v3772_v59  ;;  %4690 = vst [vmem:[#allocation7_spill] sm:$0xff] %v3774_v60  ;;  %v3776_v61 = vpop.f32.mrb[10].mxu0  ;;  %v3778_v62 = vpop.f32.mrb[10].mxu1 }
 0x136   : > { %4691 = vst [vmem:[#allocation8_spill] sm:$0xff] %v3778_v62  ;;  %2049 = vrot.lane.b32.xlu1 %v3735_v48, %s3559_s8  ;;  %v3782_v63 = vpop.f32.mrb[11].mxu0  ;;  %v3784_v0 = vpop.f32.mrb[11].mxu1 }
 0x137   : > { %4692 = vst [vmem:[#allocation9_spill] sm:$0xff] %v3782_v63  ;;  %4693 = vst [vmem:[#allocation10_spill] sm:$0xff] %v3784_v0 }
 0x138   : > { %2047 = vrot.lane.b32.xlu0 %v3721_v43, %s3559_s8 }
 0x13a   : > { %2065 = vrot.lane.b32.xlu1 %v3733_v47, %s3560_s9 }
 0x13b   : > { %v3797_v2 = vpop.f32.mrb[12].mxu0  ;;  %v3799_v3 = vpop.f32.mrb[12].mxu1 }
 0x13c   : > { %4695 = vst [vmem:[#allocation12_spill] sm:$0xff] %v3797_v2  ;;  %4696 = vst [vmem:[#allocation13_spill] sm:$0xff] %v3799_v3  ;;  %2063 = vrot.lane.b32.xlu0 %v3725_v44, %s3560_s9  ;;  %v3803_v4 = vpop.f32.mrb[13].mxu0  ;;  %v3805_v5 = vpop.f32.mrb[13].mxu1 }
 0x13d   : > { %4697 = vst [vmem:[#allocation14_spill] sm:$0xff] %v3803_v4  ;;  %4698 = vst [vmem:[#allocation15_spill] sm:$0xff] %v3805_v5  ;;  %v3812_v7 = vpop.f32.mrb[14].mxu0  ;;  %v3816_v8 = vmul.f32 %v3795_v1, %v3805_v5  ;;  %v3818_v9 = vpop.f32.mrb[14].mxu1  ;;  %v1480_v1 = vld [vmem:[%s4645_s4 + $0xc8] sm:$0xff] }
 0x13e   : > { %4700 = vst [vmem:[#allocation17_spill] sm:$0xff] %v3812_v7  ;;  %4702 = vst [vmem:[#allocation19_spill] sm:$0xff] %v3818_v9  ;;  %2113 = vrot.lane.b32.xlu1 %v3735_v48, %s3560_s9  ;;  %v3822_v10 = vpop.f32.mrb[15].mxu0  ;;  %v3824_v11 = vpop.f32.mrb[15].mxu1 }
 0x13f   : > { %4701 = vst [vmem:[#allocation18_spill] sm:$0xff] %v3816_v8  ;;  %4703 = vst [vmem:[#allocation20_spill] sm:$0xff] %v3822_v10  ;;  %v3828_v12 = vmul.f32 %v3810_v6, %v3824_v11 }
 0x140   : > { %4704 = vst [vmem:[#allocation21_spill] sm:$0xff] %v3824_v11  ;;  %2111 = vrot.lane.b32.xlu0 %v3721_v43, %s3560_s9 }
 0x141   : > { %4705 = vst [vmem:[#allocation22_spill] sm:$0xff] %v3828_v12 }
 0x142   : > { %1523 = vrot.lane.b32.xlu1 %v3741_v49, %s3559_s8 }
 0x143   : > { %v3835_v13 = vpop.f32.mrb[16].mxu0 }
 0x144   : > { %4706 = vst [vmem:[#allocation23_spill] sm:$0xff] %v3835_v13  ;;  %1521 = vrot.lane.b32.xlu0 %v3727_v45, %s3559_s8  ;;  %v3839_v14 = vpop.f32.mrb[17].mxu0 }
 0x145   : > { %4707 = vst [vmem:[#allocation24_spill] sm:$0xff] %v3839_v14  ;;  %v3841_v15 = vpop.f32.mrb[18].mxu0 }
 0x146   : > { %4708 = vst [vmem:[#allocation25_spill] sm:$0xff] %v3841_v15  ;;  %1525 = vrot.lane.b32.xlu1 %v3751_v53, %s3559_s8  ;;  %v3845_v16 = vpop.f32.mrb[19].mxu0 }
 0x148   : > { %1571 = vrot.lane.b32.xlu0 %v3743_v50, %s3559_s8 }
 0x14a   : > { %1573 = vrot.lane.b32.xlu1 %v3753_v54, %s3559_s8 }
 0x14b   : > { %v3851_v17 = vpop.f32.mrb[20].mxu0 }
 0x14c   : > { %1587 = vrot.lane.b32.xlu0 %v3741_v49, %s3560_s9  ;;  %v3855_v18 = vpop.f32.mrb[21].mxu0 }
 0x14d   : > { %v3857_v19 = vpop.f32.mrb[22].mxu0 }
 0x14e   : > { %1589 = vrot.lane.b32.xlu1 %v3751_v53, %s3560_s9  ;;  %v3861_v20 = vpop.f32.mrb[23].mxu0 }
 0x150   : > { %1635 = vrot.lane.b32.xlu0 %v3743_v50, %s3560_s9 }
 0x152   : > { %1637 = vrot.lane.b32.xlu1 %v3753_v54, %s3560_s9 }
 0x153   : > { %v3867_v21 = vpop.f32.mrb[24].mxu0 }
 0x154   : > { %2003 = vrot.lane.b32.xlu0 %v3747_v51, %s3559_s8  ;;  %v3871_v22 = vpop.f32.mrb[25].mxu0 }
 0x155   : > { %v3873_v23 = vpop.f32.mrb[26].mxu0 }
 0x156   : > { %2005 = vrot.lane.b32.xlu1 %v3757_v55, %s3559_s8  ;;  %v3877_v24 = vpop.f32.mrb[27].mxu0 }
 0x158   : > { %2051 = vrot.lane.b32.xlu0 %v3749_v52, %s3559_s8 }
 0x15a   : > { %2053 = vrot.lane.b32.xlu1 %v3759_v56, %s3559_s8 }
 0x15b   : > { %v3883_v25 = vpop.f32.mrb[28].mxu0 }
 0x15c   : > { %2067 = vrot.lane.b32.xlu0 %v3747_v51, %s3560_s9  ;;  %v3887_v26 = vpop.f32.mrb[29].mxu0 }
 0x15d   : > { %v3889_v27 = vpop.f32.mrb[30].mxu0 }
 0x15e   : > { %2069 = vrot.lane.b32.xlu1 %v3757_v55, %s3560_s9  ;;  %v3893_v28 = vpop.f32.mrb[31].mxu0 }
 0x160   : > { %2115 = vrot.lane.b32.xlu0 %v3749_v52, %s3560_s9 }
 0x162   : > { %2117 = vrot.lane.b32.xlu1 %v3759_v56, %s3560_s9 }
 0x163   : > { %v3899_v29 = vpop.f32.mrb[32].mxu0 }
 0x164   : > { %1527 = vrot.lane.b32.xlu0 %v3766_v57, %s3559_s8  ;;  %v3903_v30 = vpop.f32.mrb[33].mxu0 }
 0x165   : > { %4709 = vst [vmem:[#allocation26_spill] sm:$0xff] %v3903_v30  ;;  %v3905_v31 = vpop.f32.mrb[34].mxu0 }
 0x166   : > { %1529 = vrot.lane.b32.xlu1 %v3776_v61, %s3559_s8  ;;  %v3909_v32 = vpop.f32.mrb[35].mxu0 }
 0x167   : > { %4710 = vst [vmem:[#allocation27_spill] sm:$0xff] %v3909_v32 }
 0x168   : > { %1575 = vrot.lane.b32.xlu0 %v3768_v58, %s3559_s8 }
 0x16a   : > { %1577 = vrot.lane.b32.xlu1 %v3778_v62, %s3559_s8 }
 0x16b   : > { %v3917_v33 = vpop.f32.mrb[36].mxu0 }
 0x16c   : > { %1591 = vrot.lane.b32.xlu0 %v3766_v57, %s3560_s9  ;;  %4711 = vst [vmem:[#allocation28_spill] sm:$0xff] %v3917_v33  ;;  %v3919_v34 = vpop.f32.mrb[37].mxu0 }
 0x16d   : > { %4712 = vst [vmem:[#allocation29_spill] sm:$0xff] %v3919_v34  ;;  %v3923_v35 = vpop.f32.mrb[38].mxu0 }
 0x16e   : > { %1593 = vrot.lane.b32.xlu1 %v3776_v61, %s3560_s9  ;;  %4713 = vst [vmem:[#allocation30_spill] sm:$0xff] %v3923_v35  ;;  %v3925_v36 = vpop.f32.mrb[39].mxu0 }
 0x16f   : > { %4714 = vst [vmem:[#allocation31_spill] sm:$0xff] %v3925_v36 }
 0x170   : > { %1639 = vrot.lane.b32.xlu0 %v3768_v58, %s3560_s9 }
 0x172   : > { %1641 = vrot.lane.b32.xlu1 %v3778_v62, %s3560_s9 }
 0x173   : > { %v3941_v37 = vpop.f32.mrb[40].mxu0 }
 0x174   : > { %2007 = vrot.lane.b32.xlu0 %v3772_v59, %s3559_s8  ;;  %4715 = vst [vmem:[#allocation32_spill] sm:$0xff] %v3941_v37  ;;  %v3943_v38 = vpop.f32.mrb[41].mxu0 }
 0x175   : > { %4716 = vst [vmem:[#allocation33_spill] sm:$0xff] %v3943_v38  ;;  %v3947_v39 = vpop.f32.mrb[42].mxu0 }
 0x176   : > { %2009 = vrot.lane.b32.xlu1 %v3782_v63, %s3559_s8  ;;  %4717 = vst [vmem:[#allocation34_spill] sm:$0xff] %v3947_v39  ;;  %v3949_v40 = vpop.f32.mrb[43].mxu0 }
 0x177   : > { %4718 = vst [vmem:[#allocation35_spill] sm:$0xff] %v3949_v40 }
 0x178   : > { %2055 = vrot.lane.b32.xlu0 %v3774_v60, %s3559_s8 }
 0x17a   : > { %2057 = vrot.lane.b32.xlu1 %v3784_v0, %s3559_s8 }
 0x17b   : > { %v3965_v12 = vpop.f32.mrb[44].mxu0 }
 0x17c   : > { %2071 = vrot.lane.b32.xlu0 %v3772_v59, %s3560_s9  ;;  %4719 = vst [vmem:[#allocation36_spill] sm:$0xff] %v3965_v12  ;;  %v3967_v8 = vpop.f32.mrb[45].mxu0  ;;  %v1447_v12 = vld [vmem:[%s4644_s3 + $0xc0] sm:$0xff] }
 0x17d   : > { %4720 = vst [vmem:[#allocation37_spill] sm:$0xff] %v3967_v8  ;;  %v3971_v40 = vpop.f32.mrb[46].mxu0 }
 0x17e   : > { %2073 = vrot.lane.b32.xlu1 %v3782_v63, %s3560_s9  ;;  %4721 = vst [vmem:[#allocation38_spill] sm:$0xff] %v3971_v40  ;;  %v3973_v38 = vpop.f32.mrb[47].mxu0 }
 0x17f   : > { %4722 = vst [vmem:[#allocation39_spill] sm:$0xff] %v3973_v38  ;;  %v1448_v38 = vld [vmem:[%s4644_s3 + $0xc8] sm:$0xff] }
 0x180   : > { %2119 = vrot.lane.b32.xlu0 %v3774_v60, %s3560_s9 }
 0x182   : > { %2121 = vrot.lane.b32.xlu1 %v3784_v0, %s3560_s9 }
 0x184   : > { %1531 = vrot.lane.b32.xlu0 %v3797_v2, %s3559_s8 }
 0x186   : > { %1533 = vrot.lane.b32.xlu1 %v3812_v7, %s3559_s8 }
 0x188   : > { %1579 = vrot.lane.b32.xlu0 %v3799_v3, %s3559_s8 }
 0x18a   : > { %1581 = vrot.lane.b32.xlu1 %v3818_v9, %s3559_s8 }
 0x18c   : > { %1595 = vrot.lane.b32.xlu0 %v3797_v2, %s3560_s9 }
 0x18e   : > { %1597 = vrot.lane.b32.xlu1 %v3812_v7, %s3560_s9  ;;  %v1479_v7 = vld [vmem:[%s4645_s4 + $0xc0] sm:$0xff] }
 0x190   : > { %1643 = vrot.lane.b32.xlu0 %v3799_v3, %s3560_s9 }
 0x192   : > { %1645 = vrot.lane.b32.xlu1 %v3818_v9, %s3560_s9 }
 0x194   : > { %2011 = vrot.lane.b32.xlu0 %v3803_v4, %s3559_s8 }
 0x196   : > { %v3981_v6 = vpop.permute.xlu0 %1519  ;;  %2013 = vrot.lane.b32.xlu1 %v3822_v10, %s3559_s8 }
 0x198   : > { %v1570_v8 = vpop.permute.xlu1 %1569  ;;  %2059 = vrot.lane.b32.xlu0 %v3805_v5, %s3559_s8  ;;  %v1415_v5 = vld [vmem:[%s4643_s2 + $0xc0] sm:$0xff] }
 0x199   : > { %v1704_v3 = vmul.f32 %v1570_v8, %v1448_v38  ;;  %v1671_v2 = vmul.f32 %v1415_v5, %v3719_v42  ;;  %v2151_v32 = vmul.f32 %v1415_v5, %v3721_v43 }
 0x19a   : > { %v1568_v40 = vpop.permute.xlu0 %1567  ;;  %2061 = vrot.lane.b32.xlu1 %v3824_v11, %s3559_s8  ;;  %v1416_v11 = vld [vmem:[%s4643_s2 + $0xc8] sm:$0xff] }
 0x19b   : > { %v1703_v37 = vmul.f32 %v1568_v40, %v1447_v12  ;;  %v1672_v36 = vmul.f32 %v1416_v11, %v3729_v46 }
 0x19c   : > { %v3995_v9 = vpop.permute.xlu1 %1585  ;;  %2075 = vrot.lane.b32.xlu0 %v3803_v4, %s3560_s9 }
 0x19d   : > { %v1736_v8 = vadd.f32 %v1704_v3, %v1672_v36  ;;  %v1735_v40 = vadd.f32 %v1703_v37, %v1671_v2  ;;  %v1424_v2 = vld [vmem:[%s4644_s3 + $0x8] sm:$0xff] }
 0x19e   : > { %v4005_v39 = vpop.permute.xlu0 %1583  ;;  %2077 = vrot.lane.b32.xlu1 %v3822_v10, %s3560_s9  ;;  %v1456_v37 = vld [vmem:[%s4645_s4 + $0x8] sm:$0xff] }
 0x1a0   : > { %v1634_v4 = vpop.permute.xlu1 %1633  ;;  %1535 = vrot.lane.b32.xlu0 %v3835_v13, %s3559_s8 }
 0x1a1   : > { %v1768_v10 = vmul.f32 %v1634_v4, %v1480_v1  ;;  %v1391_v4 = vld [vmem:[%s4643_s2] sm:$0xff] }
 0x1a2   : > { %v1632_v34 = vpop.permute.xlu0 %1631  ;;  %1537 = vrot.lane.b32.xlu1 %v3841_v15, %s3559_s8 }
 0x1a3   : > { %v1767_v0 = vmul.f32 %v1632_v34, %v1479_v7  ;;  %v1800_v60 = vadd.f32 %v1768_v10, %v1736_v8 }
 0x1a4   : > { %v2002_v35 = vpop.permute.xlu1 %2001  ;;  %1599 = vrot.lane.b32.xlu0 %v3835_v13, %s3560_s9 }
 0x1a5   : > { %v1799_v33 = vadd.f32 %v1767_v0, %v1735_v40  ;;  %v1392_v0 = vld [vmem:[%s4643_s2 + $0x8] sm:$0xff]  ;;  %v2160_v10 = vmul.f32 %v2002_v35, %v1424_v2  ;;  %v2127_v40 = vmul.f32 %v1391_v4, %v3725_v44  ;;  %v1455_v35 = vld [vmem:[%s4645_s4] sm:$0xff]  ;;  %v2152_v44 = vmul.f32 %v1416_v11, %v3735_v48 }
 0x1a6   : > { %v2000_v42 = vpop.permute.xlu0 %1999  ;;  %1601 = vrot.lane.b32.xlu1 %v3841_v15, %s3560_s9  ;;  %v2128_v36 = vmul.f32 %v1392_v0, %v3733_v47  ;;  %v1647_v11 = vmul.f32 %v1391_v4, %v3717_v41  ;;  %v1425_v41 = vld [vmem:[%s4644_s3 + $0x10] sm:$0xff]  ;;  %v1394_v4 = vld [vmem:[%s4643_s2 + $0x18] sm:$0xff] }
 0x1a7   : > { %v3101_v46 = vpack.c.bf16 %v1800_v60, %v1799_v33  ;;  %v1423_v60 = vld [vmem:[%s4644_s3] sm:$0xff] }
 0x1a8   : > { %v2050_v3 = vpop.permute.xlu1 %2049  ;;  %2015 = vrot.lane.b32.xlu0 %v3839_v14, %s3559_s8  ;;  %v2159_v34 = vmul.f32 %v2000_v42, %v1423_v60  ;;  %v2192_v15 = vadd.f32 %v2160_v10, %v2128_v36  ;;  %v1679_v48 = vmul.f32 %v3981_v6, %v1423_v60 }
 0x1a9   : > { %3289 = vst [vmem:[%s4027_s11 + $0x60] sm:$0xff] %v3101_v46   ;;  %v2184_v13 = vmul.f32 %v2050_v3, %v1448_v38 }
 0x1aa   : > { %v2048_v33 = vpop.permute.xlu0 %2047  ;;  %2017 = vrot.lane.b32.xlu1 %v3845_v16, %s3559_s8  ;;  %v2191_v47 = vadd.f32 %v2159_v34, %v2127_v40  ;;  %v1711_v6 = vadd.f32 %v1679_v48, %v1647_v11  ;;  %v1457_v34 = vld [vmem:[%s4645_s4 + $0x10] sm:$0xff]  ;;  %v1482_v11 = vld [vmem:[%s4645_s4 + $0xd8] sm:$0xff] }
 0x1ab   : > { %v2183_v63 = vmul.f32 %v2048_v33, %v1447_v12  ;;  %v2216_v43 = vadd.f32 %v2184_v13, %v2152_v44  ;;  %v1650_v44 = vmul.f32 %v1394_v4, %v3751_v53 }
 0x1ac   : > { %v2066_v8 = vpop.permute.xlu1 %2065  ;;  %2079 = vrot.lane.b32.xlu0 %v3839_v14, %s3560_s9 }
 0x1ad   : > { %v2224_v46 = vmul.f32 %v2066_v8, %v1456_v37  ;;  %v2215_v5 = vadd.f32 %v2183_v63, %v2151_v32  ;;  %v1648_v63 = vmul.f32 %v1392_v0, %v3727_v45  ;;  %v1426_v45 = vld [vmem:[%s4644_s3 + $0x18] sm:$0xff] }
 0x1ae   : > { %v2064_v42 = vpop.permute.xlu0 %2063  ;;  %2081 = vrot.lane.b32.xlu1 %v3845_v16, %s3560_s9 }
 0x1af   : > { %v2223_v59 = vmul.f32 %v2064_v42, %v1455_v35  ;;  %v2256_v8 = vadd.f32 %v2224_v46, %v2192_v15  ;;  %v1449_v46 = vld [vmem:[%s4644_s3 + $0xd0] sm:$0xff] }
 0x1b0   : > { %v2114_v14 = vpop.permute.xlu1 %2113  ;;  %1539 = vrot.lane.b32.xlu0 %v3851_v17, %s3559_s8 }
 0x1b1   : > { %v2255_v30 = vadd.f32 %v2223_v59, %v2191_v47  ;;  %v2248_v62 = vmul.f32 %v2114_v14, %v1480_v1  ;;  %v1458_v47 = vld [vmem:[%s4645_s4 + $0x18] sm:$0xff] }
 0x1b2   : > { %v2112_v38 = vpop.permute.xlu0 %2111  ;;  %1541 = vrot.lane.b32.xlu1 %v3857_v19, %s3559_s8 }
 0x1b3   : > { %v3121_v12 = vpack.c.bf16 %v2256_v8, %v2255_v30  ;;  %v2247_v3 = vmul.f32 %v2112_v38, %v1479_v7  ;;  %v2280_v59 = vadd.f32 %v2248_v62, %v2216_v43  ;;  %v1743_v7 = vmul.f32 %v4005_v39, %v1455_v35  ;;  %v1450_v35 = vld [vmem:[%s4644_s3 + $0xd8] sm:$0xff] }
 0x1b4   : > { %v1524_v10 = vpop.permute.xlu1 %1523  ;;  %1603 = vrot.lane.b32.xlu0 %v3851_v17, %s3560_s9  ;;  %v1744_v62 = vmul.f32 %v3995_v9, %v1456_v37  ;;  %v1418_v38 = vld [vmem:[%s4643_s2 + $0xd8] sm:$0xff] }
 0x1b5   : > { %3122 = vst [vmem:[%s4068_s30] sm:$0xff] %v3121_v12   ;;  %v2279_v1 = vadd.f32 %v2247_v3, %v2215_v5  ;;  %v1775_v0 = vadd.f32 %v1743_v7, %v1711_v6  ;;  %v1681_v60 = vmul.f32 %v1524_v10, %v1425_v41  ;;  %v1481_v12 = vld [vmem:[%s4645_s4 + $0xd0] sm:$0xff] }
 0x1b6   : > { %v1522_v14 = vpop.permute.xlu0 %1521  ;;  %1605 = vrot.lane.b32.xlu1 %v3857_v19, %s3560_s9 }
 0x1b7   : > { %v3181_v13 = vpack.c.bf16 %v2280_v59, %v2279_v1  ;;  %v1680_v15 = vmul.f32 %v1522_v14, %v1424_v2  ;;  %v1393_v2 = vld [vmem:[%s4643_s2 + $0x10] sm:$0xff]  ;;  %v1674_v14 = vmul.f32 %v1418_v38, %v3753_v54 }
 0x1b8   : > { %v1526_v30 = vpop.permute.xlu1 %1525  ;;  %2019 = vrot.lane.b32.xlu0 %v3855_v18, %s3559_s8  ;;  %v1649_v40 = vmul.f32 %v1393_v2, %v3741_v49  ;;  %v1417_v49 = vld [vmem:[%s4643_s2 + $0xd0] sm:$0xff] }
 0x1b9   : > { %3304 = vst [vmem:[%s4068_s30 + $0x60] sm:$0xff] %v3181_v13   ;;  %v1712_v32 = vadd.f32 %v1680_v15, %v1648_v63  ;;  %v1682_v37 = vmul.f32 %v1526_v30, %v1426_v45  ;;  %v1673_v59 = vmul.f32 %v1417_v49, %v3743_v50 }
 0x1ba   : > { %v1572_v39 = vpop.permute.xlu0 %1571  ;;  %2021 = vrot.lane.b32.xlu1 %v3861_v20, %s3559_s8  ;;  %v1713_v43 = vadd.f32 %v1681_v60, %v1649_v40  ;;  %v2129_v40 = vmul.f32 %v1393_v2, %v3747_v51  ;;  %v2154_v2 = vmul.f32 %v1418_v38, %v3759_v56 }
 0x1bb   : > { %v1776_v9 = vadd.f32 %v1744_v62, %v1712_v32  ;;  %v1714_v53 = vadd.f32 %v1682_v37, %v1650_v44  ;;  %v1705_v3 = vmul.f32 %v1572_v39, %v1449_v46  ;;  %v2130_v44 = vmul.f32 %v1394_v4, %v3757_v55 }
 0x1bc   : > { %v1574_v33 = vpop.permute.xlu1 %1573  ;;  %2083 = vrot.lane.b32.xlu0 %v3855_v18, %s3560_s9 }
 0x1bd   : > { %v3041_v36 = vpack.c.bf16 %v1776_v9, %v1775_v0  ;;  %v1706_v10 = vmul.f32 %v1574_v33, %v1450_v35  ;;  %v1737_v50 = vadd.f32 %v1705_v3, %v1673_v59 }
 0x1be   : > { %v1588_v42 = vpop.permute.xlu0 %1587  ;;  %2085 = vrot.lane.b32.xlu1 %v3861_v20, %s3560_s9 }
 0x1bf   : > { %3042 = vst [vmem:[%s4027_s11] sm:$0xff] %v3041_v36   ;;  %v1745_v8 = vmul.f32 %v1588_v42, %v1457_v34  ;;  %v1738_v30 = vadd.f32 %v1706_v10, %v1674_v14 }
 0x1c0   : > { %v1590_v5 = vpop.permute.xlu1 %1589  ;;  %1543 = vrot.lane.b32.xlu0 %v3867_v21, %s3559_s8 }
 0x1c1   : > { %v1746_v48 = vmul.f32 %v1590_v5, %v1458_v47  ;;  %v1777_v63 = vadd.f32 %v1745_v8, %v1713_v43 }
 0x1c2   : > { %v1636_v1 = vpop.permute.xlu0 %1635  ;;  %1545 = vrot.lane.b32.xlu1 %v3873_v23, %s3559_s8 }
 0x1c3   : > { %v1778_v7 = vadd.f32 %v1746_v48, %v1714_v53  ;;  %v1769_v13 = vmul.f32 %v1636_v1, %v1481_v12 }
 0x1c4   : > { %v1638_v15 = vpop.permute.xlu1 %1637  ;;  %1607 = vrot.lane.b32.xlu0 %v3867_v21, %s3560_s9 }
 0x1c5   : > { %v3046_v6 = vpack.c.bf16 %v1778_v7, %v1777_v63  ;;  %v1770_v62 = vmul.f32 %v1638_v15, %v1482_v11  ;;  %v1801_v39 = vadd.f32 %v1769_v13, %v1737_v50  ;;  %v3365_v63 = vpop.f32.mrb[16].mxu1  ;;  %v4180_v7 = vld [vmem:[%s4643_s2 + $0x20] sm:$0xff]  ;;  %v4186_v15 = vld [vmem:[%s4643_s2 + $0x28] sm:$0xff] }
 0x1c6   : > { %v2004_v32 = vpop.permute.xlu0 %2003  ;;  %1609 = vrot.lane.b32.xlu1 %v3873_v23, %s3560_s9  ;;  %v1069_v13 = vpop.f32.mrb[17].mxu1 }
 0x1c7   : > { %3278 = vst [vmem:[%s4027_s11 + $0x8] sm:$0xff] %v3046_v6   ;;  %v1802_v0 = vadd.f32 %v1770_v62, %v1738_v30  ;;  %v2161_v33 = vmul.f32 %v2004_v32, %v1425_v41  ;;  %v4194_v6 = vld [vmem:[%s4645_s4 + $0x20] sm:$0xff]  ;;  %v3366_v62 = vpop.f32.mrb[18].mxu1 }
 0x1c8   : > { %v2006_v54 = vpop.permute.xlu1 %2005  ;;  %2023 = vrot.lane.b32.xlu0 %v3871_v22, %s3559_s8 }
 0x1c9   : > { %v3106_v9 = vpack.c.bf16 %v1802_v0, %v1801_v39  ;;  %v2162_v37 = vmul.f32 %v2006_v54, %v1426_v45  ;;  %v2193_v43 = vadd.f32 %v2161_v33, %v2129_v40  ;;  %v2153_v45 = vmul.f32 %v1417_v49, %v3749_v52  ;;  %v1072_v39 = vpop.f32.mrb[19].mxu1  ;;  %v4202_v54 = vld [vmem:[%s4644_s3 + $0xe0] sm:$0xff]  ;;  %v4214_v33 = vld [vmem:[%s4645_s4 + $0x28] sm:$0xff] }
 0x1ca   : > { %v2052_v60 = vpop.permute.xlu0 %2051  ;;  %2025 = vrot.lane.b32.xlu1 %v3877_v24, %s3559_s8  ;;  %v1651_v0 = vmul.f32 %v4180_v7, %v3766_v57  ;;  %v3206_v57 = vpack.c.bf16 %v3366_v62, %v3365_v63  ;;  %v4221_v40 = vld [vmem:[%s4643_s2 + $0xe0] sm:$0xff] }
 0x1cb   : > { %3290 = vst [vmem:[%s4027_s11 + $0x68] sm:$0xff] %v3106_v9   ;;  %v2194_v41 = vadd.f32 %v2162_v37, %v2130_v44  ;;  %v2185_v53 = vmul.f32 %v2052_v60, %v1449_v46  ;;  %v4207_v9 = vld [vmem:[%s4644_s3 + $0xe8] sm:$0xff]  ;;  %v1652_v37 = vmul.f32 %v4186_v15, %v3776_v61  ;;  %v4724_v62 = vld [vmem:[#allocation26_spill] sm:$0xff] }
 0x1cc   : > { %v2054_v36 = vpop.permute.xlu1 %2053  ;;  %2087 = vrot.lane.b32.xlu0 %v3871_v22, %s3560_s9  ;;  %v4233_v44 = vld [vmem:[%s4643_s2 + $0xe8] sm:$0xff]  ;;  %3308 = vst [vmem:[%s4228_s29 + $0x8] sm:$0xff] %v3206_v57  }
 0x1cd   : > { %v2186_v3 = vmul.f32 %v2054_v36, %v1450_v35  ;;  %v2217_v59 = vadd.f32 %v2185_v53, %v2153_v45  ;;  %v3201_v36 = vpack.c.bf16 %v1072_v39, %v1069_v13 }
 0x1ce   : > { %v2068_v42 = vpop.permute.xlu0 %2067  ;;  %2089 = vrot.lane.b32.xlu1 %v3877_v24, %s3560_s9 }
 0x1cf   : > { %v2225_v8 = vmul.f32 %v2068_v42, %v1457_v34  ;;  %v2218_v46 = vadd.f32 %v2186_v3, %v2154_v2  ;;  %3202 = vst [vmem:[%s4228_s29] sm:$0xff] %v3201_v36   ;;  %v3369_v2 = vpop.f32.mrb[20].mxu1 }
 0x1d0   : > { %v2070_v5 = vpop.permute.xlu1 %2069  ;;  %1547 = vrot.lane.b32.xlu0 %v3883_v25, %s3559_s8 }
 0x1d1   : > { %v2226_v10 = vmul.f32 %v2070_v5, %v1458_v47  ;;  %v2257_v55 = vadd.f32 %v2225_v8, %v2193_v43  ;;  %v4240_v43 = vld [vmem:[%s4645_s4 + $0xe0] sm:$0xff] }
 0x1d2   : > { %v2116_v51 = vpop.permute.xlu0 %2115  ;;  %1549 = vrot.lane.b32.xlu1 %v3889_v27, %s3559_s8 }
 0x1d3   : > { %v2258_v4 = vadd.f32 %v2226_v10, %v2194_v41  ;;  %v2249_v34 = vmul.f32 %v2116_v51, %v1481_v12  ;;  %v4168_v12 = vld [vmem:[%s4644_s3 + $0x20] sm:$0xff]  ;;  %v1675_v10 = vmul.f32 %v4221_v40, %v3768_v58  ;;  %v4254_v51 = vld [vmem:[%s4645_s4 + $0xe8] sm:$0xff] }
 0x1d4   : > { %v2118_v48 = vpop.permute.xlu1 %2117  ;;  %1611 = vrot.lane.b32.xlu0 %v3883_v25, %s3560_s9 }
 0x1d5   : > { %v3126_v35 = vpack.c.bf16 %v2258_v4, %v2257_v55  ;;  %v2250_v47 = vmul.f32 %v2118_v48, %v1482_v11  ;;  %v2281_v52 = vadd.f32 %v2249_v34, %v2217_v59  ;;  %v4173_v11 = vld [vmem:[%s4644_s3 + $0x28] sm:$0xff]  ;;  %v4723_v55 = vld [vmem:[#allocation8_spill] sm:$0xff] }
 0x1d6   : > { %v1528_v1 = vpop.permute.xlu0 %1527  ;;  %1613 = vrot.lane.b32.xlu1 %v3889_v27, %s3560_s9  ;;  %v1676_v4 = vmul.f32 %v4233_v44, %v4723_v55 }
 0x1d7   : > { %3293 = vst [vmem:[%s4068_s30 + $0x8] sm:$0xff] %v3126_v35   ;;  %v2282_v49 = vadd.f32 %v2250_v47, %v2218_v46  ;;  %v1683_v50 = vmul.f32 %v1528_v1, %v4168_v12  ;;  %v1085_v46 = vpop.f32.mrb[21].mxu1 }
 0x1d8   : > { %v1530_v56 = vpop.permute.xlu1 %1529  ;;  %2027 = vrot.lane.b32.xlu0 %v3887_v26, %s3559_s8  ;;  %v3370_v35 = vpop.f32.mrb[22].mxu1 }
 0x1d9   : > { %v3186_v38 = vpack.c.bf16 %v2282_v49, %v2281_v52  ;;  %v1684_v32 = vmul.f32 %v1530_v56, %v4173_v11  ;;  %v1715_v61 = vadd.f32 %v1683_v50, %v1651_v0  ;;  %v1088_v56 = vpop.f32.mrb[23].mxu1  ;;  %v4725_v0 = vld [vmem:[#allocation27_spill] sm:$0xff] }
 0x1da   : > { %v1576_v14 = vpop.permute.xlu0 %1575  ;;  %2029 = vrot.lane.b32.xlu1 %v3893_v28, %s3559_s8  ;;  %v3211_v63 = vpack.c.bf16 %v1088_v56, %v1085_v46  ;;  %v4729_v46 = vld [vmem:[#allocation7_spill] sm:$0xff] }
 0x1db   : > { %3305 = vst [vmem:[%s4068_s30 + $0x68] sm:$0xff] %v3186_v38   ;;  %v1716_v5 = vadd.f32 %v1684_v32, %v1652_v37  ;;  %v1707_v41 = vmul.f32 %v1576_v14, %v4202_v54  ;;  %v3216_v14 = vpack.c.bf16 %v3370_v35, %v3369_v2 }
 0x1dc   : > { %v1578_v30 = vpop.permute.xlu1 %1577  ;;  %2091 = vrot.lane.b32.xlu0 %v3887_v26, %s3560_s9  ;;  %3309 = vst [vmem:[%s4228_s29 + $0x10] sm:$0xff] %v3211_v63  }
 0x1dd   : > { %v1708_v53 = vmul.f32 %v1578_v30, %v4207_v9  ;;  %v1739_v47 = vadd.f32 %v1707_v41, %v1675_v10  ;;  %3310 = vst [vmem:[%s4228_s29 + $0x18] sm:$0xff] %v3216_v14  }
 0x1de   : > { %v1592_v60 = vpop.permute.xlu0 %1591  ;;  %2093 = vrot.lane.b32.xlu1 %v3893_v28, %s3560_s9 }
 0x1df   : > { %v1747_v42 = vmul.f32 %v1592_v60, %v4194_v6  ;;  %v1740_v1 = vadd.f32 %v1708_v53, %v1676_v4  ;;  %v3373_v60 = vpop.f32.mrb[24].mxu1 }
 0x1e0   : > { %v1594_v8 = vpop.permute.xlu1 %1593  ;;  %1551 = vrot.lane.b32.xlu0 %v3899_v29, %s3559_s8  ;;  %v1101_v57 = vpop.f32.mrb[25].mxu1 }
 0x1e1   : > { %v1748_v3 = vmul.f32 %v1594_v8, %v4214_v33  ;;  %v1779_v34 = vadd.f32 %v1747_v42, %v1715_v61  ;;  %v3374_v42 = vpop.f32.mrb[26].mxu1 }
 0x1e2   : > { %v1640_v45 = vpop.permute.xlu0 %1639  ;;  %1553 = vrot.lane.b32.xlu1 %v3905_v31, %s3559_s8  ;;  %v1104_v8 = vpop.f32.mrb[27].mxu1 }
 0x1e3   : > { %v1780_v48 = vadd.f32 %v1748_v3, %v1716_v5  ;;  %v1771_v59 = vmul.f32 %v1640_v45, %v4240_v43  ;;  %v4726_v5 = vld [vmem:[#allocation6_spill] sm:$0xff]  ;;  %v3226_v3 = vpack.c.bf16 %v3374_v42, %v3373_v60  ;;  %v3221_v10 = vpack.c.bf16 %v1104_v8, %v1101_v57  ;;  %v3377_v35 = vpop.f32.mrb[28].mxu1  ;;  %v4732_v60 = vld [vmem:[#allocation29_spill] sm:$0xff]  ;;  %v4733_v42 = vld [vmem:[#allocation31_spill] sm:$0xff] }
 0x1e4   : > { %v1642_v58 = vpop.permute.xlu1 %1641  ;;  %1615 = vrot.lane.b32.xlu0 %v3899_v29, %s3560_s9  ;;  %v2131_v41 = vmul.f32 %v4180_v7, %v4726_v5  ;;  %v1117_v56 = vpop.f32.mrb[29].mxu1  ;;  %v4322_v8 = vld [vmem:[%s4643_s2 + $0x30] sm:$0xff] }
 0x1e5   : > { %v3051_v52 = vpack.c.bf16 %v1780_v48, %v1779_v34  ;;  %v1772_v49 = vmul.f32 %v1642_v58, %v4254_v51  ;;  %v1803_v13 = vadd.f32 %v1771_v59, %v1739_v47  ;;  %v4728_v34 = vld [vmem:[#allocation28_spill] sm:$0xff]  ;;  %3312 = vst [vmem:[%s4228_s29 + $0x28] sm:$0xff] %v3226_v3   ;;  %3311 = vst [vmem:[%s4228_s29 + $0x20] sm:$0xff] %v3221_v10   ;;  %v4731_v47 = vld [vmem:[#allocation10_spill] sm:$0xff] }
 0x1e6   : > { %v2008_v38 = vpop.permute.xlu0 %2007  ;;  %1617 = vrot.lane.b32.xlu1 %v3905_v31, %s3560_s9  ;;  %v2155_v58 = vmul.f32 %v4221_v40, %v4729_v46  ;;  %v4336_v10 = vld [vmem:[%s4645_s4 + $0x30] sm:$0xff] }
 0x1e7   : > { %3279 = vst [vmem:[%s4027_s11 + $0x10] sm:$0xff] %v3051_v52   ;;  %v1804_v50 = vadd.f32 %v1772_v49, %v1740_v1  ;;  %v2163_v36 = vmul.f32 %v2008_v38, %v4168_v12  ;;  %v4727_v12 = vld [vmem:[#allocation9_spill] sm:$0xff]  ;;  %v2156_v1 = vmul.f32 %v4233_v44, %v4731_v47 }
 0x1e8   : > { %v2010_v30 = vpop.permute.xlu1 %2009  ;;  %2031 = vrot.lane.b32.xlu0 %v4724_v62, %s3559_s8  ;;  %v2132_v45 = vmul.f32 %v4186_v15, %v4727_v12 }
 0x1e9   : > { %v3111_v32 = vpack.c.bf16 %v1804_v50, %v1803_v13  ;;  %v2164_v61 = vmul.f32 %v2010_v30, %v4173_v11  ;;  %v2195_v55 = vadd.f32 %v2163_v36, %v2131_v41  ;;  %v4315_v36 = vld [vmem:[%s4644_s3 + $0x38] sm:$0xff] }
 0x1ea   : > { %v2056_v39 = vpop.permute.xlu0 %2055  ;;  %2033 = vrot.lane.b32.xlu1 %v4725_v0, %s3559_s8  ;;  %v4328_v41 = vld [vmem:[%s4643_s2 + $0x38] sm:$0xff] }
 0x1eb   : > { %3291 = vst [vmem:[%s4027_s11 + $0x70] sm:$0xff] %v3111_v32   ;;  %v2196_v11 = vadd.f32 %v2164_v61, %v2132_v45  ;;  %v2187_v7 = vmul.f32 %v2056_v39, %v4202_v54 }
 0x1ec   : > { %v2058_v37 = vpop.permute.xlu1 %2057  ;;  %2095 = vrot.lane.b32.xlu0 %v4724_v62, %s3560_s9 }
 0x1ed   : > { %v2188_v48 = vmul.f32 %v2058_v37, %v4207_v9  ;;  %v2219_v40 = vadd.f32 %v2187_v7, %v2155_v58  ;;  %v1454_v7 = vld [vmem:[%s4644_s3 + $0xf8] sm:$0xff] }
 0x1ee   : > { %v2072_v53 = vpop.permute.xlu0 %2071  ;;  %2097 = vrot.lane.b32.xlu1 %v4725_v0, %s3560_s9 }
 0x1ef   : > { %v2227_v2 = vmul.f32 %v2072_v53, %v4194_v6  ;;  %v4730_v6 = vld [vmem:[#allocation30_spill] sm:$0xff]  ;;  %v2220_v38 = vadd.f32 %v2188_v48, %v2156_v1 }
 0x1f0   : > { %v2074_v4 = vpop.permute.xlu1 %2073  ;;  %1555 = vrot.lane.b32.xlu0 %v4728_v34, %s3559_s8 }
 0x1f1   : > { %v2228_v59 = vmul.f32 %v2074_v4, %v4214_v33  ;;  %v2259_v52 = vadd.f32 %v2227_v2, %v2195_v55  ;;  %v3378_v33 = vpop.f32.mrb[30].mxu1  ;;  %v4734_v55 = vld [vmem:[#allocation12_spill] sm:$0xff] }
 0x1f2   : > { %v2120_v15 = vpop.permute.xlu0 %2119  ;;  %1557 = vrot.lane.b32.xlu1 %v4730_v6, %s3559_s8  ;;  %v1120_v13 = vpop.f32.mrb[31].mxu1  ;;  %v3236_v50 = vpack.c.bf16 %v3378_v33, %v3377_v35  ;;  %v1653_v4 = vmul.f32 %v4322_v8, %v4734_v55 }
 0x1f3   : > { %v2260_v49 = vadd.f32 %v2228_v59, %v2196_v11  ;;  %v2251_v54 = vmul.f32 %v2120_v15, %v4240_v43  ;;  %v3231_v43 = vpack.c.bf16 %v1120_v13, %v1117_v56  ;;  %v3381_v61 = vpop.f32.mrb[32].mxu1  ;;  %v1453_v11 = vld [vmem:[%s4644_s3 + $0xf0] sm:$0xff]  ;;  %v4352_v59 = vld [vmem:[%s4645_s4 + $0x38] sm:$0xff] }
 0x1f4   : > { %v2122_v9 = vpop.permute.xlu1 %2121  ;;  %1619 = vrot.lane.b32.xlu0 %v4728_v34, %s3560_s9  ;;  %3314 = vst [vmem:[%s4228_s29 + $0x38] sm:$0xff] %v3236_v50   ;;  %v1133_v5 = vpop.f32.mrb[33].mxu1  ;;  %v4735_v15 = vld [vmem:[#allocation17_spill] sm:$0xff] }
 0x1f5   : > { %v3131_v14 = vpack.c.bf16 %v2260_v49, %v2259_v52  ;;  %v2252_v63 = vmul.f32 %v2122_v9, %v4254_v51  ;;  %v2283_v30 = vadd.f32 %v2251_v54, %v2219_v40  ;;  %3313 = vst [vmem:[%s4228_s29 + $0x30] sm:$0xff] %v3231_v43   ;;  %v4310_v51 = vld [vmem:[%s4644_s3 + $0x30] sm:$0xff]  ;;  %v3382_v12 = vpop.f32.mrb[34].mxu1  ;;  %v1654_v35 = vmul.f32 %v4328_v41, %v4735_v15  ;;  %v4374_v50 = vld [vmem:[%s4645_s4 + $0xf8] sm:$0xff] }
 0x1f6   : > { %v1532_v44 = vpop.permute.xlu0 %1531  ;;  %1621 = vrot.lane.b32.xlu1 %v4730_v6, %s3560_s9  ;;  %v1136_v2 = vpop.f32.mrb[35].mxu1  ;;  %v3246_v46 = vpack.c.bf16 %v3382_v12, %v3381_v61  ;;  %v4736_v49 = vld [vmem:[#allocation32_spill] sm:$0xff] }
 0x1f7   : > { %3294 = vst [vmem:[%s4068_s30 + $0x10] sm:$0xff] %v3131_v14   ;;  %v2284_v32 = vadd.f32 %v2252_v63, %v2220_v38  ;;  %v1685_v53 = vmul.f32 %v1532_v44, %v4310_v51  ;;  %v3241_v58 = vpack.c.bf16 %v1136_v2, %v1133_v5  ;;  %v4362_v54 = vld [vmem:[%s4645_s4 + $0xf0] sm:$0xff]  ;;  %v4737_v38 = vld [vmem:[#allocation13_spill] sm:$0xff]  ;;  %v4738_v14 = vld [vmem:[#allocation11_spill] sm:$0xff]  ;;  %v3385_v43 = vpop.f32.mrb[36].mxu1 }
 0x1f8   : > { %v1534_v39 = vpop.permute.xlu1 %1533  ;;  %2035 = vrot.lane.b32.xlu0 %v4732_v60, %s3559_s8  ;;  %3316 = vst [vmem:[%s4228_s29 + $0x48] sm:$0xff] %v3246_v46   ;;  %v1677_v63 = vmul.f32 %v4738_v14, %v4737_v38  ;;  %v4739_v44 = vld [vmem:[#allocation34_spill] sm:$0xff]  ;;  %v1149_v5 = vpop.f32.mrb[37].mxu1 }
 0x1f9   : > { %v3191_v57 = vpack.c.bf16 %v2284_v32, %v2283_v30  ;;  %v1686_v45 = vmul.f32 %v1534_v39, %v4315_v36  ;;  %v1717_v1 = vadd.f32 %v1685_v53, %v1653_v4  ;;  %3315 = vst [vmem:[%s4228_s29 + $0x40] sm:$0xff] %v3241_v58   ;;  %v4740_v30 = vld [vmem:[#allocation19_spill] sm:$0xff]  ;;  %v4741_v32 = vld [vmem:[#allocation16_spill] sm:$0xff] }
 0x1fa   : > { %v1580_v37 = vpop.permute.xlu0 %1579  ;;  %2037 = vrot.lane.b32.xlu1 %v4733_v42, %s3559_s8  ;;  %v1678_v39 = vmul.f32 %v4741_v32, %v4740_v30  ;;  %v4744_v30 = vld [vmem:[#allocation18_spill] sm:$0xff] }
 0x1fb   : > { %3306 = vst [vmem:[%s4068_s30 + $0x70] sm:$0xff] %v3191_v57   ;;  %v1718_v56 = vadd.f32 %v1686_v45, %v1654_v35  ;;  %v1709_v9 = vmul.f32 %v1580_v37, %v1453_v11 }
 0x1fc   : > { %v1582_v3 = vpop.permute.xlu1 %1581  ;;  %2099 = vrot.lane.b32.xlu0 %v4732_v60, %s3560_s9 }
 0x1fd   : > { %v1710_v33 = vmul.f32 %v1582_v3, %v1454_v7  ;;  %v3386_v3 = vpop.f32.mrb[38].mxu1  ;;  %v1741_v12 = vadd.f32 %v1709_v9, %v1677_v63  ;;  %v4743_v9 = vld [vmem:[#allocation35_spill] sm:$0xff] }
 0x1fe   : > { %v1596_v48 = vpop.permute.xlu0 %1595  ;;  %2101 = vrot.lane.b32.xlu1 %v4733_v42, %s3560_s9  ;;  %v1152_v4 = vpop.f32.mrb[39].mxu1  ;;  %v3256_v46 = vpack.c.bf16 %v3386_v3, %v3385_v43  ;;  %v4746_v3 = vld [vmem:[#allocation20_spill] sm:$0xff] }
 0x1ff   : > { %v1749_v47 = vmul.f32 %v1596_v48, %v4336_v10  ;;  %v1742_v45 = vadd.f32 %v1710_v33, %v1678_v39  ;;  %v3251_v58 = vpack.c.bf16 %v1152_v4, %v1149_v5  ;;  %v3389_v33 = vpop.f32.mrb[40].mxu1  ;;  %v4745_v5 = vld [vmem:[#allocation14_spill] sm:$0xff] }
 0x200   : > { %v1598_v52 = vpop.permute.xlu1 %1597  ;;  %1559 = vrot.lane.b32.xlu0 %v4736_v49, %s3559_s8  ;;  %3318 = vst [vmem:[%s4228_s29 + $0x58] sm:$0xff] %v3256_v46   ;;  %v1165_v38 = vpop.f32.mrb[41].mxu1  ;;  %v4749_v46 = vld [vmem:[#allocation38_spill] sm:$0xff] }
 0x201   : > { %v1750_v40 = vmul.f32 %v1598_v52, %v4352_v59  ;;  %v1781_v57 = vadd.f32 %v1749_v47, %v1717_v1  ;;  %v4742_v1 = vld [vmem:[#allocation33_spill] sm:$0xff]  ;;  %3317 = vst [vmem:[%s4228_s29 + $0x50] sm:$0xff] %v3251_v58   ;;  %v3390_v63 = vpop.f32.mrb[42].mxu1 }
 0x202   : > { %v1644_v13 = vpop.permute.xlu0 %1643  ;;  %1561 = vrot.lane.b32.xlu1 %v4739_v44, %s3559_s8 }
 0x203   : > { %v1782_v37 = vadd.f32 %v1750_v40, %v1718_v56  ;;  %v1773_v61 = vmul.f32 %v1644_v13, %v4362_v54 }
 0x204   : > { %v1646_v53 = vpop.permute.xlu1 %1645  ;;  %1623 = vrot.lane.b32.xlu0 %v4736_v49, %s3560_s9 }
 0x205   : > { %v3056_v2 = vpack.c.bf16 %v1782_v37, %v1781_v57  ;;  %v1774_v55 = vmul.f32 %v1646_v53, %v4374_v50  ;;  %v1805_v15 = vadd.f32 %v1773_v61, %v1741_v12  ;;  %v1168_v57 = vpop.f32.mrb[43].mxu1  ;;  %v2133_v53 = vmul.f32 %v4322_v8, %v4745_v5  ;;  %v4747_v12 = vld [vmem:[#allocation22_spill] sm:$0xff] }
 0x206   : > { %v2012_v48 = vpop.permute.xlu0 %2011  ;;  %1625 = vrot.lane.b32.xlu1 %v4739_v44, %s3560_s9  ;;  %v3261_v61 = vpack.c.bf16 %v1168_v57, %v1165_v38  ;;  %v1431_v8 = vld [vmem:[%s4644_s3 + $0x40] sm:$0xff]  ;;  %v3393_v58 = vpop.f32.mrb[44].mxu1 }
 0x207   : > { %3280 = vst [vmem:[%s4027_s11 + $0x18] sm:$0xff] %v3056_v2   ;;  %v1806_v35 = vadd.f32 %v1774_v55, %v1742_v45  ;;  %v2165_v13 = vmul.f32 %v2012_v48, %v4310_v51  ;;  %v2134_v51 = vmul.f32 %v4328_v41, %v4746_v3 }
 0x208   : > { %v2014_v47 = vpop.permute.xlu1 %2013  ;;  %2039 = vrot.lane.b32.xlu0 %v4742_v1, %s3559_s8  ;;  %3319 = vst [vmem:[%s4228_s29 + $0x60] sm:$0xff] %v3261_v61   ;;  %v4751_v61 = vld [vmem:[#allocation25_spill] sm:$0xff] }
 0x209   : > { %v3116_v52 = vpack.c.bf16 %v1806_v35, %v1805_v15  ;;  %v2166_v43 = vmul.f32 %v2014_v47, %v4315_v36  ;;  %v2197_v55 = vadd.f32 %v2165_v13, %v2133_v53  ;;  %v1181_v47 = vpop.f32.mrb[45].mxu1 }
 0x20a   : > { %v2060_v56 = vpop.permute.xlu0 %2059  ;;  %2041 = vrot.lane.b32.xlu1 %v4743_v9, %s3559_s8 }
 0x20b   : > { %3292 = vst [vmem:[%s4027_s11 + $0x78] sm:$0xff] %v3116_v52   ;;  %v2189_v40 = vmul.f32 %v2060_v56, %v1453_v11  ;;  %v3266_v11 = vpack.c.bf16 %v3390_v63, %v3389_v33  ;;  %v2198_v4 = vadd.f32 %v2166_v43, %v2134_v51  ;;  %v1400_v52 = vld [vmem:[%s4643_s2 + $0x48] sm:$0xff]  ;;  %v1463_v33 = vld [vmem:[%s4645_s4 + $0x40] sm:$0xff]  ;;  %v4752_v51 = vld [vmem:[#allocation37_spill] sm:$0xff] }
 0x20c   : > { %v2062_v14 = vpop.permute.xlu1 %2061  ;;  %2103 = vrot.lane.b32.xlu0 %v4742_v1, %s3560_s9  ;;  %v1656_v5 = vmul.f32 %v1400_v52, %v4751_v61 }
 0x20d   : > { %v4397_v32 = vadd.f32 %v2189_v40, %v4744_v30  ;;  %v2190_v39 = vmul.f32 %v2062_v14, %v1454_v7  ;;  %v4748_v7 = vld [vmem:[#allocation36_spill] sm:$0xff]  ;;  %3320 = vst [vmem:[%s4228_s29 + $0x68] sm:$0xff] %v3266_v11   ;;  %v3394_v40 = vpop.f32.mrb[46].mxu1  ;;  %v1464_v30 = vld [vmem:[%s4645_s4 + $0x48] sm:$0xff] }
 0x20e   : > { %v2076_v37 = vpop.permute.xlu0 %2075  ;;  %2105 = vrot.lane.b32.xlu1 %v4743_v9, %s3560_s9  ;;  %v1184_v13 = vpop.f32.mrb[47].mxu1 }
 0x20f   : > { %v4406_v45 = vadd.f32 %v2190_v39, %v4747_v12  ;;  %v2229_v36 = vmul.f32 %v2076_v37, %v4336_v10  ;;  %v1432_v10 = vld [vmem:[%s4644_s3 + $0x48] sm:$0xff]  ;;  %v3276_v39 = vpack.c.bf16 %v3394_v40, %v3393_v58  ;;  %v3271_v57 = vpack.c.bf16 %v1184_v13, %v1181_v47  ;;  %v4754_v40 = vld [vmem:[#allocation24_spill] sm:$0xff] }
 0x210   : > { %v2078_v2 = vpop.permute.xlu1 %2077  ;;  %1563 = vrot.lane.b32.xlu0 %v4748_v7, %s3559_s8  ;;  %v4750_v37 = vld [vmem:[#allocation23_spill] sm:$0xff] }
 0x211   : > { %v2230_v48 = vmul.f32 %v2078_v2, %v4352_v59  ;;  %v2261_v15 = vadd.f32 %v2229_v36, %v2197_v55  ;;  %v1399_v59 = vld [vmem:[%s4643_s2 + $0x40] sm:$0xff]  ;;  %3322 = vst [vmem:[%s4228_s29 + $0x78] sm:$0xff] %v3276_v39   ;;  %3321 = vst [vmem:[%s4228_s29 + $0x70] sm:$0xff] %v3271_v57  }
 0x212   : > { %v1536_v41 = vpop.permute.xlu0 %1535  ;;  %1565 = vrot.lane.b32.xlu1 %v4749_v46, %s3559_s8  ;;  %v1655_v11 = vmul.f32 %v1399_v59, %v4750_v37 }
 0x213   : > { %v2262_v35 = vadd.f32 %v2230_v48, %v2198_v4  ;;  %v1687_v14 = vmul.f32 %v1536_v41, %v1431_v8  ;;  %v4753_v4 = vld [vmem:[#allocation39_spill] sm:$0xff] }
 0x214   : > { %v1538_v56 = vpop.permute.xlu1 %1537  ;;  %1627 = vrot.lane.b32.xlu0 %v4748_v7, %s3560_s9 }
 0x215   : > { %v3136_v38 = vpack.c.bf16 %v2262_v35, %v2261_v15  ;;  %v1688_v63 = vmul.f32 %v1538_v56, %v1432_v10  ;;  %v1719_v12 = vadd.f32 %v1687_v14, %v1655_v11  ;;  %v2136_v14 = vmul.f32 %v1400_v52, %v3845_v16  ;;  %v4756_v11 = vld [vmem:[#allocation21_spill] sm:$0xff] }
 0x216   : > { %v1600_v43 = vpop.permute.xlu0 %1599  ;;  %1629 = vrot.lane.b32.xlu1 %v4749_v46, %s3560_s9  ;;  %v1434_v16 = vld [vmem:[%s4644_s3 + $0x58] sm:$0xff] }
 0x217   : > { %3295 = vst [vmem:[%s4068_s30 + $0x18] sm:$0xff] %v3136_v38   ;;  %v1751_v53 = vmul.f32 %v1600_v43, %v1463_v33  ;;  %v1720_v36 = vadd.f32 %v1688_v63, %v1656_v5  ;;  %v2135_v38 = vmul.f32 %v1399_v59, %v4754_v40  ;;  %v4755_v43 = vld [vmem:[#allocation15_spill] sm:$0xff]  ;;  %v1465_v5 = vld [vmem:[%s4645_s4 + $0x50] sm:$0xff] }
 0x218   : > { %v1602_v3 = vpop.permute.xlu1 %1601  ;;  %2043 = vrot.lane.b32.xlu0 %v4752_v51, %s3559_s8 }
 0x219   : > { %v1752_v2 = vmul.f32 %v1602_v3, %v1464_v30  ;;  %v1783_v48 = vadd.f32 %v1751_v53, %v1719_v12 }
 0x21a   : > { %v2016_v55 = vpop.permute.xlu0 %2015  ;;  %2045 = vrot.lane.b32.xlu1 %v4753_v4, %s3559_s8 }
 0x21b   : > { %v1784_v41 = vadd.f32 %v1752_v2, %v1720_v36  ;;  %v2167_v35 = vmul.f32 %v2016_v55, %v1431_v8  ;;  %v1433_v8 = vld [vmem:[%s4644_s3 + $0x50] sm:$0xff]  ;;  %v1466_v2 = vld [vmem:[%s4645_s4 + $0x58] sm:$0xff] }
 0x21c   : > { %v2018_v58 = vpop.permute.xlu1 %2017  ;;  %2107 = vrot.lane.b32.xlu0 %v4752_v51, %s3560_s9 }
 0x21d   : > { %v3061_v15 = vpack.c.bf16 %v1784_v41, %v1783_v48  ;;  %v2168_v47 = vmul.f32 %v2018_v58, %v1432_v10  ;;  %v2199_v39 = vadd.f32 %v2167_v35, %v2135_v38 }
 0x21e   : > { %v2080_v56 = vpop.permute.xlu0 %2079  ;;  %2109 = vrot.lane.b32.xlu1 %v4753_v4, %s3560_s9 }
 0x21f   : > { %3281 = vst [vmem:[%s4027_s11 + $0x20] sm:$0xff] %v3061_v15   ;;  %v2231_v63 = vmul.f32 %v2080_v56, %v1463_v33  ;;  %v2200_v57 = vadd.f32 %v2168_v47, %v2136_v14  ;;  %v1401_v33 = vld [vmem:[%s4643_s2 + $0x50] sm:$0xff] }
 0x220   : > { %v2082_v13 = vpop.permute.xlu1 %2081  ;;  %2123 = vrot.lane.b32.xlu0 %v4755_v43, %s3560_s9  ;;  %v1657_v55 = vmul.f32 %v1401_v33, %v3851_v17 }
 0x221   : > { %v2232_v37 = vmul.f32 %v2082_v13, %v1464_v30  ;;  %v2263_v59 = vadd.f32 %v2231_v63, %v2199_v39  ;;  %v1402_v30 = vld [vmem:[%s4643_s2 + $0x58] sm:$0xff] }
 0x222   : > { %v1540_v10 = vpop.permute.xlu0 %1539  ;;  %2125 = vrot.lane.b32.xlu1 %v4756_v11, %s3560_s9  ;;  %v1658_v48 = vmul.f32 %v1402_v30, %v3857_v19  ;;  %v2138_v17 = vmul.f32 %v1402_v30, %v3861_v20  ;;  %v1403_v20 = vld [vmem:[%s4643_s2 + $0x60] sm:$0xff] }
 0x223   : > { %v2264_v52 = vadd.f32 %v2232_v37, %v2200_v57  ;;  %v1689_v3 = vmul.f32 %v1540_v10, %v1433_v8  ;;  %v2137_v57 = vmul.f32 %v1401_v33, %v3855_v18  ;;  %v1404_v33 = vld [vmem:[%s4643_s2 + $0x68] sm:$0xff] }
 0x224   : > { %v1542_v61 = vpop.permute.xlu1 %1541 }
 0x225   : > { %v3141_v53 = vpack.c.bf16 %v2264_v52, %v2263_v59  ;;  %v1690_v12 = vmul.f32 %v1542_v61, %v1434_v16  ;;  %v1721_v15 = vadd.f32 %v1689_v3, %v1657_v55  ;;  %v1435_v52 = vld [vmem:[%s4644_s3 + $0x60] sm:$0xff]  ;;  %v1659_v55 = vmul.f32 %v1403_v20, %v3867_v21 }
 0x226   : > { %v1604_v36 = vpop.permute.xlu0 %1603  ;;  %v2140_v21 = vmul.f32 %v1404_v33, %v3877_v24  ;;  %v1405_v24 = vld [vmem:[%s4643_s2 + $0x70] sm:$0xff] }
 0x227   : > { %3296 = vst [vmem:[%s4068_s30 + $0x20] sm:$0xff] %v3141_v53   ;;  %v1753_v41 = vmul.f32 %v1604_v36, %v1465_v5  ;;  %v1722_v35 = vadd.f32 %v1690_v12, %v1658_v48  ;;  %v1660_v48 = vmul.f32 %v1404_v33, %v3873_v23 }
 0x228   : > { %v1606_v58 = vpop.permute.xlu1 %1605 }
 0x229   : > { %v1754_v47 = vmul.f32 %v1606_v58, %v1466_v2  ;;  %v1785_v40 = vadd.f32 %v1753_v41, %v1721_v15 }
 0x22a   : > { %v2020_v56 = vpop.permute.xlu0 %2019 }
 0x22b   : > { %v1786_v38 = vadd.f32 %v1754_v47, %v1722_v35  ;;  %v2169_v13 = vmul.f32 %v2020_v56, %v1433_v8  ;;  %v1436_v8 = vld [vmem:[%s4644_s3 + $0x68] sm:$0xff] }
 0x22c   : > { %v2022_v14 = vpop.permute.xlu1 %2021 }
 0x22d   : > { %v3066_v63 = vpack.c.bf16 %v1786_v38, %v1785_v40  ;;  %v2170_v43 = vmul.f32 %v2022_v14, %v1434_v16  ;;  %v2201_v10 = vadd.f32 %v2169_v13, %v2137_v57  ;;  %v2139_v57 = vmul.f32 %v1403_v20, %v3871_v22 }
 0x22e   : > { %v2084_v39 = vpop.permute.xlu0 %2083 }
 0x22f   : > { %3282 = vst [vmem:[%s4027_s11 + $0x28] sm:$0xff] %v3066_v63   ;;  %v2233_v19 = vmul.f32 %v2084_v39, %v1465_v5  ;;  %v2202_v11 = vadd.f32 %v2170_v43, %v2138_v17  ;;  %v1467_v5 = vld [vmem:[%s4645_s4 + $0x60] sm:$0xff] }
 0x230   : > { %v2086_v37 = vpop.permute.xlu1 %2085 }
 0x231   : > { %v2234_v59 = vmul.f32 %v2086_v37, %v1466_v2  ;;  %v2265_v16 = vadd.f32 %v2233_v19, %v2201_v10  ;;  %v1468_v2 = vld [vmem:[%s4645_s4 + $0x68] sm:$0xff] }
 0x232   : > { %v1544_v61 = vpop.permute.xlu0 %1543 }
 0x233   : > { %v2266_v18 = vadd.f32 %v2234_v59, %v2202_v11  ;;  %v1691_v3 = vmul.f32 %v1544_v61, %v1435_v52  ;;  %v1437_v11 = vld [vmem:[%s4644_s3 + $0x70] sm:$0xff] }
 0x234   : > { %v1546_v30 = vpop.permute.xlu1 %1545 }
 0x235   : > { %v3146_v53 = vpack.c.bf16 %v2266_v18, %v2265_v16  ;;  %v1692_v12 = vmul.f32 %v1546_v30, %v1436_v8  ;;  %v1723_v15 = vadd.f32 %v1691_v3, %v1659_v55  ;;  %v1469_v18 = vld [vmem:[%s4645_s4 + $0x70] sm:$0xff]  ;;  %v1661_v3 = vmul.f32 %v1405_v24, %v3883_v25 }
 0x236   : > { %v1608_v36 = vpop.permute.xlu0 %1607 }
 0x237   : > { %3297 = vst [vmem:[%s4068_s30 + $0x28] sm:$0xff] %v3146_v53   ;;  %v1755_v41 = vmul.f32 %v1608_v36, %v1467_v5  ;;  %v1724_v35 = vadd.f32 %v1692_v12, %v1660_v48  ;;  %v1470_v53 = vld [vmem:[%s4645_s4 + $0x78] sm:$0xff] }
 0x238   : > { %v1610_v58 = vpop.permute.xlu1 %1609 }
 0x239   : > { %v1756_v47 = vmul.f32 %v1610_v58, %v1468_v2  ;;  %v1787_v40 = vadd.f32 %v1755_v41, %v1723_v15 }
 0x23a   : > { %v2024_v56 = vpop.permute.xlu0 %2023 }
 0x23b   : > { %v1788_v38 = vadd.f32 %v1756_v47, %v1724_v35  ;;  %v2171_v13 = vmul.f32 %v2024_v56, %v1435_v52  ;;  %v1438_v52 = vld [vmem:[%s4644_s3 + $0x78] sm:$0xff] }
 0x23c   : > { %v2026_v14 = vpop.permute.xlu1 %2025 }
 0x23d   : > { %v3071_v63 = vpack.c.bf16 %v1788_v38, %v1787_v40  ;;  %v2172_v43 = vmul.f32 %v2026_v14, %v1436_v8  ;;  %v2203_v19 = vadd.f32 %v2171_v13, %v2139_v57  ;;  %v1406_v8 = vld [vmem:[%s4643_s2 + $0x78] sm:$0xff] }
 0x23e   : > { %v2088_v39 = vpop.permute.xlu0 %2087  ;;  %v1662_v12 = vmul.f32 %v1406_v8, %v3889_v27  ;;  %v2142_v25 = vmul.f32 %v1406_v8, %v3893_v28  ;;  %v1407_v28 = vld [vmem:[%s4643_s2 + $0x80] sm:$0xff] }
 0x23f   : > { %3283 = vst [vmem:[%s4027_s11 + $0x30] sm:$0xff] %v3071_v63   ;;  %v2235_v23 = vmul.f32 %v2088_v39, %v1467_v5  ;;  %v2204_v37 = vadd.f32 %v2172_v43, %v2140_v21  ;;  %v2141_v63 = vmul.f32 %v1405_v24, %v3887_v26  ;;  %v1439_v21 = vld [vmem:[%s4644_s3 + $0x80] sm:$0xff]  ;;  %v1472_v24 = vld [vmem:[%s4645_s4 + $0x88] sm:$0xff]  ;;  %v1663_v8 = vmul.f32 %v1407_v28, %v3899_v29 }
 0x240   : > { %v2090_v17 = vpop.permute.xlu1 %2089 }
 0x241   : > { %v2236_v10 = vmul.f32 %v2090_v17, %v1468_v2  ;;  %v2267_v61 = vadd.f32 %v2235_v23, %v2203_v19  ;;  %v1440_v17 = vld [vmem:[%s4644_s3 + $0x88] sm:$0xff] }
 0x242   : > { %v1548_v59 = vpop.permute.xlu0 %1547 }
 0x243   : > { %v2268_v22 = vadd.f32 %v2236_v10, %v2204_v37  ;;  %v1693_v33 = vmul.f32 %v1548_v59, %v1437_v11  ;;  %v1408_v37 = vld [vmem:[%s4643_s2 + $0x88] sm:$0xff] }
 0x244   : > { %v1550_v16 = vpop.permute.xlu1 %1549  ;;  %v2144_v29 = vmul.f32 %v1408_v37, %v4725_v0  ;;  %v1409_v0 = vld [vmem:[%s4643_s2 + $0x90] sm:$0xff] }
 0x245   : > { %v3151_v20 = vpack.c.bf16 %v2268_v22, %v2267_v61  ;;  %v1694_v30 = vmul.f32 %v1550_v16, %v1438_v52  ;;  %v1725_v55 = vadd.f32 %v1693_v33, %v1661_v3  ;;  %v1664_v16 = vmul.f32 %v1408_v37, %v3905_v31 }
 0x246   : > { %v1612_v5 = vpop.permute.xlu0 %1611 }
 0x247   : > { %3298 = vst [vmem:[%s4068_s30 + $0x30] sm:$0xff] %v3151_v20   ;;  %v1757_v36 = vmul.f32 %v1612_v5, %v1469_v18  ;;  %v1726_v48 = vadd.f32 %v1694_v30, %v1662_v12 }
 0x248   : > { %v1614_v2 = vpop.permute.xlu1 %1613 }
 0x249   : > { %v1758_v41 = vmul.f32 %v1614_v2, %v1470_v53  ;;  %v1789_v15 = vadd.f32 %v1757_v36, %v1725_v55 }
 0x24a   : > { %v2028_v58 = vpop.permute.xlu0 %2027 }
 0x24b   : > { %v1790_v35 = vadd.f32 %v1758_v41, %v1726_v48  ;;  %v2173_v40 = vmul.f32 %v2028_v58, %v1437_v11  ;;  %v1471_v11 = vld [vmem:[%s4645_s4 + $0x80] sm:$0xff]  ;;  %v2143_v58 = vmul.f32 %v1407_v28, %v4724_v62 }
 0x24c   : > { %v2030_v47 = vpop.permute.xlu1 %2029 }
 0x24d   : > { %v3076_v56 = vpack.c.bf16 %v1790_v35, %v1789_v15  ;;  %v2174_v38 = vmul.f32 %v2030_v47, %v1438_v52  ;;  %v2205_v43 = vadd.f32 %v2173_v40, %v2141_v63  ;;  %v1441_v40 = vld [vmem:[%s4644_s3 + $0x90] sm:$0xff] }
 0x24e   : > { %v2092_v14 = vpop.permute.xlu0 %2091 }
 0x24f   : > { %3284 = vst [vmem:[%s4027_s11 + $0x38] sm:$0xff] %v3076_v56   ;;  %v2237_v27 = vmul.f32 %v2092_v14, %v1469_v18  ;;  %v2206_v39 = vadd.f32 %v2174_v38, %v2142_v25  ;;  %v1442_v14 = vld [vmem:[%s4644_s3 + $0x98] sm:$0xff] }
 0x250   : > { %v2094_v13 = vpop.permute.xlu1 %2093  ;;  %v1410_v25 = vld [vmem:[%s4643_s2 + $0x98] sm:$0xff] }
 0x251   : > { %v2238_v57 = vmul.f32 %v2094_v13, %v1470_v53  ;;  %v2269_v19 = vadd.f32 %v2237_v27, %v2205_v43  ;;  %v1473_v13 = vld [vmem:[%s4645_s4 + $0x90] sm:$0xff] }
 0x252   : > { %v1552_v23 = vpop.permute.xlu0 %1551 }
 0x253   : > { %v2270_v26 = vadd.f32 %v2238_v57, %v2206_v39  ;;  %v1695_v52 = vmul.f32 %v1552_v23, %v1439_v21  ;;  %v1474_v23 = vld [vmem:[%s4645_s4 + $0x98] sm:$0xff] }
 0x254   : > { %v1554_v10 = vpop.permute.xlu1 %1553 }
 0x255   : > { %v3156_v59 = vpack.c.bf16 %v2270_v26, %v2269_v19  ;;  %v1696_v61 = vmul.f32 %v1554_v10, %v1440_v17  ;;  %v1727_v33 = vadd.f32 %v1695_v52, %v1663_v8  ;;  %v1666_v19 = vmul.f32 %v1410_v25, %v4730_v6 }
 0x256   : > { %v1616_v22 = vpop.permute.xlu0 %1615 }
 0x257   : > { %3299 = vst [vmem:[%s4068_s30 + $0x38] sm:$0xff] %v3156_v59   ;;  %v1759_v18 = vmul.f32 %v1616_v22, %v1471_v11  ;;  %v1728_v30 = vadd.f32 %v1696_v61, %v1664_v16 }
 0x258   : > { %v1618_v20 = vpop.permute.xlu1 %1617 }
 0x259   : > { %v1760_v5 = vmul.f32 %v1618_v20, %v1472_v24  ;;  %v1791_v3 = vadd.f32 %v1759_v18, %v1727_v33  ;;  %v2145_v20 = vmul.f32 %v1409_v0, %v4732_v60 }
 0x25a   : > { %v2032_v53 = vpop.permute.xlu0 %2031 }
 0x25b   : > { %v1792_v12 = vadd.f32 %v1760_v5, %v1728_v30  ;;  %v2175_v55 = vmul.f32 %v2032_v53, %v1439_v21 }
 0x25c   : > { %v2034_v36 = vpop.permute.xlu1 %2033 }
 0x25d   : > { %v3081_v2 = vpack.c.bf16 %v1792_v12, %v1791_v3  ;;  %v2176_v48 = vmul.f32 %v2034_v36, %v1440_v17  ;;  %v2207_v35 = vadd.f32 %v2175_v55, %v2143_v58  ;;  %v1665_v17 = vmul.f32 %v1409_v0, %v4728_v34  ;;  %v1443_v3 = vld [vmem:[%s4644_s3 + $0xa0] sm:$0xff]  ;;  %v1444_v36 = vld [vmem:[%s4644_s3 + $0xa8] sm:$0xff] }
 0x25e   : > { %v2096_v41 = vpop.permute.xlu0 %2095  ;;  %v2146_v34 = vmul.f32 %v1410_v25, %v4733_v42  ;;  %v1411_v42 = vld [vmem:[%s4643_s2 + $0xa0] sm:$0xff]  ;;  %v1412_v55 = vld [vmem:[%s4643_s2 + $0xa8] sm:$0xff] }
 0x25f   : > { %3285 = vst [vmem:[%s4027_s11 + $0x40] sm:$0xff] %v3081_v2   ;;  %v2239_v31 = vmul.f32 %v2096_v41, %v1471_v11  ;;  %v2208_v47 = vadd.f32 %v2176_v48, %v2144_v29  ;;  %v1475_v41 = vld [vmem:[%s4645_s4 + $0xa0] sm:$0xff] }
 0x260   : > { %v2098_v15 = vpop.permute.xlu1 %2097 }
 0x261   : > { %v2240_v56 = vmul.f32 %v2098_v15, %v1472_v24  ;;  %v2271_v63 = vadd.f32 %v2239_v31, %v2207_v35  ;;  %v1476_v35 = vld [vmem:[%s4645_s4 + $0xa8] sm:$0xff] }
 0x262   : > { %v1556_v38 = vpop.permute.xlu0 %1555 }
 0x263   : > { %v2272_v62 = vadd.f32 %v2240_v56, %v2208_v47  ;;  %v1697_v39 = vmul.f32 %v1556_v38, %v1441_v40  ;;  %v1667_v47 = vmul.f32 %v1411_v42, %v4736_v49  ;;  %v1668_v56 = vmul.f32 %v1412_v55, %v4739_v44 }
 0x264   : > { %v1558_v27 = vpop.permute.xlu1 %1557  ;;  %v2148_v49 = vmul.f32 %v1412_v55, %v4743_v9  ;;  %v1413_v9 = vld [vmem:[%s4643_s2 + $0xb0] sm:$0xff] }
 0x265   : > { %v3161_v43 = vpack.c.bf16 %v2272_v62, %v2271_v63  ;;  %v1698_v57 = vmul.f32 %v1558_v27, %v1442_v14  ;;  %v1729_v37 = vadd.f32 %v1697_v39, %v1665_v17 }
 0x266   : > { %v1620_v21 = vpop.permute.xlu0 %1619 }
 0x267   : > { %3300 = vst [vmem:[%s4068_s30 + $0x40] sm:$0xff] %v3161_v43   ;;  %v1761_v26 = vmul.f32 %v1620_v21, %v1473_v13  ;;  %v1730_v10 = vadd.f32 %v1698_v57, %v1666_v19 }
 0x268   : > { %v1622_v28 = vpop.permute.xlu1 %1621 }
 0x269   : > { %v1762_v11 = vmul.f32 %v1622_v28, %v1474_v23  ;;  %v1793_v52 = vadd.f32 %v1761_v26, %v1729_v37  ;;  %v1445_v37 = vld [vmem:[%s4644_s3 + $0xb0] sm:$0xff] }
 0x26a   : > { %v2036_v59 = vpop.permute.xlu0 %2035 }
 0x26b   : > { %v1794_v61 = vadd.f32 %v1762_v11, %v1730_v10  ;;  %v2177_v8 = vmul.f32 %v2036_v59, %v1441_v40  ;;  %v1446_v11 = vld [vmem:[%s4644_s3 + $0xb8] sm:$0xff] }
 0x26c   : > { %v2038_v22 = vpop.permute.xlu1 %2037 }
 0x26d   : > { %v3086_v24 = vpack.c.bf16 %v1794_v61, %v1793_v52  ;;  %v2178_v16 = vmul.f32 %v2038_v22, %v1442_v14  ;;  %v2209_v30 = vadd.f32 %v2177_v8, %v2145_v20  ;;  %v1414_v52 = vld [vmem:[%s4643_s2 + $0xb8] sm:$0xff]  ;;  %v1477_v22 = vld [vmem:[%s4645_s4 + $0xb0] sm:$0xff] }
 0x26e   : > { %v2100_v18 = vpop.permute.xlu0 %2099  ;;  %v1478_v20 = vld [vmem:[%s4645_s4 + $0xb8] sm:$0xff] }
 0x26f   : > { %3286 = vst [vmem:[%s4027_s11 + $0x48] sm:$0xff] %v3086_v24   ;;  %v2241_v6 = vmul.f32 %v2100_v18, %v1473_v13  ;;  %v2210_v5 = vadd.f32 %v2178_v16, %v2146_v34  ;;  %v1669_v34 = vmul.f32 %v1413_v9, %v4748_v7  ;;  %v2149_v7 = vmul.f32 %v1413_v9, %v4752_v51 }
 0x270   : > { %v2102_v33 = vpop.permute.xlu1 %2101 }
 0x271   : > { %v2242_v53 = vmul.f32 %v2102_v33, %v1474_v23  ;;  %v2273_v2 = vadd.f32 %v2241_v6, %v2209_v30  ;;  %v2147_v23 = vmul.f32 %v1411_v42, %v4742_v1  ;;  %v1670_v6 = vmul.f32 %v1414_v52, %v4749_v46 }
 0x272   : > { %v1560_v12 = vpop.permute.xlu0 %1559  ;;  %v2150_v46 = vmul.f32 %v1414_v52, %v4753_v4 }
 0x273   : > { %v2274_v60 = vadd.f32 %v2242_v53, %v2210_v5  ;;  %v1699_v29 = vmul.f32 %v1560_v12, %v1443_v3 }
 0x274   : > { %v1562_v48 = vpop.permute.xlu1 %1561 }
 0x275   : > { %v3166_v58 = vpack.c.bf16 %v2274_v60, %v2273_v2  ;;  %v1700_v31 = vmul.f32 %v1562_v48, %v1444_v36  ;;  %v1731_v14 = vadd.f32 %v1699_v29, %v1667_v47 }
 0x276   : > { %v1624_v15 = vpop.permute.xlu0 %1623 }
 0x277   : > { %3301 = vst [vmem:[%s4068_s30 + $0x48] sm:$0xff] %v3166_v58   ;;  %v1763_v40 = vmul.f32 %v1624_v15, %v1475_v41  ;;  %v1732_v63 = vadd.f32 %v1700_v31, %v1668_v56 }
 0x278   : > { %v1626_v38 = vpop.permute.xlu1 %1625 }
 0x279   : > { %v1764_v62 = vmul.f32 %v1626_v38, %v1476_v35  ;;  %v1795_v25 = vadd.f32 %v1763_v40, %v1731_v14 }
 0x27a   : > { %v2040_v0 = vpop.permute.xlu0 %2039 }
 0x27b   : > { %v1796_v27 = vadd.f32 %v1764_v62, %v1732_v63  ;;  %v2179_v39 = vmul.f32 %v2040_v0, %v1443_v3 }
 0x27c   : > { %v2042_v13 = vpop.permute.xlu1 %2041 }
 0x27d   : > { %v3091_v43 = vpack.c.bf16 %v1796_v27, %v1795_v25  ;;  %v2180_v57 = vmul.f32 %v2042_v13, %v1444_v36  ;;  %v2211_v19 = vadd.f32 %v2179_v39, %v2147_v23 }
 0x27e   : > { %v2104_v21 = vpop.permute.xlu0 %2103 }
 0x27f   : > { %3287 = vst [vmem:[%s4027_s11 + $0x50] sm:$0xff] %v3091_v43   ;;  %v2243_v44 = vmul.f32 %v2104_v21, %v1475_v41  ;;  %v2212_v26 = vadd.f32 %v2180_v57, %v2148_v49 }
 0x280   : > { %v2106_v17 = vpop.permute.xlu1 %2105 }
 0x281   : > { %v2244_v28 = vmul.f32 %v2106_v17, %v1476_v35  ;;  %v2275_v59 = vadd.f32 %v2243_v44, %v2211_v19 }
 0x282   : > { %v1564_v10 = vpop.permute.xlu0 %1563 }
 0x283   : > { %v2276_v1 = vadd.f32 %v2244_v28, %v2212_v26  ;;  %v1701_v8 = vmul.f32 %v1564_v10, %v1445_v37 }
 0x284   : > { %v1566_v61 = vpop.permute.xlu1 %1565 }
 0x285   : > { %v3171_v24 = vpack.c.bf16 %v2276_v1, %v2275_v59  ;;  %v1702_v16 = vmul.f32 %v1566_v61, %v1446_v11  ;;  %v1733_v5 = vadd.f32 %v1701_v8, %v1669_v34 }
 0x286   : > { %v1628_v18 = vpop.permute.xlu0 %1627 }
 0x287   : > { %3302 = vst [vmem:[%s4068_s30 + $0x50] sm:$0xff] %v3171_v24   ;;  %v1765_v33 = vmul.f32 %v1628_v18, %v1477_v22  ;;  %v1734_v53 = vadd.f32 %v1702_v16, %v1670_v6 }
 0x288   : > { %v1630_v30 = vpop.permute.xlu1 %1629 }
 0x289   : > { %v1766_v3 = vmul.f32 %v1630_v30, %v1478_v20  ;;  %v1797_v36 = vadd.f32 %v1765_v33, %v1733_v5 }
 0x28a   : > { %v2044_v12 = vpop.permute.xlu0 %2043 }
 0x28b   : > { %v1798_v2 = vadd.f32 %v1766_v3, %v1734_v53  ;;  %v2181_v55 = vmul.f32 %v2044_v12, %v1445_v37 }
 0x28c   : > { %v2046_v60 = vpop.permute.xlu1 %2045 }
 0x28d   : > { %v3096_v42 = vpack.c.bf16 %v1798_v2, %v1797_v36  ;;  %v2182_v48 = vmul.f32 %v2046_v60, %v1446_v11  ;;  %v2213_v31 = vadd.f32 %v2181_v55, %v2149_v7 }
 0x28e   : > { %v2108_v41 = vpop.permute.xlu0 %2107 }
 0x28f   : > { %3288 = vst [vmem:[%s4027_s11 + $0x58] sm:$0xff] %v3096_v42   ;;  %v2245_v58 = vmul.f32 %v2108_v41, %v1477_v22  ;;  %v2214_v15 = vadd.f32 %v2182_v48, %v2150_v46 }
 0x290   : > { %v2110_v29 = vpop.permute.xlu1 %2109 }
 0x291   : > { %v2246_v35 = vmul.f32 %v2110_v29, %v1478_v20  ;;  %v2277_v56 = vadd.f32 %v2245_v58, %v2213_v31 }
 0x292   : > { %v2124_v47 = vpop.permute.xlu0 %2123 }
 0x293   : > { %v2278_v40 = vadd.f32 %v2246_v35, %v2214_v15  ;;  %v2253_v38 = vmul.f32 %v2124_v47, %v4362_v54 }
 0x294   : > { %v2126_v14 = vpop.permute.xlu1 %2125 }
 0x295   : > { %v3176_v63 = vpack.c.bf16 %v2278_v40, %v2277_v56  ;;  %v2254_v62 = vmul.f32 %v2126_v14, %v4374_v50  ;;  %v2285_v51 = vadd.f32 %v2253_v38, %v4397_v32 }
 0x297   : > { %3303 = vst [vmem:[%s4068_s30 + $0x58] sm:$0xff] %v3176_v63   ;;  %v2286_v4 = vadd.f32 %v2254_v62, %v4406_v45 }
 0x299   : > { %v3196_v0 = vpack.c.bf16 %v2286_v4, %v2285_v51 }
 0x29b   : > { %3307 = vst [vmem:[%s4068_s30 + $0x78] sm:$0xff] %v3196_v0  }
 0x29c PF: > { %s19_s26 = sadd.s32 1, %s3553_s26   ;;  %s4757_s24 = smov %s3549_s25 }
 0x29d   : > { %p16_p4 = scmp.ge.s32.totalorder %s19_s26, 4   ;;  %s4758_s25 = smov %s4760_s28 }
 0x29f   :  { %18 = sbr.rel (!%p16_p4) target bundleno = 2 (0x2), region = 108 }
 0x2a6   :  { %2695 = vsyncpa [#allocation4], 1 }
 0x2a7   :  { %2697 = vsyncpa [#allocation4 + $0x1], 1 }

</bundles_post_ra>
